<compile_context>
chip_gen: v5e
topology: v5e:2x2
jax: 0.10.0
libtpu: 0.0.40
codegen_flags: <defaults>
</compile_context>

<pallas_src>
import math

import jax
import jax.numpy as jnp
import numpy as np
from jax.experimental import pallas as pl
from jax.experimental.pallas import tpu as pltpu

# ----------------------------- configuration -----------------------------
DIM = 32                      # configs.dim
NUM_HEADS = 4                 # configs.num_heads
HEAD_SIZE = DIM // NUM_HEADS
KERNELS = (1, 3, 5)           # configs.kernels
SEQ = 16
BATCH = 2
EPS = 1e-6

PAD = max(KERNELS) // 2
# One entry per conv tap: relative temporal shift of that tap ('same' padding).
SHIFTS = tuple(dk - k // 2 for k in KERNELS for dk in range(k))
NUM_TAPS = len(SHIFTS)                          # sum(KERNELS) = 9
UNIQUE_SHIFTS = tuple(range(-PAD, PAD + 1))     # (-2,-1,0,1,2)
NUM_SHIFTS = len(UNIQUE_SHIFTS)

BL = BATCH * SEQ              # folded batch*sequence rows


# ------------------------------ Pallas kernel -----------------------------
def _layer_norm(v, g, b):
    mu = jnp.mean(v, axis=-1, keepdims=True)
    var = jnp.mean(jnp.square(v - mu), axis=-1, keepdims=True)
    return (v - mu) * jax.lax.rsqrt(var + EPS) * g + b


def _gelu_exact(v):
    # nn.GELU() default: exact erf-based GELU.
    return 0.5 * v * (1.0 + jax.lax.erf(v / jnp.sqrt(jnp.float32(2.0))))


def mca_kernel(x_ref,
               ln1g_ref, ln1b_ref,
               wqkv_ref, bqkv_ref,
               ln2g_ref, ln2b_ref,
               w1_ref, b1_ref, w2_ref, b2_ref,
               o_ref):
    x = x_ref[...].astype(jnp.float32)                 # (B*L, D), batch folded

    # ---- layer_norm1 ----
    h = _layer_norm(x, ln1g_ref[0], ln1b_ref[0])

    # ---- fused QKV: accumulate over the 5 unique temporal shifts.
    #      Taps sharing a shift were pre-summed into W_s on the host.
    #      pltpu.roll runs on the XLU; the (BL, 1) column mask zeroes the
    #      per-batch 'same'-padding halo so taps never leak across the folded
    #      batch boundary. ----
    pos = jax.lax.broadcasted_iota(jnp.int32, (BL, 1), 0) % SEQ    # (BL, 1)
    qkv = None
    for si, s in enumerate(UNIQUE_SHIFTS):
        if s == 0:
            win = h
        else:
            rolled = pltpu.roll(h, shift=(-s) % BL, axis=0)        # row r <- h[r+s]
            valid = jnp.logical_and(pos + s >= 0, pos + s < SEQ)   # (BL, 1) column
            win = jnp.where(valid, rolled, 0.0)
        term = jnp.dot(win, wqkv_ref[si], preferred_element_type=jnp.float32)
        qkv = term if qkv is None else qkv + term
    qkv = qkv + bqkv_ref[0]                                        # (B*L, 3*D)

    # ---- head split: (B*L, 3*D) -> three (H, B*L, hs) stacks ----
    hs = HEAD_SIZE
    qh = jnp.stack([qkv[:, n * hs:(n + 1) * hs]
                    for n in range(NUM_HEADS)], axis=0)            # (H, B*L, hs)
    kh = jnp.stack([qkv[:, DIM + n * hs:DIM + (n + 1) * hs]
                    for n in range(NUM_HEADS)], axis=0)
    vh = jnp.stack([qkv[:, 2 * DIM + n * hs:2 * DIM + (n + 1) * hs]
                    for n in range(NUM_HEADS)], axis=0)

    # ---- per-batch attention (B unrolled; SEQ row blocks are sublane-aligned).
    #      No block-diagonal mask needed: queries only ever see their own
    #      batch's keys.  Scale 1/sqrt(hs) is folded into Wq/bq. ----
    ctxs = []
    for b in range(BATCH):
        lo, hi = b * SEQ, (b + 1) * SEQ
        qb = qh[:, lo:hi, :]                                       # (H, SEQ, hs)
        kb = kh[:, lo:hi, :]
        vb = vh[:, lo:hi, :]
        scores = jnp.einsum('hqd,hkd->hqk', qb, kb,
                            preferred_element_type=jnp.float32)    # (H, SEQ, SEQ)
        m = jnp.max(scores, axis=-1, keepdims=True)
        p = jnp.exp(scores - m)
        denom = jnp.sum(p, axis=-1, keepdims=True)
        p = p * pl.reciprocal(denom, approx=True)                  # EUP, not VALU
        ctxs.append(jnp.einsum('hqk,hkd->hqd', p, vb,
                               preferred_element_type=jnp.float32))  # (H, SEQ, hs)
    ctx_all = jnp.concatenate(ctxs, axis=1)                        # (H, B*L, hs)
    attn = jnp.concatenate([ctx_all[n] for n in range(NUM_HEADS)],
                           axis=-1)                                # (B*L, D)

    # ---- residual + layer_norm2 + pointwise FFN (Conv1D k=1) + residual ----
    residual = x + attn
    h2 = _layer_norm(residual, ln2g_ref[0], ln2b_ref[0])
    ff = jnp.dot(h2, w1_ref[...], preferred_element_type=jnp.float32) + b1_ref[0]
    ff = _gelu_exact(ff)
    ff = jnp.dot(ff, w2_ref[...], preferred_element_type=jnp.float32) + b2_ref[0]

    o_ref[...] = (ff + residual).astype(o_ref.dtype)


# --------------------------- host-side weight fusion ------------------------
def prepare_fused_params(params):
    """One-time fusion of per-tap conv weights into per-shift QKV blocks.

    Returns kernel-ready arrays; run once at init, NOT per forward call.
    """
    scale = 1.0 / math.sqrt(HEAD_SIZE)

    def per_shift(w):                       # (NUM_TAPS, D, D) -> (NUM_SHIFTS, D, D)
        blocks = []
        for s in UNIQUE_SHIFTS:
            acc = jnp.zeros((DIM, DIM), jnp.float32)
            for t, ts in enumerate(SHIFTS):
                if ts == s:
                    acc = acc + w[t]
            blocks.append(acc)
        return jnp.stack(blocks, axis=0)

    wq = per_shift(params["wq"]) * scale    # fold 1/sqrt(head_size) into Q
    wk = per_shift(params["wk"])
    wv = per_shift(params["wv"])
    wqkv = jnp.concatenate([wq, wk, wv], axis=-1)                    # (5, D, 3*D)
    bqkv = jnp.concatenate([params["bq"] * scale, params["bk"], params["bv"]],
                           axis=-1)                                  # (1, 3*D)

    fused = dict(
        ln1_g=params["ln1_g"], ln1_b=params["ln1_b"],
        wqkv=wqkv, bqkv=bqkv,
        ln2_g=params["ln2_g"], ln2_b=params["ln2_b"],
        w1=params["w1"], b1=params["b1"], w2=params["w2"], b2=params["b2"],
    )
    return jax.tree_util.tree_map(jnp.asarray, fused)


# ------------------------------ wrapper ------------------------------------
@jax.jit
def multi_conv_attention(x, fused):
    B, L, D = x.shape
    x2 = x.reshape(B * L, D)                # batch folded into rows (contiguous)

    args = (x2,
            fused["ln1_g"], fused["ln1_b"],
            fused["wqkv"], fused["bqkv"],
            fused["ln2_g"], fused["ln2_b"],
            fused["w1"], fused["b1"], fused["w2"], fused["b2"])

    vmem = pl.BlockSpec(memory_space=pltpu.MemorySpace.VMEM)
    out = pl.pallas_call(
        mca_kernel,
        out_shape=jax.ShapeDtypeStruct((B * L, D), x.dtype),
        in_specs=[vmem] * len(args),
        out_specs=vmem,
    )(*args)
    return out.reshape(B, L, D)


# ----------------------- deterministic parameter init ----------------------
def init_params(key):
    ks = jax.random.split(key, 12)

    def w(k, shape, scale=0.05):
        return (scale * jax.random.normal(k, shape)).astype(jnp.float32)

    # Conv taps are stacked as (NUM_TAPS, D_in, D_out); tap t corresponds to
    # PyTorch conv weight[:, :, dk].T for its (kernel, dk) pair.
    return dict(
        ln1_g=jnp.ones((1, DIM), jnp.float32),
        ln1_b=jnp.zeros((1, DIM), jnp.float32),
        wq=w(ks[0], (NUM_TAPS, DIM, DIM)), bq=w(ks[1], (1, DIM)),
        wk=w(ks[2], (NUM_TAPS, DIM, DIM)), bk=w(ks[3], (1, DIM)),
        wv=w(ks[4], (NUM_TAPS, DIM, DIM)), bv=w(ks[5], (1, DIM)),
        ln2_g=jnp.ones((1, DIM), jnp.float32),
        ln2_b=jnp.zeros((1, DIM), jnp.float32),
        w1=w(ks[6], (DIM, DIM)), b1=w(ks[7], (1, DIM)),
        w2=w(ks[8], (DIM, DIM)), b2=w(ks[9], (1, DIM)),
    )


# --------------------------- pure-JAX reference ----------------------------
def reference(x, p):
    def ln(v, g, b):
        mu = v.mean(-1, keepdims=True)
        var = ((v - mu) ** 2).mean(-1, keepdims=True)
        return (v - mu) / jnp.sqrt(var + EPS) * g + b

    h = ln(x, p["ln1_g"][0], p["ln1_b"][0])
    hp = jnp.pad(h, ((0, 0), (PAD, PAD), (0, 0)))

    def tcm(w, b):
        acc = jnp.zeros_like(h)
        for t, s in enumerate(SHIFTS):
            acc = acc + jnp.einsum("bld,de->ble",
                                   hp[:, PAD + s:PAD + s + SEQ, :], w[t])
        return acc + b[0]

    q, k, v = tcm(p["wq"], p["bq"]), tcm(p["wk"], p["bk"]), tcm(p["wv"], p["bv"])

    def heads(t):
        return t.reshape(t.shape[0], SEQ, NUM_HEADS, HEAD_SIZE).transpose(0, 2, 1, 3)

    qh, kh, vh = heads(q), heads(k), heads(v)
    s = jnp.einsum("bhld,bhmd->bhlm", qh, kh) / math.sqrt(HEAD_SIZE)
    probs = jax.nn.softmax(s, axis=-1)
    av = jnp.einsum("bhlm,bhmd->bhld", probs, vh)
    attn = av.transpose(0, 2, 1, 3).reshape(x.shape[0], SEQ, DIM)

    residual = x + attn
    h2 = ln(residual, p["ln2_g"][0], p["ln2_b"][0])
    ff = jnp.einsum("bld,de->ble", h2, p["w1"]) + p["b1"][0]
    ff = jax.nn.gelu(ff, approximate=False)
    ff = jnp.einsum("bld,de->ble", ff, p["w2"]) + p["b2"][0]
    return ff + residual


# ---------------------------------- main -----------------------------------
if __name__ == "__main__":
    jax.config.update("jax_default_matmul_precision", "float32")

    key = jax.random.PRNGKey(0)
    kx, kp = jax.random.split(key)
    x = jax.random.normal(kx, (BATCH, SEQ, DIM), dtype=jnp.float32)
    params = init_params(kp)

    # Weight fusion happens ONCE here; the jitted forward only dispatches the
    # pallas_call (plus the trivially-fused reshapes).
    fused = jax.block_until_ready(prepare_fused_params(params))

    out = jax.block_until_ready(multi_conv_attention(x, fused))
    ref = jax.block_until_ready(reference(x, params))
    np.testing.assert_allclose(np.asarray(out), np.asarray(ref),
                               atol=2e-3, rtol=2e-3)

    print("KERNEL_OK")
</pallas_src>

<mosaic_0001>
module attributes {stable_mosaic.version = 11 : i64} {
  func.func @mca_kernel(%arg0: memref<32x32xf32, #tpu.memory_space<vmem>>, %arg1: memref<1x32xf32, #tpu.memory_space<vmem>>, %arg2: memref<1x32xf32, #tpu.memory_space<vmem>>, %arg3: memref<5x32x96xf32, #tpu.memory_space<vmem>>, %arg4: memref<1x96xf32, #tpu.memory_space<vmem>>, %arg5: memref<1x32xf32, #tpu.memory_space<vmem>>, %arg6: memref<1x32xf32, #tpu.memory_space<vmem>>, %arg7: memref<32x32xf32, #tpu.memory_space<vmem>>, %arg8: memref<1x32xf32, #tpu.memory_space<vmem>>, %arg9: memref<32x32xf32, #tpu.memory_space<vmem>>, %arg10: memref<1x32xf32, #tpu.memory_space<vmem>>, %arg11: memref<32x32xf32, #tpu.memory_space<vmem>>) attributes {dimension_semantics = [], scalar_prefetch = 0 : i64, scratch_operands = 0 : i64, tpu.core_type = #tpu.core_type<tc>} {
    %c0 = arith.constant 0 : index
    %c0_0 = arith.constant 0 : index
    %0 = vector.load %arg0[%c0, %c0_0] : memref<32x32xf32, #tpu.memory_space<vmem>>, vector<32x32xf32>
    %c0_1 = arith.constant 0 : index
    %c0_2 = arith.constant 0 : index
    %1 = vector.load %arg1[%c0_1, %c0_2] : memref<1x32xf32, #tpu.memory_space<vmem>>, vector<1x32xf32>
    %2 = vector.shape_cast %1 : vector<1x32xf32> to vector<32xf32>
    %c0_3 = arith.constant 0 : index
    %c0_4 = arith.constant 0 : index
    %3 = vector.load %arg2[%c0_3, %c0_4] : memref<1x32xf32, #tpu.memory_space<vmem>>, vector<1x32xf32>
    %4 = vector.shape_cast %3 : vector<1x32xf32> to vector<32xf32>
    %cst = arith.constant dense<0.000000e+00> : vector<32xf32>
    %5 = vector.multi_reduction <add>, %0, %cst [1] : vector<32x32xf32> to vector<32xf32>
    %6 = vector.shape_cast %5 : vector<32xf32> to vector<32x1xf32>
    %cst_5 = arith.constant 3.200000e+01 : f32
    %7 = vector.broadcast %cst_5 : f32 to vector<32x1xf32>
    %8 = arith.divf %6, %7 : vector<32x1xf32>
    %9 = vector.broadcast %8 : vector<32x1xf32> to vector<32x32xf32>
    %10 = arith.subf %0, %9 : vector<32x32xf32>
    %11 = arith.mulf %10, %10 : vector<32x32xf32>
    %cst_6 = arith.constant dense<0.000000e+00> : vector<32xf32>
    %12 = vector.multi_reduction <add>, %11, %cst_6 [1] : vector<32x32xf32> to vector<32xf32>
    %13 = vector.shape_cast %12 : vector<32xf32> to vector<32x1xf32>
    %cst_7 = arith.constant 3.200000e+01 : f32
    %14 = vector.broadcast %cst_7 : f32 to vector<32x1xf32>
    %15 = arith.divf %13, %14 : vector<32x1xf32>
    %16 = vector.broadcast %8 : vector<32x1xf32> to vector<32x32xf32>
    %17 = arith.subf %0, %16 : vector<32x32xf32>
    %cst_8 = arith.constant 9.99999997E-7 : f32
    %18 = vector.broadcast %cst_8 : f32 to vector<32x1xf32>
    %19 = arith.addf %15, %18 : vector<32x1xf32>
    %20 = math.rsqrt %19 : vector<32x1xf32>
    %21 = vector.broadcast %20 : vector<32x1xf32> to vector<32x32xf32>
    %22 = arith.mulf %17, %21 : vector<32x32xf32>
    %23 = vector.shape_cast %2 : vector<32xf32> to vector<1x32xf32>
    %24 = vector.broadcast %23 : vector<1x32xf32> to vector<32x32xf32>
    %25 = arith.mulf %22, %24 : vector<32x32xf32>
    %26 = vector.shape_cast %4 : vector<32xf32> to vector<1x32xf32>
    %27 = vector.broadcast %26 : vector<1x32xf32> to vector<32x32xf32>
    %28 = arith.addf %25, %27 : vector<32x32xf32>
    %29 = tpu.iota {dimensions = array<i32: 0>} : vector<32x1xi32>
    %c16_i32 = arith.constant 16 : i32
    %c0_i32 = arith.constant 0 : i32
    %30 = arith.cmpi eq, %c16_i32, %c0_i32 : i32
    %c1_i32 = arith.constant 1 : i32
    %31 = arith.select %30, %c1_i32, %c16_i32 : i32
    %32 = vector.broadcast %31 : i32 to vector<32x1xi32>
    %33 = arith.remsi %29, %32 : vector<32x1xi32>
    %c0_i32_9 = arith.constant 0 : i32
    %34 = vector.broadcast %c0_i32_9 : i32 to vector<32x1xi32>
    %35 = arith.cmpi ne, %33, %34 : vector<32x1xi32>
    %c0_i32_10 = arith.constant 0 : i32
    %36 = vector.broadcast %c0_i32_10 : i32 to vector<32x1xi32>
    %37 = arith.cmpi slt, %33, %36 : vector<32x1xi32>
    %c0_i32_11 = arith.constant 0 : i32
    %38 = arith.cmpi slt, %31, %c0_i32_11 : i32
    %39 = vector.broadcast %38 : i1 to vector<32x1xi1>
    %40 = vector.broadcast %39 : vector<32x1xi1> to vector<32x1xi1>
    %41 = arith.xori %37, %40 : vector<32x1xi1>
    %42 = arith.andi %41, %35 : vector<32x1xi1>
    %43 = vector.broadcast %31 : i32 to vector<32x1xi32>
    %44 = arith.addi %33, %43 : vector<32x1xi32>
    %45 = arith.select %42, %44, %33 : vector<32x1xi1>, vector<32x1xi32>
    %c2_i32 = arith.constant 2 : i32
    %46 = tpu.dynamic_rotate %28 by %c2_i32 dim 0 : vector<32x32xf32>, i32 -> vector<32x32xf32>
    %c-2_i32 = arith.constant -2 : i32
    %47 = vector.broadcast %c-2_i32 : i32 to vector<32x1xi32>
    %48 = arith.addi %45, %47 : vector<32x1xi32>
    %c0_i32_12 = arith.constant 0 : i32
    %49 = vector.broadcast %c0_i32_12 : i32 to vector<32x1xi32>
    %50 = arith.cmpi sge, %48, %49 : vector<32x1xi32>
    %c-2_i32_13 = arith.constant -2 : i32
    %51 = vector.broadcast %c-2_i32_13 : i32 to vector<32x1xi32>
    %52 = arith.addi %45, %51 : vector<32x1xi32>
    %c16_i32_14 = arith.constant 16 : i32
    %53 = vector.broadcast %c16_i32_14 : i32 to vector<32x1xi32>
    %54 = arith.cmpi slt, %52, %53 : vector<32x1xi32>
    %55 = arith.andi %50, %54 : vector<32x1xi1>
    %cst_15 = arith.constant 0.000000e+00 : f32
    %56 = vector.shape_cast %55 : vector<32x1xi1> to vector<32x1xi1>
    %57 = vector.broadcast %56 : vector<32x1xi1> to vector<32x32xi1>
    %58 = vector.broadcast %cst_15 : f32 to vector<32x32xf32>
    %59 = arith.select %57, %46, %58 : vector<32x32xi1>, vector<32x32xf32>
    %c0_16 = arith.constant 0 : index
    %c0_17 = arith.constant 0 : index
    %c0_18 = arith.constant 0 : index
    %60 = vector.load %arg3[%c0_16, %c0_17, %c0_18] : memref<5x32x96xf32, #tpu.memory_space<vmem>>, vector<1x32x96xf32>
    %61 = vector.shape_cast %60 : vector<1x32x96xf32> to vector<32x96xf32>
    %cst_19 = arith.constant dense<0.000000e+00> : vector<32x96xf32>
    %62 = tpu.matmul %59, %61, %cst_19 {dimension_numbers = #tpu.dot_dimension_numbers<[1], [0], [0], [1], [0, 0, 1, 1], [], []>, precision = #tpu.contract_precision<fp32>} : vector<32x32xf32>, vector<32x96xf32>, vector<32x96xf32> -> vector<32x96xf32>
    %c1_i32_20 = arith.constant 1 : i32
    %63 = tpu.dynamic_rotate %28 by %c1_i32_20 dim 0 : vector<32x32xf32>, i32 -> vector<32x32xf32>
    %c-1_i32 = arith.constant -1 : i32
    %64 = vector.broadcast %c-1_i32 : i32 to vector<32x1xi32>
    %65 = arith.addi %45, %64 : vector<32x1xi32>
    %c0_i32_21 = arith.constant 0 : i32
    %66 = vector.broadcast %c0_i32_21 : i32 to vector<32x1xi32>
    %67 = arith.cmpi sge, %65, %66 : vector<32x1xi32>
    %c-1_i32_22 = arith.constant -1 : i32
    %68 = vector.broadcast %c-1_i32_22 : i32 to vector<32x1xi32>
    %69 = arith.addi %45, %68 : vector<32x1xi32>
    %c16_i32_23 = arith.constant 16 : i32
    %70 = vector.broadcast %c16_i32_23 : i32 to vector<32x1xi32>
    %71 = arith.cmpi slt, %69, %70 : vector<32x1xi32>
    %72 = arith.andi %67, %71 : vector<32x1xi1>
    %cst_24 = arith.constant 0.000000e+00 : f32
    %73 = vector.shape_cast %72 : vector<32x1xi1> to vector<32x1xi1>
    %74 = vector.broadcast %73 : vector<32x1xi1> to vector<32x32xi1>
    %75 = vector.broadcast %cst_24 : f32 to vector<32x32xf32>
    %76 = arith.select %74, %63, %75 : vector<32x32xi1>, vector<32x32xf32>
    %c1 = arith.constant 1 : index
    %c0_25 = arith.constant 0 : index
    %c0_26 = arith.constant 0 : index
    %77 = vector.load %arg3[%c1, %c0_25, %c0_26] : memref<5x32x96xf32, #tpu.memory_space<vmem>>, vector<1x32x96xf32>
    %78 = vector.shape_cast %77 : vector<1x32x96xf32> to vector<32x96xf32>
    %cst_27 = arith.constant dense<0.000000e+00> : vector<32x96xf32>
    %79 = tpu.matmul %76, %78, %cst_27 {dimension_numbers = #tpu.dot_dimension_numbers<[1], [0], [0], [1], [0, 0, 1, 1], [], []>, precision = #tpu.contract_precision<fp32>} : vector<32x32xf32>, vector<32x96xf32>, vector<32x96xf32> -> vector<32x96xf32>
    %80 = arith.addf %62, %79 : vector<32x96xf32>
    %c2 = arith.constant 2 : index
    %c0_28 = arith.constant 0 : index
    %c0_29 = arith.constant 0 : index
    %81 = vector.load %arg3[%c2, %c0_28, %c0_29] : memref<5x32x96xf32, #tpu.memory_space<vmem>>, vector<1x32x96xf32>
    %82 = vector.shape_cast %81 : vector<1x32x96xf32> to vector<32x96xf32>
    %cst_30 = arith.constant dense<0.000000e+00> : vector<32x96xf32>
    %83 = tpu.matmul %28, %82, %cst_30 {dimension_numbers = #tpu.dot_dimension_numbers<[1], [0], [0], [1], [0, 0, 1, 1], [], []>, precision = #tpu.contract_precision<fp32>} : vector<32x32xf32>, vector<32x96xf32>, vector<32x96xf32> -> vector<32x96xf32>
    %84 = arith.addf %80, %83 : vector<32x96xf32>
    %c31_i32 = arith.constant 31 : i32
    %85 = tpu.dynamic_rotate %28 by %c31_i32 dim 0 : vector<32x32xf32>, i32 -> vector<32x32xf32>
    %c1_i32_31 = arith.constant 1 : i32
    %86 = vector.broadcast %c1_i32_31 : i32 to vector<32x1xi32>
    %87 = arith.addi %45, %86 : vector<32x1xi32>
    %c0_i32_32 = arith.constant 0 : i32
    %88 = vector.broadcast %c0_i32_32 : i32 to vector<32x1xi32>
    %89 = arith.cmpi sge, %87, %88 : vector<32x1xi32>
    %c1_i32_33 = arith.constant 1 : i32
    %90 = vector.broadcast %c1_i32_33 : i32 to vector<32x1xi32>
    %91 = arith.addi %45, %90 : vector<32x1xi32>
    %c16_i32_34 = arith.constant 16 : i32
    %92 = vector.broadcast %c16_i32_34 : i32 to vector<32x1xi32>
    %93 = arith.cmpi slt, %91, %92 : vector<32x1xi32>
    %94 = arith.andi %89, %93 : vector<32x1xi1>
    %cst_35 = arith.constant 0.000000e+00 : f32
    %95 = vector.shape_cast %94 : vector<32x1xi1> to vector<32x1xi1>
    %96 = vector.broadcast %95 : vector<32x1xi1> to vector<32x32xi1>
    %97 = vector.broadcast %cst_35 : f32 to vector<32x32xf32>
    %98 = arith.select %96, %85, %97 : vector<32x32xi1>, vector<32x32xf32>
    %c3 = arith.constant 3 : index
    %c0_36 = arith.constant 0 : index
    %c0_37 = arith.constant 0 : index
    %99 = vector.load %arg3[%c3, %c0_36, %c0_37] : memref<5x32x96xf32, #tpu.memory_space<vmem>>, vector<1x32x96xf32>
    %100 = vector.shape_cast %99 : vector<1x32x96xf32> to vector<32x96xf32>
    %cst_38 = arith.constant dense<0.000000e+00> : vector<32x96xf32>
    %101 = tpu.matmul %98, %100, %cst_38 {dimension_numbers = #tpu.dot_dimension_numbers<[1], [0], [0], [1], [0, 0, 1, 1], [], []>, precision = #tpu.contract_precision<fp32>} : vector<32x32xf32>, vector<32x96xf32>, vector<32x96xf32> -> vector<32x96xf32>
    %102 = arith.addf %84, %101 : vector<32x96xf32>
    %c30_i32 = arith.constant 30 : i32
    %103 = tpu.dynamic_rotate %28 by %c30_i32 dim 0 : vector<32x32xf32>, i32 -> vector<32x32xf32>
    %c2_i32_39 = arith.constant 2 : i32
    %104 = vector.broadcast %c2_i32_39 : i32 to vector<32x1xi32>
    %105 = arith.addi %45, %104 : vector<32x1xi32>
    %c0_i32_40 = arith.constant 0 : i32
    %106 = vector.broadcast %c0_i32_40 : i32 to vector<32x1xi32>
    %107 = arith.cmpi sge, %105, %106 : vector<32x1xi32>
    %c2_i32_41 = arith.constant 2 : i32
    %108 = vector.broadcast %c2_i32_41 : i32 to vector<32x1xi32>
    %109 = arith.addi %45, %108 : vector<32x1xi32>
    %c16_i32_42 = arith.constant 16 : i32
    %110 = vector.broadcast %c16_i32_42 : i32 to vector<32x1xi32>
    %111 = arith.cmpi slt, %109, %110 : vector<32x1xi32>
    %112 = arith.andi %107, %111 : vector<32x1xi1>
    %cst_43 = arith.constant 0.000000e+00 : f32
    %113 = vector.shape_cast %112 : vector<32x1xi1> to vector<32x1xi1>
    %114 = vector.broadcast %113 : vector<32x1xi1> to vector<32x32xi1>
    %115 = vector.broadcast %cst_43 : f32 to vector<32x32xf32>
    %116 = arith.select %114, %103, %115 : vector<32x32xi1>, vector<32x32xf32>
    %c4 = arith.constant 4 : index
    %c0_44 = arith.constant 0 : index
    %c0_45 = arith.constant 0 : index
    %117 = vector.load %arg3[%c4, %c0_44, %c0_45] : memref<5x32x96xf32, #tpu.memory_space<vmem>>, vector<1x32x96xf32>
    %118 = vector.shape_cast %117 : vector<1x32x96xf32> to vector<32x96xf32>
    %cst_46 = arith.constant dense<0.000000e+00> : vector<32x96xf32>
    %119 = tpu.matmul %116, %118, %cst_46 {dimension_numbers = #tpu.dot_dimension_numbers<[1], [0], [0], [1], [0, 0, 1, 1], [], []>, precision = #tpu.contract_precision<fp32>} : vector<32x32xf32>, vector<32x96xf32>, vector<32x96xf32> -> vector<32x96xf32>
    %120 = arith.addf %102, %119 : vector<32x96xf32>
    %c0_47 = arith.constant 0 : index
    %c0_48 = arith.constant 0 : index
    %121 = vector.load %arg4[%c0_47, %c0_48] : memref<1x96xf32, #tpu.memory_space<vmem>>, vector<1x96xf32>
    %122 = vector.shape_cast %121 : vector<1x96xf32> to vector<96xf32>
    %123 = vector.shape_cast %122 : vector<96xf32> to vector<1x96xf32>
    %124 = vector.broadcast %123 : vector<1x96xf32> to vector<32x96xf32>
    %125 = arith.addf %120, %124 : vector<32x96xf32>
    %126 = vector.extract_strided_slice %125 {offsets = [0, 0], sizes = [32, 8], strides = [1, 1]} : vector<32x96xf32> to vector<32x8xf32>
    %127 = vector.extract_strided_slice %125 {offsets = [0, 8], sizes = [32, 8], strides = [1, 1]} : vector<32x96xf32> to vector<32x8xf32>
    %128 = vector.extract_strided_slice %125 {offsets = [0, 16], sizes = [32, 8], strides = [1, 1]} : vector<32x96xf32> to vector<32x8xf32>
    %129 = vector.extract_strided_slice %125 {offsets = [0, 24], sizes = [32, 8], strides = [1, 1]} : vector<32x96xf32> to vector<32x8xf32>
    %130 = vector.shape_cast %126 : vector<32x8xf32> to vector<1x32x8xf32>
    %131 = vector.shape_cast %127 : vector<32x8xf32> to vector<1x32x8xf32>
    %132 = vector.shape_cast %128 : vector<32x8xf32> to vector<1x32x8xf32>
    %133 = vector.shape_cast %129 : vector<32x8xf32> to vector<1x32x8xf32>
    %134 = tpu.concatenate %130, %131, %132, %133 in 0 : vector<1x32x8xf32>, vector<1x32x8xf32>, vector<1x32x8xf32>, vector<1x32x8xf32> -> vector<4x32x8xf32>
    %135 = vector.extract_strided_slice %125 {offsets = [0, 32], sizes = [32, 8], strides = [1, 1]} : vector<32x96xf32> to vector<32x8xf32>
    %136 = vector.extract_strided_slice %125 {offsets = [0, 40], sizes = [32, 8], strides = [1, 1]} : vector<32x96xf32> to vector<32x8xf32>
    %137 = vector.extract_strided_slice %125 {offsets = [0, 48], sizes = [32, 8], strides = [1, 1]} : vector<32x96xf32> to vector<32x8xf32>
    %138 = vector.extract_strided_slice %125 {offsets = [0, 56], sizes = [32, 8], strides = [1, 1]} : vector<32x96xf32> to vector<32x8xf32>
    %139 = vector.shape_cast %135 : vector<32x8xf32> to vector<1x32x8xf32>
    %140 = vector.shape_cast %136 : vector<32x8xf32> to vector<1x32x8xf32>
    %141 = vector.shape_cast %137 : vector<32x8xf32> to vector<1x32x8xf32>
    %142 = vector.shape_cast %138 : vector<32x8xf32> to vector<1x32x8xf32>
    %143 = tpu.concatenate %139, %140, %141, %142 in 0 : vector<1x32x8xf32>, vector<1x32x8xf32>, vector<1x32x8xf32>, vector<1x32x8xf32> -> vector<4x32x8xf32>
    %144 = vector.extract_strided_slice %125 {offsets = [0, 64], sizes = [32, 8], strides = [1, 1]} : vector<32x96xf32> to vector<32x8xf32>
    %145 = vector.extract_strided_slice %125 {offsets = [0, 72], sizes = [32, 8], strides = [1, 1]} : vector<32x96xf32> to vector<32x8xf32>
    %146 = vector.extract_strided_slice %125 {offsets = [0, 80], sizes = [32, 8], strides = [1, 1]} : vector<32x96xf32> to vector<32x8xf32>
    %147 = vector.extract_strided_slice %125 {offsets = [0, 88], sizes = [32, 8], strides = [1, 1]} : vector<32x96xf32> to vector<32x8xf32>
    %148 = vector.shape_cast %144 : vector<32x8xf32> to vector<1x32x8xf32>
    %149 = vector.shape_cast %145 : vector<32x8xf32> to vector<1x32x8xf32>
    %150 = vector.shape_cast %146 : vector<32x8xf32> to vector<1x32x8xf32>
    %151 = vector.shape_cast %147 : vector<32x8xf32> to vector<1x32x8xf32>
    %152 = tpu.concatenate %148, %149, %150, %151 in 0 : vector<1x32x8xf32>, vector<1x32x8xf32>, vector<1x32x8xf32>, vector<1x32x8xf32> -> vector<4x32x8xf32>
    %153 = vector.extract_strided_slice %134 {offsets = [0, 0, 0], sizes = [4, 16, 8], strides = [1, 1, 1]} : vector<4x32x8xf32> to vector<4x16x8xf32>
    %154 = vector.extract_strided_slice %143 {offsets = [0, 0, 0], sizes = [4, 16, 8], strides = [1, 1, 1]} : vector<4x32x8xf32> to vector<4x16x8xf32>
    %155 = vector.extract_strided_slice %152 {offsets = [0, 0, 0], sizes = [4, 16, 8], strides = [1, 1, 1]} : vector<4x32x8xf32> to vector<4x16x8xf32>
    "tpu.trace_start"() <{level = 10 : i32, message = "hqd,hkd->hqk"}> : () -> ()
    %cst_49 = arith.constant dense<0.000000e+00> : vector<4x16x16xf32>
    %156 = tpu.matmul %153, %154, %cst_49 {dimension_numbers = #tpu.dot_dimension_numbers<[2], [2], [1], [1], [0, 0, 0, 1, 1, 1], [0], [0]>, precision = #tpu.contract_precision<fp32>} : vector<4x16x8xf32>, vector<4x16x8xf32>, vector<4x16x16xf32> -> vector<4x16x16xf32>
    "tpu.trace_stop"() : () -> ()
    %cst_50 = arith.constant dense<0xFF800000> : vector<4x16xf32>
    %157 = vector.multi_reduction <maximumf>, %156, %cst_50 [2] : vector<4x16x16xf32> to vector<4x16xf32>
    %158 = vector.shape_cast %157 : vector<4x16xf32> to vector<4x16x1xf32>
    %159 = vector.broadcast %158 : vector<4x16x1xf32> to vector<4x16x16xf32>
    %160 = arith.subf %156, %159 : vector<4x16x16xf32>
    %161 = math.exp %160 : vector<4x16x16xf32>
    %cst_51 = arith.constant dense<0.000000e+00> : vector<4x16xf32>
    %162 = vector.multi_reduction <add>, %161, %cst_51 [2] : vector<4x16x16xf32> to vector<4x16xf32>
    %163 = vector.shape_cast %162 : vector<4x16xf32> to vector<4x16x1xf32>
    %164 = tpu.reciprocal %163 {approx = true} : vector<4x16x1xf32> -> vector<4x16x1xf32>
    %165 = vector.broadcast %164 : vector<4x16x1xf32> to vector<4x16x16xf32>
    %166 = arith.mulf %161, %165 : vector<4x16x16xf32>
    "tpu.trace_start"() <{level = 10 : i32, message = "hqk,hkd->hqd"}> : () -> ()
    %cst_52 = arith.constant dense<0.000000e+00> : vector<4x16x8xf32>
    %167 = tpu.matmul %166, %155, %cst_52 {dimension_numbers = #tpu.dot_dimension_numbers<[2], [1], [1], [2], [0, 0, 0, 1, 1, 2], [0], [0]>, precision = #tpu.contract_precision<fp32>} : vector<4x16x16xf32>, vector<4x16x8xf32>, vector<4x16x8xf32> -> vector<4x16x8xf32>
    "tpu.trace_stop"() : () -> ()
    %168 = vector.extract_strided_slice %134 {offsets = [0, 16, 0], sizes = [4, 16, 8], strides = [1, 1, 1]} : vector<4x32x8xf32> to vector<4x16x8xf32>
    %169 = vector.extract_strided_slice %143 {offsets = [0, 16, 0], sizes = [4, 16, 8], strides = [1, 1, 1]} : vector<4x32x8xf32> to vector<4x16x8xf32>
    %170 = vector.extract_strided_slice %152 {offsets = [0, 16, 0], sizes = [4, 16, 8], strides = [1, 1, 1]} : vector<4x32x8xf32> to vector<4x16x8xf32>
    "tpu.trace_start"() <{level = 10 : i32, message = "hqd,hkd->hqk"}> : () -> ()
    %cst_53 = arith.constant dense<0.000000e+00> : vector<4x16x16xf32>
    %171 = tpu.matmul %168, %169, %cst_53 {dimension_numbers = #tpu.dot_dimension_numbers<[2], [2], [1], [1], [0, 0, 0, 1, 1, 1], [0], [0]>, precision = #tpu.contract_precision<fp32>} : vector<4x16x8xf32>, vector<4x16x8xf32>, vector<4x16x16xf32> -> vector<4x16x16xf32>
    "tpu.trace_stop"() : () -> ()
    %cst_54 = arith.constant dense<0xFF800000> : vector<4x16xf32>
    %172 = vector.multi_reduction <maximumf>, %171, %cst_54 [2] : vector<4x16x16xf32> to vector<4x16xf32>
    %173 = vector.shape_cast %172 : vector<4x16xf32> to vector<4x16x1xf32>
    %174 = vector.broadcast %173 : vector<4x16x1xf32> to vector<4x16x16xf32>
    %175 = arith.subf %171, %174 : vector<4x16x16xf32>
    %176 = math.exp %175 : vector<4x16x16xf32>
    %cst_55 = arith.constant dense<0.000000e+00> : vector<4x16xf32>
    %177 = vector.multi_reduction <add>, %176, %cst_55 [2] : vector<4x16x16xf32> to vector<4x16xf32>
    %178 = vector.shape_cast %177 : vector<4x16xf32> to vector<4x16x1xf32>
    %179 = tpu.reciprocal %178 {approx = true} : vector<4x16x1xf32> -> vector<4x16x1xf32>
    %180 = vector.broadcast %179 : vector<4x16x1xf32> to vector<4x16x16xf32>
    %181 = arith.mulf %176, %180 : vector<4x16x16xf32>
    "tpu.trace_start"() <{level = 10 : i32, message = "hqk,hkd->hqd"}> : () -> ()
    %cst_56 = arith.constant dense<0.000000e+00> : vector<4x16x8xf32>
    %182 = tpu.matmul %181, %170, %cst_56 {dimension_numbers = #tpu.dot_dimension_numbers<[2], [1], [1], [2], [0, 0, 0, 1, 1, 2], [0], [0]>, precision = #tpu.contract_precision<fp32>} : vector<4x16x16xf32>, vector<4x16x8xf32>, vector<4x16x8xf32> -> vector<4x16x8xf32>
    "tpu.trace_stop"() : () -> ()
    %183 = tpu.concatenate %167, %182 in 1 : vector<4x16x8xf32>, vector<4x16x8xf32> -> vector<4x32x8xf32>
    %184 = vector.extract_strided_slice %183 {offsets = [0, 0, 0], sizes = [1, 32, 8], strides = [1, 1, 1]} : vector<4x32x8xf32> to vector<1x32x8xf32>
    %185 = vector.shape_cast %184 : vector<1x32x8xf32> to vector<32x8xf32>
    %186 = vector.extract_strided_slice %183 {offsets = [1, 0, 0], sizes = [1, 32, 8], strides = [1, 1, 1]} : vector<4x32x8xf32> to vector<1x32x8xf32>
    %187 = vector.shape_cast %186 : vector<1x32x8xf32> to vector<32x8xf32>
    %188 = vector.extract_strided_slice %183 {offsets = [2, 0, 0], sizes = [1, 32, 8], strides = [1, 1, 1]} : vector<4x32x8xf32> to vector<1x32x8xf32>
    %189 = vector.shape_cast %188 : vector<1x32x8xf32> to vector<32x8xf32>
    %190 = vector.extract_strided_slice %183 {offsets = [3, 0, 0], sizes = [1, 32, 8], strides = [1, 1, 1]} : vector<4x32x8xf32> to vector<1x32x8xf32>
    %191 = vector.shape_cast %190 : vector<1x32x8xf32> to vector<32x8xf32>
    %192 = tpu.concatenate %185, %187, %189, %191 in 1 : vector<32x8xf32>, vector<32x8xf32>, vector<32x8xf32>, vector<32x8xf32> -> vector<32x32xf32>
    %193 = arith.addf %0, %192 : vector<32x32xf32>
    %c0_57 = arith.constant 0 : index
    %c0_58 = arith.constant 0 : index
    %194 = vector.load %arg5[%c0_57, %c0_58] : memref<1x32xf32, #tpu.memory_space<vmem>>, vector<1x32xf32>
    %195 = vector.shape_cast %194 : vector<1x32xf32> to vector<32xf32>
    %c0_59 = arith.constant 0 : index
    %c0_60 = arith.constant 0 : index
    %196 = vector.load %arg6[%c0_59, %c0_60] : memref<1x32xf32, #tpu.memory_space<vmem>>, vector<1x32xf32>
    %197 = vector.shape_cast %196 : vector<1x32xf32> to vector<32xf32>
    %cst_61 = arith.constant dense<0.000000e+00> : vector<32xf32>
    %198 = vector.multi_reduction <add>, %193, %cst_61 [1] : vector<32x32xf32> to vector<32xf32>
    %199 = vector.shape_cast %198 : vector<32xf32> to vector<32x1xf32>
    %cst_62 = arith.constant 3.200000e+01 : f32
    %200 = vector.broadcast %cst_62 : f32 to vector<32x1xf32>
    %201 = arith.divf %199, %200 : vector<32x1xf32>
    %202 = vector.broadcast %201 : vector<32x1xf32> to vector<32x32xf32>
    %203 = arith.subf %193, %202 : vector<32x32xf32>
    %204 = arith.mulf %203, %203 : vector<32x32xf32>
    %cst_63 = arith.constant dense<0.000000e+00> : vector<32xf32>
    %205 = vector.multi_reduction <add>, %204, %cst_63 [1] : vector<32x32xf32> to vector<32xf32>
    %206 = vector.shape_cast %205 : vector<32xf32> to vector<32x1xf32>
    %cst_64 = arith.constant 3.200000e+01 : f32
    %207 = vector.broadcast %cst_64 : f32 to vector<32x1xf32>
    %208 = arith.divf %206, %207 : vector<32x1xf32>
    %209 = vector.broadcast %201 : vector<32x1xf32> to vector<32x32xf32>
    %210 = arith.subf %193, %209 : vector<32x32xf32>
    %cst_65 = arith.constant 9.99999997E-7 : f32
    %211 = vector.broadcast %cst_65 : f32 to vector<32x1xf32>
    %212 = arith.addf %208, %211 : vector<32x1xf32>
    %213 = math.rsqrt %212 : vector<32x1xf32>
    %214 = vector.broadcast %213 : vector<32x1xf32> to vector<32x32xf32>
    %215 = arith.mulf %210, %214 : vector<32x32xf32>
    %216 = vector.shape_cast %195 : vector<32xf32> to vector<1x32xf32>
    %217 = vector.broadcast %216 : vector<1x32xf32> to vector<32x32xf32>
    %218 = arith.mulf %215, %217 : vector<32x32xf32>
    %219 = vector.shape_cast %197 : vector<32xf32> to vector<1x32xf32>
    %220 = vector.broadcast %219 : vector<1x32xf32> to vector<32x32xf32>
    %221 = arith.addf %218, %220 : vector<32x32xf32>
    %c0_66 = arith.constant 0 : index
    %c0_67 = arith.constant 0 : index
    %222 = vector.load %arg7[%c0_66, %c0_67] : memref<32x32xf32, #tpu.memory_space<vmem>>, vector<32x32xf32>
    %cst_68 = arith.constant dense<0.000000e+00> : vector<32x32xf32>
    %223 = tpu.matmul %221, %222, %cst_68 {dimension_numbers = #tpu.dot_dimension_numbers<[1], [0], [0], [1], [0, 0, 1, 1], [], []>, precision = #tpu.contract_precision<fp32>} : vector<32x32xf32>, vector<32x32xf32>, vector<32x32xf32> -> vector<32x32xf32>
    %c0_69 = arith.constant 0 : index
    %c0_70 = arith.constant 0 : index
    %224 = vector.load %arg8[%c0_69, %c0_70] : memref<1x32xf32, #tpu.memory_space<vmem>>, vector<1x32xf32>
    %225 = vector.shape_cast %224 : vector<1x32xf32> to vector<32xf32>
    %226 = vector.shape_cast %225 : vector<32xf32> to vector<1x32xf32>
    %227 = vector.broadcast %226 : vector<1x32xf32> to vector<32x32xf32>
    %228 = arith.addf %223, %227 : vector<32x32xf32>
    %cst_71 = arith.constant 5.000000e-01 : f32
    %229 = vector.broadcast %cst_71 : f32 to vector<32x32xf32>
    %230 = arith.mulf %229, %228 : vector<32x32xf32>
    %cst_72 = arith.constant 2.000000e+00 : f32
    %231 = math.sqrt %cst_72 : f32
    %232 = vector.broadcast %231 : f32 to vector<32x32xf32>
    %233 = arith.divf %228, %232 : vector<32x32xf32>
    %234 = math.erf %233 : vector<32x32xf32>
    %cst_73 = arith.constant 1.000000e+00 : f32
    %235 = vector.broadcast %cst_73 : f32 to vector<32x32xf32>
    %236 = arith.addf %235, %234 : vector<32x32xf32>
    %237 = arith.mulf %230, %236 : vector<32x32xf32>
    %c0_74 = arith.constant 0 : index
    %c0_75 = arith.constant 0 : index
    %238 = vector.load %arg9[%c0_74, %c0_75] : memref<32x32xf32, #tpu.memory_space<vmem>>, vector<32x32xf32>
    %cst_76 = arith.constant dense<0.000000e+00> : vector<32x32xf32>
    %239 = tpu.matmul %237, %238, %cst_76 {dimension_numbers = #tpu.dot_dimension_numbers<[1], [0], [0], [1], [0, 0, 1, 1], [], []>, precision = #tpu.contract_precision<fp32>} : vector<32x32xf32>, vector<32x32xf32>, vector<32x32xf32> -> vector<32x32xf32>
    %c0_77 = arith.constant 0 : index
    %c0_78 = arith.constant 0 : index
    %240 = vector.load %arg10[%c0_77, %c0_78] : memref<1x32xf32, #tpu.memory_space<vmem>>, vector<1x32xf32>
    %241 = vector.shape_cast %240 : vector<1x32xf32> to vector<32xf32>
    %242 = vector.shape_cast %241 : vector<32xf32> to vector<1x32xf32>
    %243 = vector.broadcast %242 : vector<1x32xf32> to vector<32x32xf32>
    %244 = arith.addf %239, %243 : vector<32x32xf32>
    %245 = arith.addf %244, %193 : vector<32x32xf32>
    %c0_79 = arith.constant 0 : index
    %c0_80 = arith.constant 0 : index
    %246 = vector.load %arg11[%c0_79, %c0_80] : memref<32x32xf32, #tpu.memory_space<vmem>>, vector<32x32xf32>
    tpu.vector_store %arg11[%c0_79, %c0_80], %245 {strides = array<i32>} : memref<32x32xf32, #tpu.memory_space<vmem>>, vector<32x32xf32>,
    return
  }
}

</mosaic_0001>

<bundles_post_ra>
// kernel: multi_conv_attention.1
= control target key start
LH: loop header
LB: loop body
LE: loop exit
PB: predicated region body
PF: predicated region fallthrough
CT: control target
= control target key end

     0   :  { %16 = vsyncpa [#allocation3], 0  ;;  %s8467_s0 = inlined_call_operand.hbm [shape: f32[32,32], index: 0, kind: input, shape index: {}]   ;;  %s8468_s1 = inlined_call_operand.vmem [shape: f32[1,32], index: 1, kind: input, shape index: {}]   ;;  %s8469_s2 = inlined_call_operand.vmem [shape: f32[1,32], index: 2, kind: input, shape index: {}]   ;;  %s8470_s3 = inlined_call_operand.hbm [shape: f32[5,32,96], index: 3, kind: input, shape index: {}]   ;;  %s8471_s4 = inlined_call_operand.vmem [shape: f32[1,96], index: 4, kind: input, shape index: {}]   ;;  %s8472_s5 = inlined_call_operand.vmem [shape: f32[1,32], index: 5, kind: input, shape index: {}]   ;;  %s8473_s6 = inlined_call_operand.vmem [shape: f32[1,32], index: 6, kind: input, shape index: {}]   ;;  %s8474_s7 = inlined_call_operand.hbm [shape: f32[32,32], index: 7, kind: input, shape index: {}]   ;;  %s8475_s8 = inlined_call_operand.hbm [shape: f32[1,32], index: 8, kind: input, shape index: {}]   ;;  %s8476_s9 = inlined_call_operand.hbm [shape: f32[32,32], index: 9, kind: input, shape index: {}]   ;;  %s8477_s10 = inlined_call_operand.hbm [shape: f32[1,32], index: 10, kind: input, shape index: {}]   ;;  %s8478_s11 = inlined_call_operand.hbm [shape: f32[32,32], index: 11, kind: output, shape index: {}]  }
   0x1   :  { %17 = vsyncpa [#allocation6], 0 }
   0x2   :  { %18 = vsyncpa [#allocation9], 0 }
   0x3   :  { %19 = vsyncpa [#allocation12], 0 }
   0x4   :  { %20 = vsyncpa [#allocation4], 0  ;;  %s42_s19 = sshll.u32 %s8470_s3, 4  ;;  %s6659_s20 = smov [#allocation5]   ;;  %s43_s19 = int_to_ptr.hbm [resolvable:$true] %s42_s19 }
   0x5   :  { %s44_s21 = sshll.u32 %s6659_s20, 4  ;;  %s75_s24 = sshll.u32 %s8475_s8, 4  ;;  %s45_s21 = int_to_ptr.vmem [resolvable:$true] %s44_s21  ;;  %s76_s24 = int_to_ptr.hbm [resolvable:$true] %s75_s24 }
   0x6   :  { %s6660_s25 = smov 128   ;;  %s6661_s26 = smov 8  }
   0x7   :  { %50 = dma.hbm_to_vmem [thread:$0]  %s43_s19, 2560, %s45_s21, [#allocation6], %s6660_s25, %s6660_s25, %s6661_s26  }
   0x8   :  { %s6662_s27 = smov [#allocation8]   ;;  %s25_s3 = sshll.u32 %s8467_s0, 4  ;;  %s26_s3 = int_to_ptr.hbm [resolvable:$true] %s25_s3 }
   0x9   :  { %s77_s28 = sshll.u32 %s6662_s27, 4  ;;  %s61_s8 = sshll.u32 %s8474_s7, 4  ;;  %s78_s28 = int_to_ptr.vmem [resolvable:$true] %s77_s28  ;;  %s62_s8 = int_to_ptr.hbm [resolvable:$true] %s61_s8 }
   0xa   :  { %80 = dma.hbm_to_vmem [thread:$0]  %s76_s24, 16, %s78_s28, [#allocation9]  }
   0xb   :  { %s6663_s14 = smov [#allocation2]   ;;  %s6664_s16 = smov [#allocation7]  }
   0xc   :  { %s27_s15 = sshll.u32 %s6663_s14, 4  ;;  %s63_s17 = sshll.u32 %s6664_s16, 4  ;;  %s28_s15 = int_to_ptr.vmem [resolvable:$true] %s27_s15  ;;  %s64_s17 = int_to_ptr.vmem [resolvable:$true] %s63_s17 }
   0xd   :  { %33 = dma.hbm_to_vmem [thread:$0]  %s26_s3, 512, %s28_s15, [#allocation3], %s6660_s25, %s6660_s25, %s6661_s26  }
   0xe   :  { %s85_s0 = sshll.u32 %s8476_s9, 4  ;;  %s99_s21 = sshll.u32 %s8477_s10, 4  ;;  %s86_s0 = int_to_ptr.hbm [resolvable:$true] %s85_s0  ;;  %s100_s21 = int_to_ptr.hbm [resolvable:$true] %s99_s21 }
   0xf   :  { %69 = dma.hbm_to_vmem [thread:$0]  %s62_s8, 512, %s64_s17, [#allocation6], %s6660_s25, %s6660_s25, %s6661_s26  }
  0x10   :  { %s6665_s22 = smov [#allocation10]   ;;  %s6666_s24 = smov [#allocation11]  }
  0x11   :  { %s87_s23 = sshll.u32 %s6665_s22, 4  ;;  %s101_s9 = sshll.u32 %s6666_s24, 4  ;;  %s88_s23 = int_to_ptr.vmem [resolvable:$true] %s87_s23  ;;  %s102_s9 = int_to_ptr.vmem [resolvable:$true] %s101_s9 }
  0x12   :  { %93 = dma.hbm_to_vmem [thread:$0]  %s86_s0, 512, %s88_s23, [#allocation9], %s6660_s25, %s6660_s25, %s6661_s26  }
  0x13   :  { %104 = dma.hbm_to_vmem [thread:$0]  %s100_s21, 16, %s102_s9, [#allocation12]  }
  0x14   :  { %6649 = dma.done.wait [#allocation3], 512  }
  0x15   :  { %6650 = vsyncadd [#allocation3], 4294966784 }
  0x16   :  { %6651 = dma.done.wait [#allocation6], 3072  }
  0x17   :  { %6652 = vsyncadd [#allocation6], 4294964224 }
  0x18   :  { %6653 = dma.done.wait [#allocation9], 528  }
  0x19   :  { %6654 = vsyncadd [#allocation9], 4294966768 }
  0x1a   :  { %6655 = dma.done.wait [#allocation12], 16  }
  0x1b   :  { %6656 = vsyncadd [#allocation12], 4294967280  ;;  %vm135_vm0 = vcmask 261120   ;;  %v130_v0 = vld [vmem:[#allocation2 + $0x8] sm:$0xff]  ;;  %v129_v1 = vld [vmem:[#allocation2] sm:$0xff]  ;;  %v6667_v8 = vmov 32.0  }
  0x1c   :  { %v139_v2 = vsel %vm135_vm0, %v130_v0, 0.0  ;;  %v136_v3 = vsel %vm135_vm0, %v129_v1, 0.0  ;;  %v131_v4 = vld [vmem:[#allocation2 + $0x10] sm:$0xff]  ;;  %v132_v5 = vld [vmem:[#allocation2 + $0x18] sm:$0xff]  ;;  %6385 = vrcp.f32 %v6667_v8  ;;  %v378_v40 = vld [vmem:[#allocation5 + $0x28] sm:$0xff]  ;;  %s6669_s30 = smov 96  }
  0x1d   :  { %140 = vadd.xlane.f32.xlu1 %v139_v2  ;;  %137 = vadd.xlane.f32.xlu0 %v136_v3  ;;  %v142_v6 = vsel %vm135_vm0, %v131_v4, 0.0  ;;  %v145_v7 = vsel %vm135_vm0, %v132_v5, 0.0  ;;  %v380_v35 = vld [vmem:[#allocation5 + $0x38] sm:$0xff]  ;;  %v379_v37 = vld [vmem:[#allocation5 + $0x30] sm:$0xff]  ;;  %v409_v45 = vand.u32 4294901760, %v378_v40  ;;  %v377_v48 = vld [vmem:[#allocation5 + $0x20] sm:$0xff] }
  0x1e   :  { %v405_v36 = vand.u32 4294901760, %v380_v35  ;;  %v6797_v39 = vand.u32 4294901760, %v379_v37  ;;  %v411_v52 = vand.u32 4294901760, %v377_v48  ;;  %s6670_s3 = smov 112   ;;  %s6671_s12 = smov 104  }
  0x1f   :  { %v471_v51 = vsub.f32 %v378_v40, %v409_v45  ;;  %s6672_s13 = smov 64   ;;  %s6673_s8 = smov 16  }
  0x20   :  { %v459_v38 = vsub.f32 %v380_v35, %v405_v36  ;;  %557 = vmatpush.msra.mxu3 %v405_v36  ;;  %406 = vmatpush.msra.mxu0 %v405_v36  ;;  %v465_v44 = vsub.f32 %v379_v37, %v6797_v39  ;;  %v477_v58 = vsub.f32 %v377_v48, %v411_v52  ;;  %v6379_v37 = vld [vmem:[%s8469_s2] ss:$0 sm:$0xff]  ;;  %s6674_s14 = smov 24   ;;  %s6340_s7 = sshll.u32 %s8478_s11, 4  ;;  %s6341_s7 = int_to_ptr.hbm [resolvable:$true] %s6340_s7 }
  0x21   :  { %v472_v57 = vand.u32 4294901760, %v471_v51 }
  0x22   :  { %v6386_v9 = vpop.eup %6385  ;;  %v460_v43 = vand.u32 4294901760, %v459_v38  ;;  %513 = vmatpush.msra.mxu2 %v459_v38  ;;  %559 = vmatpush.msra.mxu3 %v6797_v39  ;;  %v466_v50 = vand.u32 4294901760, %v465_v44  ;;  %v478_v61 = vand.u32 4294901760, %v477_v58 }
  0x23   :  { %v149_v10 = vmul.f32 32.0, %v6386_v9  ;;  %vm153_vm1 = vweird.f32 %v6386_v9  ;;  %408 = vmatpush.msra.mxu0 %v6797_v39  ;;  %v473_v60 = vsub.f32 %v471_v51, %v472_v57 }
  0x24   :  { %v461_v49 = vsub.f32 %v459_v38, %v460_v43  ;;  %516 = vmatpush.msra.mxu2 %v465_v44  ;;  %561 = vmatpush.msra.mxu3 %v409_v45  ;;  %v467_v56 = vsub.f32 %v465_v44, %v466_v50 }
  0x25   :  { %143 = vadd.xlane.f32.xlu1 %v142_v6  ;;  %146 = vadd.xlane.f32.xlu0 %v145_v7  ;;  %v150_v11 = vsub.f32 1.0, %v149_v10 }
  0x26   :  { %410 = vmatpush.msra.mxu0 %v409_v45  ;;  %v462_v55 = vand.u32 4294901760, %v461_v49  ;;  %519 = vmatpush.msra.mxu2 %v471_v51  ;;  %v468_v59 = vand.u32 4294901760, %v467_v56  ;;  %v338_v51 = vld [vmem:[#allocation5 + $0x18] sm:$0xff] }
  0x27   :  { %v151_v12 = vmul.f32 %v6386_v9, %v150_v11  ;;  %563 = vmatpush.msra.mxu3 %v411_v52 }
  0x28   :  { %412 = vmatpush.msra.mxu0 %v411_v52  ;;  %463 = vmatpush.msra.mxu1 %v462_v55 }
  0x29   :  { %v152_v13 = vadd.f32 %v6386_v9, %v151_v12  ;;  %522 = vmatpush.msra.mxu2 %v477_v58 }
  0x2a   :  { %604 = vmatpush.msrb.mxu0 %v460_v43  ;;  %469 = vmatpush.msra.mxu1 %v468_v59  ;;  %v337_v59 = vld [vmem:[#allocation5 + $0x10] sm:$0xff] }
  0x2b   :  { %v6771_v14 = vsel %vm153_vm1, %v6386_v9, %v152_v13 }
  0x2c   :  { %8482 = vst [vmem:[#allocation19_spill] sm:$0xff] %v6771_v14  ;;  %608 = vmatpush.msrb.mxu0 %v466_v50 }
  0x2e   :  { %612 = vmatpush.msrb.mxu0 %v472_v57 }
  0x30   :  { %616 = vmatpush.msrb.mxu0 %v478_v61 }
  0x90   :  { %v141_v15 = vpop.xlane.xlu1 %140  ;;  %v138_v16 = vpop.xlane.xlu0 %137 }
  0x91   :  { %v156_v17 = vmul.f32 %v6771_v14, %v141_v15  ;;  %v155_v18 = vmul.f32 %v6771_v14, %v138_v16 }
  0x93   :  { %v6775_v19 = vsub.f32 %v130_v0, %v156_v17  ;;  %v6777_v20 = vsub.f32 %v129_v1, %v155_v18  ;;  %v474_v0 = vand.u32 4294901760, %v473_v60  ;;  %v479_v1 = vsub.f32 %v477_v58, %v478_v61 }
  0x95   :  { %v164_v21 = vmul.f32 %v6775_v19, %v6775_v19  ;;  %v163_v22 = vmul.f32 %v6777_v20, %v6777_v20  ;;  %475 = vmatpush.msra.mxu1 %v474_v0 }
  0x97   :  { %v170_v23 = vsel %vm135_vm0, %v164_v21, 0.0  ;;  %v167_v24 = vsel %vm135_vm0, %v163_v22, 0.0 }
  0x98   :  { %v144_v25 = vpop.xlane.xlu1 %143  ;;  %171 = vadd.xlane.f32.xlu0 %v170_v23  ;;  %168 = vadd.xlane.f32.xlu2 %v167_v24  ;;  %v147_v26 = vpop.xlane.xlu0 %146  ;;  %v6378_v24 = vld [vmem:[%s8468_s1] ss:$0 sm:$0xff] }
  0x99   :  { %v157_v27 = vmul.f32 %v6771_v14, %v144_v25  ;;  %v158_v28 = vmul.f32 %v6771_v14, %v147_v26 }
  0x9b   :  { %v6787_v29 = vsub.f32 %v131_v4, %v157_v27  ;;  %v6789_v30 = vsub.f32 %v132_v5, %v158_v28  ;;  %v480_v4 = vand.u32 4294901760, %v479_v1 }
  0x9d   :  { %v165_v31 = vmul.f32 %v6787_v29, %v6787_v29  ;;  %v166_v32 = vmul.f32 %v6789_v30, %v6789_v30  ;;  %481 = vmatpush.msra.mxu1 %v480_v4 }
  0x9f   :  { %v173_v33 = vsel %vm135_vm0, %v165_v31, 0.0  ;;  %v176_v34 = vsel %vm135_vm0, %v166_v32, 0.0  ;;  %647 = vmatpush.msrb.mxu1 %v405_v36  ;;  %v245_v31 = vlaneseq }
  0xa0   :  { %174 = vadd.xlane.f32.xlu1 %v173_v33  ;;  %177 = vadd.xlane.f32.xlu2 %v176_v34 }
  0xa1   :  { %649 = vmatpush.msrb.mxu1 %v6797_v39 }
  0xa3   :  { %651 = vmatpush.msrb.mxu1 %v409_v45 }
  0xa5   :  { %653 = vmatpush.msrb.mxu1 %v411_v52 }
 0x10b   :  { %v169_v41 = vpop.xlane.xlu2 %168  ;;  %v172_v42 = vpop.xlane.xlu0 %171 }
 0x10c   :  { %v179_v46 = vmul.f32 %v169_v41, %v6771_v14  ;;  %v180_v47 = vmul.f32 %v172_v42, %v6771_v14  ;;  %v6815_v42 = vshrl.u32 %v245_v31, 7 }
 0x10e   :  { %v183_v53 = vadd.f32 1e-06, %v179_v46  ;;  %v184_v54 = vadd.f32 1e-06, %v180_v47  ;;  %v254_v44 = vand.u32 15, %v6815_v42  ;;  %vm343_vm14 = vcmp.lt.s32.totalorder %v6815_v42, 1 }
 0x110   :  { %6387 = vrsqrt.f32 %v183_v53  ;;  %vm203_vm2 = vweird.f32 %v184_v54  ;;  %vm193_vm5 = vweird.f32 %v183_v53 }
 0x111   :  { %6389 = vrsqrt.f32 %v184_v54 }
 0x113   :  { %v175_v62 = vpop.xlane.xlu1 %174  ;;  %v178_v63 = vpop.xlane.xlu2 %177 }
 0x114   :  { %v181_v2 = vmul.f32 %v175_v62, %v6771_v14  ;;  %v182_v3 = vmul.f32 %v178_v63, %v6771_v14  ;;  %v336_v62 = vld [vmem:[#allocation5 + $0x8] sm:$0xff] }
 0x115   :  { %v6847_v1 = vand.u32 4294901760, %v336_v62 }
 0x116   :  { %v6388_v5 = vpop.eup %6387  ;;  %v185_v6 = vadd.f32 1e-06, %v181_v2  ;;  %v186_v7 = vadd.f32 1e-06, %v182_v3 }
 0x117   :  { %v6390_v8 = vpop.eup %6389  ;;  %v188_v9 = vmul.f32 %v6388_v5, %v183_v53  ;;  %vm194_vm4 = vweird.f32 %v6388_v5  ;;  %v348_v53 = vadd.s32 4294967295, %v254_v44 }
 0x118   :  { %v198_v10 = vmul.f32 %v6390_v8, %v184_v54  ;;  %6391 = vrsqrt.f32 %v185_v6  ;;  %vm204_vm3 = vweird.f32 %v6390_v8  ;;  %vm195_vm7 = vmor %vm193_vm5, %vm194_vm4  ;;  %vm213_vm8 = vweird.f32 %v185_v6 }
 0x119   :  { %v189_v11 = vmul.f32 %v6388_v5, %v188_v9  ;;  %6393 = vrsqrt.f32 %v186_v7  ;;  %vm205_vm6 = vmor %vm203_vm2, %vm204_vm3  ;;  %vm223_vm12 = vweird.f32 %v186_v7  ;;  %v6829_v54 = vand.u32 4294901760, %v338_v51 }
 0x11a   :  { %v199_v12 = vmul.f32 %v6390_v8, %v198_v10  ;;  %vm352_vm15 = vcmp.ge.s32.totalorder %v348_v53, 0  ;;  %vm302_vm2 = vcmp.lt.s32.totalorder %v6815_v42, 2  ;;  %vm1264_vm4 = vcmp.lt.s32.totalorder %v6815_v42, 7 }
 0x11b   :  { %v190_v13 = vmul.f32 0.5, %v189_v11  ;;  %696 = vmatpush.msrb.mxu2 %v6829_v54  ;;  %v6864_v11 = vsub.f32 %v336_v62, %v6847_v1  ;;  %vm1600_vm5 = vcmp.lt.s32.totalorder %v6815_v42, 6 }
 0x11c   :  { %v200_v15 = vmul.f32 0.5, %v199_v12 }
 0x11d   :  { %v191_v16 = vsub.f32 1.5, %v190_v13 }
 0x11e   :  { %v6392_v17 = vpop.eup %6391  ;;  %v201_v18 = vsub.f32 1.5, %v200_v15 }
 0x11f   :  { %v6394_v21 = vpop.eup %6393  ;;  %v192_v22 = vmul.f32 %v6388_v5, %v191_v16  ;;  %v208_v23 = vmul.f32 %v6392_v17, %v185_v6  ;;  %vm214_vm9 = vweird.f32 %v6392_v17 }
 0x120   :  { %v202_v25 = vmul.f32 %v6390_v8, %v201_v18  ;;  %v218_v26 = vmul.f32 %v6394_v21, %v186_v7  ;;  %vm215_vm10 = vmor %vm213_vm8, %vm214_vm9  ;;  %vm224_vm11 = vweird.f32 %v6394_v21 }
 0x121   :  { %v196_v27 = vsel %vm195_vm7, %v6388_v5, %v192_v22  ;;  %v209_v28 = vmul.f32 %v6392_v17, %v208_v23  ;;  %vm225_vm13 = vmor %vm223_vm12, %vm224_vm11  ;;  %v335_v5 = vld [vmem:[#allocation5] sm:$0xff]  ;;  %vm1972_vm11 = vcmask 64512   ;;  %vm2777_vm12 = vcmask 130048  }
 0x122   :  { %v227_v32 = vmul.f32 %v196_v27, %v6777_v20  ;;  %v206_v33 = vsel %vm205_vm6, %v6390_v8, %v202_v25  ;;  %v219_v34 = vmul.f32 %v6394_v21, %v218_v26  ;;  %v6860_v9 = vand.u32 4294901760, %v335_v5 }
 0x123   :  { %v228_v35 = vmul.f32 %v206_v33, %v6775_v19  ;;  %v210_v36 = vmul.f32 0.5, %v209_v28  ;;  %v6819_v19 = vadd.s32 16, %v6815_v42 }
 0x124   :  { %v234_v38 = vmul.f32 %v6378_v24, %v227_v32  ;;  %v220_v39 = vmul.f32 0.5, %v219_v34  ;;  %v767_v25 = vsub.f32 %v335_v5, %v6860_v9  ;;  %v6935_v5 = vadd.s32 24, %v6815_v42 }
 0x125   :  { %v235_v40 = vmul.f32 %v6378_v24, %v228_v35  ;;  %v211_v41 = vsub.f32 1.5, %v210_v36  ;;  %v268_v58 = vand.u32 15, %v6819_v19 }
 0x126   :  { %v221_v43 = vsub.f32 1.5, %v220_v39  ;;  %v6821_v45 = vadd.f32 %v6379_v37, %v234_v38  ;;  %v768_v32 = vand.u32 4294901760, %v767_v25  ;;  %v307_v38 = vadd.s32 4294967294, %v254_v44 }
 0x127   :  { %v212_v20 = vmul.f32 %v6392_v17, %v211_v41  ;;  %v6823_v46 = vadd.f32 %v6379_v37, %v235_v40  ;;  %v350_v3 = vadd.s32 4294967295, %v268_v58 }
 0x128   :  { %v222_v47 = vmul.f32 %v6394_v21, %v221_v43  ;;  %v339_v56 = vrot.slane %v6821_v45, 7  ;;  %v769_v39 = vsub.f32 %v767_v25, %v768_v32  ;;  %v298_v41 = vrot.slane %v6821_v45, 6 }
 0x129   :  { %v216_v48 = vsel %vm215_vm10, %v6392_v17, %v212_v20  ;;  %v340_v57 = vrot.slane %v6823_v46, 7  ;;  %vm354_vm1 = vcmp.ge.s32.totalorder %v350_v3, 0  ;;  %v1260_v44 = vrot.slane %v6821_v45, 1 }
 0x12a   :  { %v229_v49 = vmul.f32 %v216_v48, %v6787_v29  ;;  %v226_v50 = vsel %vm225_vm13, %v6394_v21, %v222_v47  ;;  %v6836_v29 = vand.u32 4294901760, %v337_v59  ;;  %v770_v43 = vand.u32 4294901760, %v769_v39 }
 0x12b   :  { %v230_v52 = vmul.f32 %v226_v50, %v6789_v30  ;;  %v6839_v30 = vsub.f32 %v338_v51, %v6829_v54  ;;  %v346_v2 = vsel %vm343_vm14, %v339_v56, %v340_v57  ;;  %vm311_vm3 = vcmp.ge.s32.totalorder %v307_v38, 0 }
 0x12c   :  { %v236_v55 = vmul.f32 %v6378_v24, %v229_v49  ;;  %698 = vmatpush.msrb.mxu2 %v6836_v29  ;;  %v6854_v4 = vsub.f32 %v337_v59, %v6836_v29  ;;  %v385_v13 = vsel %vm135_vm0, %v346_v2, 0  ;;  %v1261_v51 = vrot.slane %v6823_v46, 1 }
 0x12d   :  { %v237_v60 = vmul.f32 %v6378_v24, %v230_v52  ;;  %v750_v0 = vand.u32 4294901760, %v6839_v30  ;;  %v6875_v22 = vand.u32 4294901760, %v385_v13  ;;  %v762_v24 = vand.u32 4294901760, %v6864_v11 }
 0x12e   :  { %v6841_v61 = vadd.f32 %v6379_v37, %v236_v55  ;;  %700 = vmatpush.msrb.mxu2 %v6847_v1  ;;  %v756_v10 = vand.u32 4294901760, %v6854_v4  ;;  %v299_v3 = vrot.slane %v6823_v46, 6  ;;  %vm5434_vm13 = vcmask 195584  }
 0x12f   :  { %v6843_v63 = vadd.f32 %v6379_v37, %v237_v60  ;;  %v751_v8 = vsub.f32 %v6839_v30, %v750_v0  ;;  %v763_v31 = vsub.f32 %v6864_v11, %v762_v24  ;;  %v422_v34 = vsub.f32 %v385_v13, %v6875_v22 }
 0x130   :  { %v341_v7 = vrot.slane %v6841_v61, 7  ;;  %702 = vmatpush.msrb.mxu2 %v6860_v9  ;;  %v757_v23 = vsub.f32 %v6854_v4, %v756_v10  ;;  %v1262_v59 = vrot.slane %v6841_v61, 1  ;;  %v1596_v13 = vrot.slane %v6821_v45, 2 }
 0x131   :  { %v342_v6 = vrot.slane %v6843_v63, 7  ;;  %v752_v16 = vand.u32 4294901760, %v751_v8  ;;  %v764_v35 = vand.u32 4294901760, %v763_v31  ;;  %v301_v37 = vrot.slane %v6843_v63, 6 }
 0x132   :  { %v345_v18 = vsel %vm343_vm14, %v340_v57, %v341_v7  ;;  %v758_v28 = vand.u32 4294901760, %v757_v23  ;;  %v423_v47 = vand.u32 4294901760, %v422_v34  ;;  %v1598_v23 = vrot.slane %v6841_v61, 2 }
 0x133   :  { %v347_v12 = vsel %vm343_vm14, %v342_v6, %v339_v56  ;;  %753 = vmatpush.msrb.mxu3 %v752_v16  ;;  %v374_v27 = vsel %vm354_vm1, %v345_v18, 0.0  ;;  %v306_v49 = vsel %vm302_vm2, %v301_v37, %v298_v41  ;;  %v344_v50 = vsel %vm343_vm14, %v341_v7, %v342_v6 }
 0x134   :  { %v372_v15 = vsel %vm352_vm15, %v347_v12, 0.0  ;;  %v388_v36 = vsel %vm135_vm0, %v374_v27, 0  ;;  %v424_v52 = vsub.f32 %v422_v34, %v423_v47  ;;  %v331_v55 = vsel %vm311_vm3, %v306_v49, 0.0 }
 0x135   :  { %v382_v17 = vsel %vm135_vm0, %v372_v15, 0  ;;  %759 = vmatpush.msrb.mxu3 %v758_v28  ;;  %v6893_v48 = vand.u32 4294901760, %v388_v36  ;;  %v6911_v56 = vsel %vm1264_vm4, %v1260_v44, %v1261_v51  ;;  %v391_v57 = vsel %vm135_vm0, %v344_v50, 0 }
 0x136   :  { %v6873_v21 = vand.u32 4294901760, %v382_v17  ;;  %v672_v60 = vsel %vm135_vm0, %v331_v55, 0  ;;  %v425_v62 = vand.u32 4294901760, %v424_v52  ;;  %v6926_v2 = vand.u32 4294901760, %v391_v57 }
 0x137   :  { %765 = vmatpush.msrb.mxu3 %v764_v35  ;;  %v430_v53 = vsub.f32 %v388_v36, %v6893_v48  ;;  %v300_v12 = vrot.slane %v6841_v61, 6  ;;  %v1597_v15 = vrot.slane %v6823_v46, 2  ;;  %v1599_v28 = vrot.slane %v6843_v63, 2 }
 0x138   :  { %483 = vmatmul.f32.vlgmr.msra.gmra.mxu1 %v6873_v21  ;;  %v414_v26 = vsub.f32 %v382_v17, %v6873_v21  ;;  %v275_v17 = vand.u32 15, %v6935_v5 }
 0x139   :  { %847 = vmatpush.msra.mxu1 %v6829_v54  ;;  %771 = vmatpush.msrb.mxu3 %v770_v43  ;;  %v1602_v27 = vsel %vm1600_vm5, %v1597_v15, %v1598_v23  ;;  %v1604_v35 = vsel %vm1600_vm5, %v1599_v28, %v1596_v13 }
 0x13a   :  { %525 = vmatmul.f32.vlgmr.msra.gmra.mxu2 %v414_v26  ;;  %v415_v33 = vand.u32 4294901760, %v414_v26  ;;  %v1608_v36 = vadd.s32 2, %v275_v17 }
 0x13b   :  { %849 = vmatpush.msra.mxu1 %v6836_v29  ;;  %894 = vmatpush.msra.mxu2 %v750_v0  ;;  %v431_v0 = vand.u32 4294901760, %v430_v53 }
 0x13c   :  { %567 = vmatmul.f32.vlgmr.msra.gmra.mxu3 %v415_v33  ;;  %v416_v40 = vsub.f32 %v414_v26, %v415_v33  ;;  %v304_v26 = vsel %vm302_vm2, %v299_v3, %v300_v12  ;;  %vm1616_vm8 = vcmp.lt.s32.totalorder %v1608_v36, 16 }
 0x13d   :  { %851 = vmatpush.msra.mxu1 %v6847_v1  ;;  %898 = vmatpush.msra.mxu2 %v756_v10  ;;  %v432_v8 = vsub.f32 %v430_v53, %v431_v0  ;;  %v438_v10 = vsub.f32 %v391_v57, %v6926_v2 }
 0x13e   :  { %v417_v20 = vand.u32 4294901760, %v416_v40  ;;  %937 = vmatpush.msra.mxu3 %v6829_v54  ;;  %v6920_v54 = vadd.s32 8, %v6815_v42 }
 0x13f   :  { %853 = vmatpush.msra.mxu1 %v6860_v9  ;;  %902 = vmatpush.msra.mxu2 %v762_v24  ;;  %v439_v24 = vand.u32 4294901760, %v438_v10 }
 0x140   :  { %418 = vmatmul.f32.vlgmr.msra.gmra.mxu0 %v417_v20  ;;  %487 = vmatmul.f32.gmra.mxu1 %v6875_v22  ;;  %v261_v6 = vand.u32 15, %v6920_v54  ;;  %v6995_v20 = vsel %vm1616_vm8, %v1604_v35, 0.0 }
 0x141   :  { %803 = vmatpush.msra.mxu0 %v6839_v30  ;;  %939 = vmatpush.msra.mxu3 %v6836_v29  ;;  %v6924_v30 = vsel %vm1264_vm4, %v1261_v51, %v1262_v59  ;;  %v1263_v29 = vrot.slane %v6843_v63, 1  ;;  %v440_v38 = vsub.f32 %v438_v10, %v439_v24  ;;  %v303_v51 = vsel %vm302_vm2, %v300_v12, %v301_v37 }
 0x142   :  { %530 = vmatmul.f32.gmra.mxu2 %v422_v34  ;;  %v1606_v19 = vadd.s32 2, %v261_v6  ;;  %v6981_v34 = vsel %vm1600_vm5, %v1598_v23, %v1599_v28  ;;  %v681_v55 = vsel %vm135_vm0, %v303_v51, 0  ;;  %v962_v23 = vld [vmem:[#allocation5 + $0x40] sm:$0xff] }
 0x143   :  { %806 = vmatpush.msra.mxu0 %v6854_v4  ;;  %906 = vmatpush.msra.mxu2 %v768_v32  ;;  %v6932_v4 = vand.u32 4294901760, %v672_v60  ;;  %v6941_v7 = vsel %vm1264_vm4, %v1262_v59, %v1263_v29  ;;  %v7016_v42 = vand.u32 4294901760, %v681_v55 }
 0x144   :  { %573 = vmatmul.f32.gmra.mxu3 %v423_v47  ;;  %vm1614_vm7 = vcmp.lt.s32.totalorder %v1606_v19, 16  ;;  %v441_v47 = vand.u32 4294901760, %v440_v38 }
 0x145   :  { %809 = vmatpush.msra.mxu0 %v6864_v11  ;;  %941 = vmatpush.msra.mxu3 %v6847_v1  ;;  %v6945_v1 = vsel %vm1264_vm4, %v1263_v29, %v1260_v44  ;;  %v305_v11 = vsel %vm302_vm2, %v298_v41, %v299_v3  ;;  %v6956_v16 = vsub.f32 %v672_v60, %v6932_v4  ;;  %v6977_v33 = vsel %vm1614_vm7, %v1602_v27, 0.0 }
 0x146   :  { %v675_v18 = vsel %vm135_vm0, %v305_v11, 0  ;;  %v7023_v60 = vsub.f32 %v681_v55, %v7016_v42  ;;  %v1298_v55 = vld [vmem:[#allocation5 + $0x60] sm:$0xff] }
 0x147   :  { %812 = vmatpush.msra.mxu0 %v767_v25  ;;  %943 = vmatpush.msra.mxu3 %v6860_v9  ;;  %v309_v9 = vadd.s32 4294967294, %v268_v58  ;;  %v433_v58 = vand.u32 4294901760, %v432_v8  ;;  %v6966_v25 = vsel %vm1600_vm5, %v1596_v13, %v1597_v15  ;;  %v705_v31 = vand.u32 4294901760, %v6956_v16 }
 0x148   :  { %426 = vmatmul.f32.gmra.mxu0 %v425_v62  ;;  %491 = vmatmul.f32.gmra.mxu1 %v6893_v48  ;;  %v6975_v32 = vand.u32 4294901760, %v675_v18  ;;  %v729_v62 = vand.u32 4294901760, %v7023_v60 }
 0x149   :  { %vm313_vm6 = vcmp.ge.s32.totalorder %v309_v9, 0  ;;  %v706_v40 = vsub.f32 %v6956_v16, %v705_v31  ;;  %v964_v9 = vld [vmem:[#allocation5 + $0x50] sm:$0xff] }
 0x14a   :  { %535 = vmatmul.f32.gmra.mxu2 %v430_v53  ;;  %v333_v39 = vsel %vm313_vm6, %v304_v26, 0.0  ;;  %v6992_v41 = vsub.f32 %v675_v18, %v6975_v32  ;;  %v730_v8 = vsub.f32 %v7023_v60, %v729_v62  ;;  %v992_v13 = vand.u32 4294901760, %v964_v9  ;;  %v963_v18 = vld [vmem:[#allocation5 + $0x48] sm:$0xff] }
 0x14b   :  { %v678_v43 = vsel %vm135_vm0, %v333_v39, 0  ;;  %v707_v44 = vand.u32 4294901760, %v706_v40 }
 0x14c   :  { %579 = vmatmul.f32.gmra.mxu3 %v431_v0  ;;  %v713_v49 = vand.u32 4294901760, %v6992_v41  ;;  %v6999_v50 = vand.u32 4294901760, %v678_v43  ;;  %v965_v0 = vld [vmem:[#allocation5 + $0x58] sm:$0xff]  ;;  %v731_v11 = vand.u32 4294901760, %v730_v8  ;;  %v1050_v15 = vsub.f32 %v964_v9, %v992_v13 }
 0x14d   :  { %v990_v3 = vand.u32 4294901760, %v965_v0 }
 0x14e   :  { %v714_v52 = vsub.f32 %v6992_v41, %v713_v49  ;;  %v7010_v53 = vsub.f32 %v678_v43, %v6999_v50  ;;  %v1051_v19 = vand.u32 4294901760, %v1050_v15 }
 0x14f   :  { %v1044_v29 = vsub.f32 %v965_v0, %v990_v3  ;;  %v973_v0 = vsel %vm135_vm0, %v6841_v61, 0 }
 0x150   :  { %434 = vmatmul.f32.gmra.mxu0 %v433_v58  ;;  %495 = vmatmul.f32.gmra.mxu1 %v6926_v2  ;;  %v715_v57 = vand.u32 4294901760, %v714_v52  ;;  %v721_v59 = vand.u32 4294901760, %v7010_v53  ;;  %v994_v58 = vand.u32 4294901760, %v963_v18 }
 0x152   :  { %540 = vmatmul.f32.gmra.mxu2 %v438_v10  ;;  %v722_v37 = vsub.f32 %v7010_v53, %v721_v59  ;;  %v1045_v10 = vand.u32 4294901760, %v1044_v29  ;;  %v1056_v26 = vsub.f32 %v963_v18, %v994_v58 }
 0x154   :  { %585 = vmatmul.f32.gmra.mxu3 %v439_v24  ;;  %v996_v24 = vand.u32 4294901760, %v962_v23  ;;  %v1057_v35 = vand.u32 4294901760, %v1056_v26 }
 0x156   :  { %v1062_v27 = vsub.f32 %v962_v23, %v996_v24  ;;  %v1058_v38 = vsub.f32 %v1056_v26, %v1057_v35 }
 0x158   :  { %442 = vmatmul.f32.gmra.mxu0 %v441_v47  ;;  %655 = vmatmul.f32.vlgmr.msrb.gmra.mxu1 %v6873_v21  ;;  %v1063_v36 = vand.u32 4294901760, %v1062_v27  ;;  %v1059_v40 = vand.u32 4294901760, %v1058_v38  ;;  %v1300_v47 = vld [vmem:[#allocation5 + $0x70] sm:$0xff] }
 0x159   :  { %v7068_v51 = vand.u32 4294901760, %v1300_v47 }
 0x15a   :  { %708 = vmatmul.f32.vlgmr.msrb.gmra.mxu2 %v707_v44  ;;  %v1064_v39 = vsub.f32 %v1062_v27, %v1063_v36  ;;  %v1299_v44 = vld [vmem:[#allocation5 + $0x68] sm:$0xff] }
 0x15b   :  { %1098 = vmatpush.msrb.mxu2 %v1044_v29  ;;  %v7070_v52 = vand.u32 4294901760, %v1299_v44 }
 0x15c   :  { %773 = vmatmul.f32.vlgmr.msrb.gmra.mxu3 %v6932_v4  ;;  %v1065_v43 = vand.u32 4294901760, %v1064_v39 }
 0x15d   :  { %1142 = vmatpush.msrb.mxu3 %v990_v3  ;;  %1101 = vmatpush.msrb.mxu2 %v1050_v15 }
 0x15f   :  { %1144 = vmatpush.msrb.mxu3 %v992_v13  ;;  %1104 = vmatpush.msrb.mxu2 %v1056_v26 }
 0x160   :  { %618 = vmatmul.f32.vlgmr.msrb.gmra.mxu0 %v6873_v21  ;;  %659 = vmatmul.f32.gmra.mxu1 %v6875_v22  ;;  %v723_v21 = vand.u32 4294901760, %v722_v37 }
 0x161   :  { %991 = vmatpush.msrb.mxu0 %v990_v3  ;;  %1146 = vmatpush.msrb.mxu3 %v994_v58 }
 0x162   :  { %716 = vmatmul.f32.gmra.mxu2 %v715_v57  ;;  %v1392_v57 = vsub.f32 %v1299_v44, %v7070_v52 }
 0x163   :  { %993 = vmatpush.msrb.mxu0 %v992_v13  ;;  %1148 = vmatpush.msrb.mxu3 %v996_v24 }
 0x164   :  { %777 = vmatmul.f32.gmra.mxu3 %v6975_v32  ;;  %1107 = vmatpush.msrb.mxu2 %v1062_v27 }
 0x165   :  { %995 = vmatpush.msrb.mxu0 %v994_v58 }
 0x167   :  { %997 = vmatpush.msrb.mxu0 %v996_v24 }
 0x168   :  { %622 = vmatmul.f32.gmra.mxu0 %v6875_v22  ;;  %663 = vmatmul.f32.gmra.mxu1 %v6893_v48  ;;  %v1046_v22 = vsub.f32 %v1044_v29, %v1045_v10 }
 0x16a   :  { %724 = vmatmul.f32.gmra.mxu2 %v723_v21  ;;  %v1047_v12 = vand.u32 4294901760, %v1046_v22 }
 0x16c   :  { %781 = vmatmul.f32.gmra.mxu3 %v6999_v50  ;;  %1048 = vmatpush.msrb.mxu1 %v1047_v12  ;;  %v7087_v12 = vand.u32 4294901760, %v973_v0 }
 0x170   :  { %626 = vmatmul.f32.gmra.mxu0 %v6893_v48  ;;  %667 = vmatmul.f32.gmra.mxu1 %v6926_v2  ;;  %v1052_v48 = vsub.f32 %v1050_v15, %v1051_v19 }
 0x172   :  { %732 = vmatmul.f32.gmra.mxu2 %v731_v11  ;;  %v1053_v28 = vand.u32 4294901760, %v1052_v48  ;;  %v1303_v48 = vsel %vm135_vm0, %v6911_v56, 0 }
 0x174   :  { %785 = vmatmul.f32.gmra.mxu3 %v7016_v42  ;;  %1054 = vmatpush.msrb.mxu1 %v1053_v28 }
 0x176   :  { %1060 = vmatpush.msrb.mxu1 %v1059_v40 }
 0x178   :  { %630 = vmatmul.f32.gmra.mxu0 %v6926_v2  ;;  %857 = vmatmul.f32.vlgmr.msra.gmra.mxu1 %v705_v31  ;;  %v967_v2 = vsel %vm135_vm0, %v6821_v45, 0  ;;  %v1301_v31 = vld [vmem:[#allocation5 + $0x78] sm:$0xff] }
 0x179   :  { %1066 = vmatpush.msrb.mxu1 %v1065_v43 }
 0x17a   :  { %908 = vmatmul.f32.vlgmr.msra.gmra.mxu2 %v6932_v4 }
 0x17b   :  { %1232 = vmatpush.msra.mxu1 %v990_v3 }
 0x17c   :  { %945 = vmatmul.f32.vlgmr.msra.gmra.mxu3 %v6932_v4  ;;  %v7052_v4 = vand.u32 4294901760, %v967_v2 }
 0x17d   :  { %1234 = vmatpush.msra.mxu1 %v992_v13 }
 0x17f   :  { %1236 = vmatpush.msra.mxu1 %v994_v58  ;;  %v976_v58 = vsel %vm135_vm0, %v6843_v63, 0  ;;  %v7103_v63 = vand.u32 4294901760, %v1303_v48 }
 0x180   :  { %815 = vmatmul.f32.vlgmr.msra.gmra.mxu0 %v6956_v16  ;;  %863 = vmatmul.f32.gmra.mxu1 %v713_v49  ;;  %v999_v16 = vsub.f32 %v967_v2, %v7052_v4  ;;  %v7099_v28 = vand.u32 4294901760, %v976_v58  ;;  %v1272_v2 = vadd.s32 1, %v275_v17 }
 0x181   :  { %1189 = vmatpush.msra.mxu0 %v1045_v10  ;;  %1238 = vmatpush.msra.mxu1 %v996_v24  ;;  %v1270_v24 = vadd.s32 1, %v261_v6 }
 0x182   :  { %912 = vmatmul.f32.gmra.mxu2 %v6975_v32  ;;  %v1000_v49 = vand.u32 4294901760, %v999_v16  ;;  %v1023_v54 = vsub.f32 %v976_v58, %v7099_v28  ;;  %vm1280_vm10 = vcmp.lt.s32.totalorder %v1272_v2, 16 }
 0x183   :  { %1193 = vmatpush.msra.mxu0 %v1051_v19  ;;  %v1015_v19 = vsub.f32 %v973_v0, %v7087_v12  ;;  %vm1278_vm9 = vcmp.lt.s32.totalorder %v1270_v24, 16  ;;  %v1296_v44 = vsel %vm1280_vm10, %v6945_v1, 0.0 }
 0x184   :  { %949 = vmatmul.f32.gmra.mxu3 %v6975_v32  ;;  %v970_v32 = vsel %vm135_vm0, %v6823_v46, 0  ;;  %v1386_v46 = vsub.f32 %v1300_v47, %v7068_v51  ;;  %v1001_v37 = vsub.f32 %v999_v16, %v1000_v49  ;;  %v1294_v6 = vsel %vm1278_vm9, %v6924_v30, 0.0 }
 0x185   :  { %1197 = vmatpush.msra.mxu0 %v1057_v35  ;;  %v1016_v27 = vand.u32 4294901760, %v1015_v19  ;;  %v7110_v35 = vsub.f32 %v1303_v48, %v7103_v63  ;;  %v1024_v39 = vand.u32 4294901760, %v1023_v54 }
 0x186   :  { %v1002_v11 = vand.u32 4294901760, %v1001_v37 }
 0x187   :  { %1201 = vmatpush.msra.mxu0 %v1063_v36  ;;  %v1017_v56 = vsub.f32 %v1015_v19, %v1016_v27  ;;  %v1306_v36 = vsel %vm135_vm0, %v1294_v6, 0  ;;  %v1336_v40 = vand.u32 4294901760, %v7110_v35  ;;  %v1025_v30 = vsub.f32 %v1023_v54, %v1024_v39  ;;  %v1636_v6 = vld [vmem:[#allocation5 + $0x90] sm:$0xff] }
 0x188   :  { %820 = vmatmul.f32.gmra.mxu0 %v6992_v41  ;;  %869 = vmatmul.f32.gmra.mxu1 %v721_v59  ;;  %v7061_v41 = vand.u32 4294901760, %v1301_v31  ;;  %v7116_v43 = vand.u32 4294901760, %v1306_v36 }
 0x189   :  { %v1018_v38 = vand.u32 4294901760, %v1017_v56 }
 0x18a   :  { %916 = vmatmul.f32.gmra.mxu2 %v6999_v50  ;;  %v1380_v45 = vsub.f32 %v1301_v31, %v7061_v41  ;;  %v7124_v31 = vsub.f32 %v1306_v36, %v7116_v43 }
 0x18b   :  { %1327 = vmatpush.msra.mxu2 %v7061_v41 }
 0x18c   :  { %953 = vmatmul.f32.gmra.mxu3 %v6999_v50  ;;  %v7066_v50 = vand.u32 4294901760, %v970_v32  ;;  %v1344_v5 = vand.u32 4294901760, %v7124_v31 }
 0x18d   :  { %1329 = vmatpush.msra.mxu2 %v7068_v51 }
 0x18e   :  { %v1007_v21 = vsub.f32 %v970_v32, %v7066_v50 }
 0x18f   :  { %1331 = vmatpush.msra.mxu2 %v7070_v52 }
 0x190   :  { %825 = vmatmul.f32.gmra.mxu0 %v7010_v53  ;;  %875 = vmatmul.f32.gmra.mxu1 %v729_v62  ;;  %v1381_v53 = vand.u32 4294901760, %v1380_v45  ;;  %v1387_v62 = vand.u32 4294901760, %v1386_v46  ;;  %v1008_v9 = vand.u32 4294901760, %v1007_v21 }
 0x192   :  { %920 = vmatmul.f32.gmra.mxu2 %v7016_v42  ;;  %v1382_v59 = vsub.f32 %v1380_v45, %v1381_v53  ;;  %v1388_v8 = vsub.f32 %v1386_v46, %v1387_v62  ;;  %v1009_v23 = vsub.f32 %v1007_v21, %v1008_v9 }
 0x194   :  { %957 = vmatmul.f32.gmra.mxu3 %v7016_v42  ;;  %v7077_v42 = vand.u32 4294901760, %v1298_v55  ;;  %v1383_v3 = vand.u32 4294901760, %v1382_v59  ;;  %v1389_v13 = vand.u32 4294901760, %v1388_v8  ;;  %v1010_v26 = vand.u32 4294901760, %v1009_v23 }
 0x196   :  { %v1398_v29 = vsub.f32 %v1298_v55, %v7077_v42  ;;  %1384 = vmatpush.msra.mxu3 %v1383_v3  ;;  %1333 = vmatpush.msra.mxu2 %v7077_v42 }
 0x198   :  { %830 = vmatmul.f32.gmra.mxu0 %v7023_v60  ;;  %1068 = vmatmul.f32.vlgmr.msrb.gmra.mxu1 %v7052_v4  ;;  %v1393_v60 = vand.u32 4294901760, %v1392_v57  ;;  %v1399_v22 = vand.u32 4294901760, %v1398_v29 }
 0x199   :  { %1478 = vmatpush.msrb.mxu1 %v7061_v41  ;;  %1390 = vmatpush.msra.mxu3 %v1389_v13 }
 0x19a   :  { %1110 = vmatmul.f32.vlgmr.msrb.gmra.mxu2 %v999_v16  ;;  %v1394_v10 = vsub.f32 %v1392_v57, %v1393_v60  ;;  %v1400_v15 = vsub.f32 %v1398_v29, %v1399_v22  ;;  %v1337_v16 = vsub.f32 %v7110_v35, %v1336_v40 }
 0x19b   :  { %1480 = vmatpush.msrb.mxu1 %v7068_v51  ;;  %1525 = vmatpush.msrb.mxu2 %v1381_v53  ;;  %v1312_v53 = vsel %vm135_vm0, %v1296_v44, 0  ;;  %v1635_v44 = vld [vmem:[#allocation5 + $0x88] sm:$0xff] }
 0x19c   :  { %1152 = vmatmul.f32.vlgmr.msrb.gmra.mxu3 %v1000_v49  ;;  %v1395_v61 = vand.u32 4294901760, %v1394_v10  ;;  %v1401_v18 = vand.u32 4294901760, %v1400_v15  ;;  %v1338_v47 = vand.u32 4294901760, %v1337_v16  ;;  %v1345_v49 = vsub.f32 %v7124_v31, %v1344_v5 }
 0x19d   :  { %1482 = vmatpush.msrb.mxu1 %v7070_v52  ;;  %1529 = vmatpush.msrb.mxu2 %v1387_v62  ;;  %v7144_v37 = vand.u32 4294901760, %v1312_v53 }
 0x19e   :  { %1396 = vmatpush.msra.mxu3 %v1395_v61  ;;  %v1346_v1 = vand.u32 4294901760, %v1345_v49  ;;  %v1637_v61 = vld [vmem:[#allocation5 + $0x98] sm:$0xff] }
 0x19f   :  { %1484 = vmatpush.msrb.mxu1 %v7077_v42  ;;  %1533 = vmatpush.msrb.mxu2 %v1393_v60  ;;  %v7153_v60 = vsub.f32 %v1312_v53, %v7144_v37  ;;  %v7164_v23 = vand.u32 4294901760, %v1637_v61 }
 0x1a0   :  { %1003 = vmatmul.f32.vlgmr.msrb.gmra.mxu0 %v1002_v11  ;;  %1072 = vmatmul.f32.gmra.mxu1 %v7066_v50 }
 0x1a1   :  { %1434 = vmatpush.msrb.mxu0 %v1380_v45  ;;  %1402 = vmatpush.msra.mxu3 %v1401_v18  ;;  %v1026_v45 = vand.u32 4294901760, %v1025_v30  ;;  %v1360_v11 = vand.u32 4294901760, %v7153_v60  ;;  %v1716_v24 = vsub.f32 %v1637_v61, %v7164_v23  ;;  %v7174_v30 = vand.u32 4294901760, %v1636_v6 }
 0x1a2   :  { %1115 = vmatmul.f32.gmra.mxu2 %v1007_v21 }
 0x1a3   :  { %1437 = vmatpush.msrb.mxu0 %v1386_v46  ;;  %1568 = vmatpush.msrb.mxu3 %v7061_v41  ;;  %v1309_v41 = vsel %vm135_vm0, %v6941_v7, 0  ;;  %v1361_v13 = vsub.f32 %v7153_v60, %v1360_v11 }
 0x1a4   :  { %1158 = vmatmul.f32.gmra.mxu3 %v1008_v9  ;;  %1537 = vmatpush.msrb.mxu2 %v1399_v22  ;;  %v7130_v17 = vand.u32 4294901760, %v1309_v41 }
 0x1a5   :  { %1440 = vmatpush.msrb.mxu0 %v1392_v57  ;;  %1570 = vmatpush.msrb.mxu3 %v7068_v51 }
 0x1a6   :  { %v7138_v7 = vsub.f32 %v1309_v41, %v7130_v17 }
 0x1a7   :  { %1443 = vmatpush.msrb.mxu0 %v1398_v29  ;;  %1572 = vmatpush.msrb.mxu3 %v7070_v52 }
 0x1a8   :  { %1011 = vmatmul.f32.gmra.mxu0 %v1010_v26  ;;  %1076 = vmatmul.f32.gmra.mxu1 %v7087_v12  ;;  %v1362_v26 = vand.u32 4294901760, %v1361_v13 }
 0x1a9   :  { %1574 = vmatpush.msrb.mxu3 %v7077_v42  ;;  %v1352_v42 = vand.u32 4294901760, %v7138_v7 }
 0x1aa   :  { %1120 = vmatmul.f32.gmra.mxu2 %v1015_v19 }
 0x1ab   :  { %v1353_v62 = vsub.f32 %v7138_v7, %v1352_v42 }
 0x1ac   :  { %1164 = vmatmul.f32.gmra.mxu3 %v1016_v27  ;;  %v1717_v27 = vand.u32 4294901760, %v1716_v24 }
 0x1ad   :  { %v1354_v22 = vand.u32 4294901760, %v1353_v62 }
 0x1b0   :  { %1019 = vmatmul.f32.gmra.mxu0 %v1018_v38  ;;  %1080 = vmatmul.f32.gmra.mxu1 %v7099_v28 }
 0x1b2   :  { %1125 = vmatmul.f32.gmra.mxu2 %v1023_v54  ;;  %v1718_v54 = vsub.f32 %v1716_v24, %v1717_v27 }
 0x1b4   :  { %1170 = vmatmul.f32.gmra.mxu3 %v1024_v39  ;;  %v1719_v39 = vand.u32 4294901760, %v1718_v54 }
 0x1b5   :  { %v484_v32 = vpop.f32.mrf.mxu1 }
 0x1b8   :  { %1027 = vmatmul.f32.gmra.mxu0 %v1026_v45  ;;  %1240 = vmatmul.f32.vlgmr.msra.gmra.mxu1 %v7052_v4 }
 0x1b9   :  { %1720 = vmatpush.msra.mxu1 %v1719_v39 }
 0x1ba   :  { %1339 = vmatmul.f32.vlgmr.msra.gmra.mxu2 %v1338_v47 }
 0x1bb   :  { %1770 = vmatpush.msra.mxu2 %v1716_v24 }
 0x1bc   :  { %1404 = vmatmul.f32.vlgmr.msra.gmra.mxu3 %v7103_v63 }
 0x1bd   :  { %v419_v51 = vpop.f32.mrf.mxu0  ;;  %v488_v52 = vpop.f32.mrf.mxu1  ;;  %1814 = vmatpush.msra.mxu3 %v7164_v23 }
 0x1be   :  { %v485_v46 = vadd.f32 %v484_v32, %v419_v51  ;;  %v526_v55 = vpop.f32.mrf.mxu2  ;;  %v1722_v32 = vsub.f32 %v1636_v6, %v7174_v30  ;;  %v1666_v51 = vand.u32 4294901760, %v1635_v44 }
 0x1bf   :  { %v568_v57 = vpop.f32.mrf.mxu3  ;;  %1816 = vmatpush.msra.mxu3 %v7174_v30 }
 0x1c0   :  { %v527_v59 = vadd.f32 %v526_v55, %v485_v46  ;;  %1203 = vmatmul.f32.vlgmr.msra.gmra.mxu0 %v7052_v4  ;;  %1244 = vmatmul.f32.gmra.mxu1 %v7066_v50  ;;  %v1723_v45 = vand.u32 4294901760, %v1722_v32  ;;  %v1728_v55 = vsub.f32 %v1635_v44, %v1666_v51 }
 0x1c1   :  { %1663 = vmatpush.msra.mxu0 %v7164_v23  ;;  %1773 = vmatpush.msra.mxu2 %v1722_v32 }
 0x1c2   :  { %v7146_v21 = vadd.f32 %v568_v57, %v527_v59  ;;  %1347 = vmatmul.f32.gmra.mxu2 %v1346_v1  ;;  %v1724_v49 = vsub.f32 %v1722_v32, %v1723_v45  ;;  %1818 = vmatpush.msra.mxu3 %v1666_v51  ;;  %v1729_v62 = vand.u32 4294901760, %v1728_v55 }
 0x1c3   :  { %1665 = vmatpush.msra.mxu0 %v7174_v30  ;;  %1776 = vmatpush.msra.mxu2 %v1728_v55 }
 0x1c4   :  { %1408 = vmatmul.f32.gmra.mxu3 %v7116_v43 }
 0x1c5   :  { %v427_v4 = vpop.f32.mrf.mxu0  ;;  %v492_v0 = vpop.f32.mrf.mxu1  ;;  %1667 = vmatpush.msra.mxu0 %v1666_v51 }
 0x1c6   :  { %v489_v3 = vadd.f32 %v488_v52, %v427_v4  ;;  %v531_v29 = vpop.f32.mrf.mxu2  ;;  %v1634_v52 = vld [vmem:[#allocation5 + $0x80] sm:$0xff] }
 0x1c7   :  { %v574_v8 = vpop.f32.mrf.mxu3  ;;  %v1668_v57 = vand.u32 4294901760, %v1634_v52 }
 0x1c8   :  { %v532_v10 = vadd.f32 %v531_v29, %v489_v3  ;;  %1207 = vmatmul.f32.gmra.mxu0 %v7066_v50  ;;  %1248 = vmatmul.f32.gmra.mxu1 %v7087_v12 }
 0x1c9   :  { %v1734_v4 = vsub.f32 %v1634_v52, %v1668_v57  ;;  %1820 = vmatpush.msra.mxu3 %v1668_v57  ;;  %1669 = vmatpush.msra.mxu0 %v1668_v57 }
 0x1ca   :  { %v7158_v9 = vadd.f32 %v574_v8, %v532_v10  ;;  %1355 = vmatmul.f32.gmra.mxu2 %v1354_v22 }
 0x1cb   :  { %v1735_v3 = vand.u32 4294901760, %v1734_v4  ;;  %1779 = vmatpush.msra.mxu2 %v1734_v4 }
 0x1cc   :  { %1412 = vmatmul.f32.gmra.mxu3 %v7130_v17 }
 0x1cd   :  { %v435_v15 = vpop.f32.mrf.mxu0  ;;  %v496_v18 = vpop.f32.mrf.mxu1  ;;  %v1736_v29 = vsub.f32 %v1734_v4, %v1735_v3 }
 0x1ce   :  { %v493_v50 = vadd.f32 %v492_v0, %v435_v15  ;;  %v536_v19 = vpop.f32.mrf.mxu2 }
 0x1cf   :  { %v580_v58 = vpop.f32.mrf.mxu3  ;;  %v1737_v22 = vand.u32 4294901760, %v1736_v29 }
 0x1d0   :  { %v537_v48 = vadd.f32 %v536_v19, %v493_v50  ;;  %1211 = vmatmul.f32.gmra.mxu0 %v7087_v12  ;;  %1252 = vmatmul.f32.gmra.mxu1 %v7099_v28 }
 0x1d2   :  { %v7171_v56 = vadd.f32 %v580_v58, %v537_v48  ;;  %1363 = vmatmul.f32.gmra.mxu2 %v1362_v26 }
 0x1d4   :  { %1416 = vmatmul.f32.gmra.mxu3 %v7144_v37 }
 0x1d5   :  { %v443_v36 = vpop.f32.mrf.mxu0  ;;  %v656_v38 = vpop.f32.mrf.mxu1 }
 0x1d6   :  { %v497_v2 = vadd.f32 %v496_v18, %v443_v36  ;;  %v541_v16 = vpop.f32.mrf.mxu2 }
 0x1d7   :  { %v586_v12 = vpop.f32.mrf.mxu3 }
 0x1d8   :  { %v542_v41 = vadd.f32 %v541_v16, %v497_v2  ;;  %1215 = vmatmul.f32.gmra.mxu0 %v7099_v28  ;;  %1488 = vmatmul.f32.vlgmr.msrb.gmra.mxu1 %v1336_v40  ;;  %v1725_v28 = vand.u32 4294901760, %v1724_v49 }
 0x1da   :  { %v7182_v47 = vadd.f32 %v586_v12, %v542_v41  ;;  %1539 = vmatmul.f32.vlgmr.msrb.gmra.mxu2 %v7103_v63  ;;  %1726 = vmatpush.msra.mxu1 %v1725_v28 }
 0x1dc   :  { %1576 = vmatmul.f32.vlgmr.msrb.gmra.mxu3 %v7103_v63  ;;  %v1730_v63 = vsub.f32 %v1728_v55, %v1729_v62 }
 0x1dd   :  { %v619_v53 = vpop.f32.mrf.mxu0  ;;  %v660_v46 = vpop.f32.mrf.mxu1 }
 0x1de   :  { %v620_v40 = vadd.f32 %v619_v53, %v7146_v21  ;;  %v7187_v59 = vpop.f32.mrf.mxu2  ;;  %v1731_v21 = vand.u32 4294901760, %v1730_v63 }
 0x1df   :  { %v7189_v1 = vpop.f32.mrf.mxu3 }
 0x1e0   :  { %v7191_v0 = vadd.f32 %v656_v38, %v620_v40  ;;  %1446 = vmatmul.f32.vlgmr.msrb.gmra.mxu0 %v7110_v35  ;;  %1494 = vmatmul.f32.gmra.mxu1 %v1344_v5 }
 0x1e1   :  { %1861 = vmatpush.msrb.mxu0 %v1717_v27  ;;  %1732 = vmatpush.msra.mxu1 %v1731_v21 }
 0x1e2   :  { %1543 = vmatmul.f32.gmra.mxu2 %v7116_v43 }
 0x1e3   :  { %1865 = vmatpush.msrb.mxu0 %v1723_v45  ;;  %1738 = vmatpush.msra.mxu1 %v1737_v22 }
 0x1e4   :  { %1580 = vmatmul.f32.gmra.mxu3 %v7116_v43  ;;  %v1639_v43 = vsel %vm135_vm0, %v6966_v25, 0 }
 0x1e5   :  { %v623_v8 = vpop.f32.mrf.mxu0  ;;  %v664_v10 = vpop.f32.mrf.mxu1  ;;  %1869 = vmatpush.msrb.mxu0 %v1729_v62  ;;  %1904 = vmatpush.msrb.mxu1 %v7164_v23 }
 0x1e6   :  { %v624_v35 = vadd.f32 %v623_v8, %v7158_v9  ;;  %v7199_v5 = vpop.f32.mrf.mxu2 }
 0x1e7   :  { %v7201_v13 = vpop.f32.mrf.mxu3  ;;  %1873 = vmatpush.msrb.mxu0 %v1735_v3  ;;  %1906 = vmatpush.msrb.mxu1 %v7174_v30 }
 0x1e8   :  { %v7203_v61 = vadd.f32 %v660_v46, %v624_v35  ;;  %1451 = vmatmul.f32.gmra.mxu0 %v7124_v31  ;;  %1500 = vmatmul.f32.gmra.mxu1 %v1352_v42  ;;  %v7217_v42 = vand.u32 4294901760, %v1639_v43 }
 0x1e9   :  { %1908 = vmatpush.msrb.mxu1 %v1666_v51 }
 0x1ea   :  { %1547 = vmatmul.f32.gmra.mxu2 %v7130_v17  ;;  %v1671_v25 = vsub.f32 %v1639_v43, %v7217_v42 }
 0x1eb   :  { %1910 = vmatpush.msrb.mxu1 %v1668_v57 }
 0x1ec   :  { %1584 = vmatmul.f32.gmra.mxu3 %v7130_v17  ;;  %v1642_v17 = vsel %vm135_vm0, %v6977_v33, 0 }
 0x1ed   :  { %v627_v9 = vpop.f32.mrf.mxu0  ;;  %v668_v15 = vpop.f32.mrf.mxu1  ;;  %v7236_v26 = vand.u32 4294901760, %v1642_v17 }
 0x1ee   :  { %v628_v31 = vadd.f32 %v627_v9, %v7171_v56  ;;  %v7215_v18 = vpop.f32.mrf.mxu2  ;;  %v1645_v56 = vsel %vm135_vm0, %v6981_v34, 0  ;;  %v1648_v34 = vsel %vm135_vm0, %v6995_v20, 0 }
 0x1ef   :  { %v7219_v23 = vpop.f32.mrf.mxu3  ;;  %v1686_v30 = vand.u32 4294901760, %v1645_v56  ;;  %v1694_v44 = vand.u32 4294901760, %v1648_v34 }
 0x1f0   :  { %v7221_v50 = vadd.f32 %v664_v10, %v628_v31  ;;  %1456 = vmatmul.f32.gmra.mxu0 %v7138_v7  ;;  %1506 = vmatmul.f32.gmra.mxu1 %v1360_v11  ;;  %v1672_v7 = vand.u32 4294901760, %v1671_v25 }
 0x1f1   :  { %v1687_v16 = vsub.f32 %v1645_v56, %v1686_v30  ;;  %v1695_v52 = vsub.f32 %v1648_v34, %v1694_v44 }
 0x1f2   :  { %1551 = vmatmul.f32.gmra.mxu2 %v7144_v37  ;;  %v1673_v33 = vsub.f32 %v1671_v25, %v1672_v7 }
 0x1f3   :  { %v1696_v55 = vand.u32 4294901760, %v1695_v52 }
 0x1f4   :  { %1588 = vmatmul.f32.gmra.mxu3 %v7144_v37  ;;  %v1679_v37 = vsub.f32 %v1642_v17, %v7236_v26  ;;  %v1674_v38 = vand.u32 4294901760, %v1673_v33 }
 0x1f5   :  { %v631_v19 = vpop.f32.mrf.mxu0  ;;  %v7231_v58 = vpop.f32.mrf.mxu1  ;;  %v1697_v40 = vsub.f32 %v1695_v52, %v1696_v55 }
 0x1f6   :  { %v632_v24 = vadd.f32 %v631_v19, %v7182_v47  ;;  %v7234_v48 = vpop.f32.mrf.mxu2  ;;  %v1680_v39 = vand.u32 4294901760, %v1679_v37  ;;  %v1688_v47 = vand.u32 4294901760, %v1687_v16 }
 0x1f7   :  { %v7238_v11 = vpop.f32.mrf.mxu3  ;;  %v1698_v3 = vand.u32 4294901760, %v1697_v40 }
 0x1f8   :  { %8483 = vst [vmem:[#allocation20_spill] sm:$0xff] %v7238_v11  ;;  %v7240_v27 = vadd.f32 %v668_v15, %v632_v24  ;;  %1461 = vmatmul.f32.gmra.mxu0 %v7153_v60  ;;  %1740 = vmatmul.f32.vlgmr.msra.gmra.mxu1 %v7217_v42  ;;  %v1681_v2 = vsub.f32 %v1679_v37, %v1680_v39 }
 0x1f9   :  { %v1689_v51 = vsub.f32 %v1687_v16, %v1688_v47 }
 0x1fa   :  { %1782 = vmatmul.f32.vlgmr.msra.gmra.mxu2 %v1671_v25  ;;  %v1682_v45 = vand.u32 4294901760, %v1681_v2 }
 0x1fb   :  { %v1690_v28 = vand.u32 4294901760, %v1689_v51 }
 0x1fc   :  { %1824 = vmatmul.f32.vlgmr.msra.gmra.mxu3 %v1672_v7 }
 0x1fd   :  { %v7247_v54 = vpop.f32.mrf.mxu0  ;;  %v7249_v6 = vpop.f32.mrf.mxu1 }
 0x1fe   :  { %v7251_v36 = vpop.f32.mrf.mxu2 }
 0x1ff   :  { %v7253_v60 = vpop.f32.mrf.mxu3 }
 0x200   :  { %1675 = vmatmul.f32.vlgmr.msra.gmra.mxu0 %v1674_v38  ;;  %1744 = vmatmul.f32.gmra.mxu1 %v7236_v26 }
 0x202   :  { %1787 = vmatmul.f32.gmra.mxu2 %v1679_v37 }
 0x204   :  { %1830 = vmatmul.f32.gmra.mxu3 %v1680_v39 }
 0x205   :  { %v7258_v12 = vpop.f32.mrf.mxu0  ;;  %v7260_v32 = vpop.f32.mrf.mxu1 }
 0x206   :  { %8484 = vst [vmem:[#allocation21_spill] sm:$0xff] %v7260_v32  ;;  %v7262_v41 = vpop.f32.mrf.mxu2 }
 0x207   :  { %v7264_v49 = vpop.f32.mrf.mxu3 }
 0x208   :  { %1683 = vmatmul.f32.gmra.mxu0 %v1682_v45  ;;  %1748 = vmatmul.f32.gmra.mxu1 %v1686_v30 }
 0x20a   :  { %1792 = vmatmul.f32.gmra.mxu2 %v1687_v16 }
 0x20c   :  { %1836 = vmatmul.f32.gmra.mxu3 %v1688_v47 }
 0x20d   :  { %v7266_v53 = vpop.f32.mrf.mxu0  ;;  %v7268_v20 = vpop.f32.mrf.mxu1 }
 0x20e   :  { %8485 = vst [vmem:[#allocation22_spill] sm:$0xff] %v7268_v20  ;;  %v7270_v46 = vpop.f32.mrf.mxu2 }
 0x20f   :  { %8486 = vst [vmem:[#allocation23_spill] sm:$0xff] %v7270_v46  ;;  %v7272_v57 = vpop.f32.mrf.mxu3 }
 0x210   :  { %8487 = vst [vmem:[#allocation24_spill] sm:$0xff] %v7272_v57  ;;  %1691 = vmatmul.f32.gmra.mxu0 %v1690_v28  ;;  %1752 = vmatmul.f32.gmra.mxu1 %v1694_v44 }
 0x212   :  { %1797 = vmatmul.f32.gmra.mxu2 %v1695_v52 }
 0x214   :  { %1842 = vmatmul.f32.gmra.mxu3 %v1696_v55 }
 0x215   :  { %v7274_v62 = vpop.f32.mrf.mxu0  ;;  %v7276_v4 = vpop.f32.mrf.mxu1 }
 0x216   :  { %8488 = vst [vmem:[#allocation25_spill] sm:$0xff] %v7274_v62  ;;  %v7278_v63 = vpop.f32.mrf.mxu2 }
 0x217   :  { %8489 = vst [vmem:[#allocation26_spill] sm:$0xff] %v7278_v63  ;;  %v7280_v21 = vpop.f32.mrf.mxu3 }
 0x218   :  { %8490 = vst [vmem:[#allocation27_spill] sm:$0xff] %v7280_v21  ;;  %1699 = vmatmul.f32.gmra.mxu0 %v1698_v3  ;;  %1912 = vmatmul.f32.vlgmr.msrb.gmra.mxu1 %v7217_v42 }
 0x21d   :  { %v1004_v29 = vpop.f32.mrf.mxu0  ;;  %v7283_v8 = vpop.f32.mrf.mxu1 }
 0x21e   :  { %v7285_v10 = vpop.f32.mrf.mxu2 }
 0x21f   :  { %v7287_v22 = vpop.f32.mrf.mxu3 }
 0x220   :  { %1875 = vmatmul.f32.vlgmr.msrb.gmra.mxu0 %v7217_v42  ;;  %1916 = vmatmul.f32.gmra.mxu1 %v7236_v26 }
 0x225   :  { %v7291_v35 = vpop.f32.mrf.mxu0  ;;  %v7293_v43 = vpop.f32.mrf.mxu1 }
 0x226   :  { %v7295_v9 = vpop.f32.mrf.mxu2 }
 0x227   :  { %v7297_v15 = vpop.f32.mrf.mxu3 }
 0x228   :  { %1879 = vmatmul.f32.gmra.mxu0 %v7236_v26  ;;  %1920 = vmatmul.f32.gmra.mxu1 %v1686_v30 }
 0x22d   :  { %v7300_v31 = vpop.f32.mrf.mxu0  ;;  %v7302_v25 = vpop.f32.mrf.mxu1 }
 0x22e   :  { %8491 = vst [vmem:[#allocation28_spill] sm:$0xff] %v7302_v25  ;;  %v7304_v17 = vpop.f32.mrf.mxu2 }
 0x22f   :  { %v7306_v42 = vpop.f32.mrf.mxu3 }
 0x230   :  { %8492 = vst [vmem:[#allocation29_spill] sm:$0xff] %v7306_v42  ;;  %1883 = vmatmul.f32.gmra.mxu0 %v1686_v30  ;;  %1924 = vmatmul.f32.gmra.mxu1 %v1694_v44 }
 0x235   :  { %v7308_v19 = vpop.f32.mrf.mxu0  ;;  %v7310_v24 = vpop.f32.mrf.mxu1 }
 0x236   :  { %8493 = vst [vmem:[#allocation30_spill] sm:$0xff] %v7308_v19  ;;  %v7312_v7 = vpop.f32.mrf.mxu2 }
 0x237   :  { %8494 = vst [vmem:[#allocation31_spill] sm:$0xff] %v7312_v7  ;;  %v7314_v33 = vpop.f32.mrf.mxu3 }
 0x238   :  { %1887 = vmatmul.f32.gmra.mxu0 %v1694_v44  ;;  %8495 = vst [vmem:[#allocation32_spill] sm:$0xff] %v7314_v33 }
 0x23d   :  { %v1204_v26 = vpop.f32.mrf.mxu0  ;;  %v7316_v37 = vpop.f32.mrf.mxu1 }
 0x23e   :  { %v1340_v56 = vpop.f32.mrf.mxu2 }
 0x23f   :  { %v1405_v38 = vpop.f32.mrf.mxu3 }
 0x245   :  { %v7318_v39 = vpop.f32.mrf.mxu0  ;;  %v7320_v2 = vpop.f32.mrf.mxu1 }
 0x246   :  { %8496 = vst [vmem:[#allocation33_spill] sm:$0xff] %v7320_v2  ;;  %v1348_v30 = vpop.f32.mrf.mxu2 }
 0x247   :  { %v1409_v45 = vpop.f32.mrf.mxu3 }
 0x24d   :  { %v7322_v16 = vpop.f32.mrf.mxu0  ;;  %v7324_v34 = vpop.f32.mrf.mxu1 }
 0x24e   :  { %8497 = vst [vmem:[#allocation34_spill] sm:$0xff] %v7322_v16  ;;  %v7326_v47 = vpop.f32.mrf.mxu2 }
 0x24f   :  { %8498 = vst [vmem:[#allocation35_spill] sm:$0xff] %v7324_v34  ;;  %v7330_v52 = vpop.f32.mrf.mxu3 }
 0x255   :  { %v7328_v44 = vpop.f32.mrf.mxu0  ;;  %v1489_v51 = vpop.f32.mrf.mxu1 }
 0x256   :  { %8499 = vst [vmem:[#allocation36_spill] sm:$0xff] %v7328_v44  ;;  %v7332_v40 = vpop.f32.mrf.mxu2 }
 0x257   :  { %8500 = vst [vmem:[#allocation37_spill] sm:$0xff] %v7332_v40  ;;  %v7334_v3 = vpop.f32.mrf.mxu3 }
 0x258   :  { %8501 = vst [vmem:[#allocation38_spill] sm:$0xff] %v7334_v3 }
 0x25d   :  { %v1447_v28 = vpop.f32.mrf.mxu0  ;;  %v1495_v55 = vpop.f32.mrf.mxu1 }
 0x25e   :  { %v1540_v63 = vpop.f32.mrf.mxu2 }
 0x25f   :  { %v1577_v33 = vpop.f32.mrf.mxu3 }
 0x265   :  { %v1452_v14 = vpop.f32.mrf.mxu0  ;;  %v7336_v21 = vpop.f32.mrf.mxu1 }
 0x266   :  { %8502 = vst [vmem:[#allocation39_spill] sm:$0xff] %v7336_v21  ;;  %v7340_v57 = vpop.f32.mrf.mxu2 }
 0x267   :  { %v7344_v7 = vpop.f32.mrf.mxu3 }
 0x268   :  { %8505 = vst [vmem:[#allocation42_spill] sm:$0xff] %v7344_v7 }
 0x26d   :  { %v1457_v34 = vpop.f32.mrf.mxu0  ;;  %v7338_v20 = vpop.f32.mrf.mxu1 }
 0x26e   :  { %8503 = vst [vmem:[#allocation40_spill] sm:$0xff] %v7338_v20  ;;  %v7346_v62 = vpop.f32.mrf.mxu2  ;;  %v710_v20 = vadd.f32 %v7187_v59, %v7191_v0 }
 0x26f   :  { %8506 = vst [vmem:[#allocation43_spill] sm:$0xff] %v7346_v62  ;;  %v7348_v3 = vpop.f32.mrf.mxu3  ;;  %v1406_v62 = vadd.f32 %v1405_v38, %v1340_v56 }
 0x270   :  { %8507 = vst [vmem:[#allocation44_spill] sm:$0xff] %v7348_v3  ;;  %v775_v7 = vadd.f32 %v7189_v1, %v710_v20 }
 0x271   :  { %v1448_v32 = vadd.f32 %v1447_v28, %v1406_v62  ;;  %v8513_v28 = vld [vmem:[#allocation28_spill] sm:$0xff] }
 0x272   :  { %v817_v42 = vadd.f32 %v7247_v54, %v775_v7 }
 0x274   :  { %v859_v0 = vadd.f32 %v7231_v58, %v817_v42 }
 0x275   :  { %v7342_v44 = vpop.f32.mrf.mxu0  ;;  %v1741_v2 = vpop.f32.mrf.mxu1 }
 0x276   :  { %8504 = vst [vmem:[#allocation41_spill] sm:$0xff] %v7342_v44  ;;  %v7352_v21 = vpop.f32.mrf.mxu2  ;;  %v1070_v44 = vadd.f32 %v7276_v4, %v1004_v29  ;;  %v1074_v4 = vadd.f32 %v7283_v8, %v7291_v35  ;;  %v1490_v29 = vadd.f32 %v1489_v51, %v1448_v32  ;;  %v910_v62 = vadd.f32 %v7251_v36, %v859_v0  ;;  %v8511_v51 = vld [vmem:[#allocation29_spill] sm:$0xff] }
 0x277   :  { %8509 = vst [vmem:[#allocation46_spill] sm:$0xff] %v7352_v21  ;;  %v7356_v25 = vpop.f32.mrf.mxu3  ;;  %v1078_v36 = vadd.f32 %v7293_v43, %v7300_v31 }
 0x278   :  { %v1112_v21 = vadd.f32 %v7285_v10, %v1070_v44  ;;  %v1410_v10 = vadd.f32 %v1409_v45, %v1348_v30  ;;  %v1117_v58 = vadd.f32 %v7295_v9, %v1074_v4  ;;  %v1541_v42 = vadd.f32 %v1540_v63, %v1490_v29  ;;  %v8515_v4 = vld [vmem:[#allocation42_spill] sm:$0xff] }
 0x279   :  { %v1122_v43 = vadd.f32 %v7304_v17, %v1078_v36 }
 0x27a   :  { %v1154_v20 = vadd.f32 %v7287_v22, %v1112_v21  ;;  %v1453_v38 = vadd.f32 %v1452_v14, %v1410_v10  ;;  %v947_v21 = vadd.f32 %v7253_v60, %v910_v62  ;;  %v1578_v35 = vadd.f32 %v1577_v33, %v1541_v42  ;;  %v8519_v10 = vld [vmem:[#allocation37_spill] sm:$0xff]  ;;  %v8520_v62 = vld [vmem:[#allocation38_spill] sm:$0xff] }
 0x27c   :  { %v1496_v63 = vadd.f32 %v1495_v55, %v1453_v38 }
 0x27d   :  { %v1676_v46 = vpop.f32.mrf.mxu0  ;;  %v1745_v40 = vpop.f32.mrf.mxu1 }
 0x27e   :  { %v1783_v59 = vpop.f32.mrf.mxu2  ;;  %v1742_v54 = vadd.f32 %v1741_v2, %v1676_v46 }
 0x27f   :  { %v1825_v7 = vpop.f32.mrf.mxu3 }
 0x280   :  { %v1784_v8 = vadd.f32 %v1783_v59, %v1742_v54 }
 0x282   :  { %v1826_v14 = vadd.f32 %v1825_v7, %v1784_v8  ;;  %v8521_v8 = vld [vmem:[#allocation23_spill] sm:$0xff] }
 0x285   :  { %v1684_v16 = vpop.f32.mrf.mxu0  ;;  %v7350_v11 = vpop.f32.mrf.mxu1 }
 0x286   :  { %8508 = vst [vmem:[#allocation45_spill] sm:$0xff] %v7350_v11  ;;  %v718_v11 = vadd.f32 %v7199_v5, %v7203_v61  ;;  %v1205_v61 = vadd.f32 %v1204_v26, %v1154_v20  ;;  %v1788_v22 = vpop.f32.mrf.mxu2  ;;  %v1746_v9 = vadd.f32 %v1745_v40, %v1684_v16  ;;  %v1545_v16 = vadd.f32 %v7340_v57, %v1496_v63  ;;  %v8512_v57 = vld [vmem:[#allocation30_spill] sm:$0xff]  ;;  %v8514_v40 = vld [vmem:[#allocation39_spill] sm:$0xff] }
 0x287   :  { %v1831_v33 = vpop.f32.mrf.mxu3  ;;  %v1082_v55 = vadd.f32 %v8513_v28, %v8512_v57 }
 0x288   :  { %v779_v1 = vadd.f32 %v7201_v13, %v718_v11  ;;  %v726_v13 = vadd.f32 %v7215_v18, %v7221_v50  ;;  %v1242_v46 = vadd.f32 %v7310_v24, %v1205_v61  ;;  %v1414_v18 = vadd.f32 %v7330_v52, %v7326_v47  ;;  %v7397_v47 = vld [vmem:[%s8471_s4] ss:$0 sm:$0xff]  ;;  %s6668_s4 = smov 120  }
 0x289   :  { %v1166_v52 = vadd.f32 %v8511_v51, %v1122_v43 }
 0x28a   :  { %v822_v5 = vadd.f32 %v7258_v12, %v779_v1  ;;  %v1160_v12 = vadd.f32 %v7297_v15, %v1117_v58  ;;  %v783_v26 = vadd.f32 %v7219_v23, %v726_v13  ;;  %v1256_v24 = vadd.f32 %v1242_v46, %v947_v21  ;;  %v8522_v13 = vld [vmem:[#allocation25_spill] sm:$0xff]  ;;  %v8524_v21 = vld [vmem:[#allocation43_spill] sm:$0xff] }
 0x28b   :  { %v1458_v31 = vadd.f32 %v1457_v34, %v1414_v18  ;;  %v1789_v23 = vadd.f32 %v1788_v22, %v1746_v9  ;;  %v8510_v34 = vld [vmem:[#allocation21_spill] sm:$0xff]  ;;  %v1582_v1 = vadd.f32 %v8515_v4, %v1545_v16  ;;  %v1418_v58 = vadd.f32 %v8520_v62, %v8519_v10 }
 0x28c   :  { %v865_v32 = vadd.f32 %v7249_v6, %v822_v5  ;;  %v1209_v60 = vadd.f32 %v7318_v39, %v1160_v12  ;;  %v827_v2 = vadd.f32 %v7266_v53, %v783_v26  ;;  %v1592_v30 = vadd.f32 %v1578_v35, %v1256_v24  ;;  %v8518_v5 = vld [vmem:[#allocation34_spill] sm:$0xff]  ;;  %v8525_v22 = vld [vmem:[#allocation41_spill] sm:$0xff] }
 0x28d   :  { %v7360_v19 = vpop.f32.mrf.mxu0  ;;  %v7363_v3 = vpop.f32.mrf.mxu1  ;;  %v1502_v59 = vadd.f32 %v8514_v40, %v1458_v31  ;;  %v1832_v20 = vadd.f32 %v1831_v33, %v1789_v23  ;;  %v1213_v61 = vadd.f32 %v8518_v5, %v1166_v52  ;;  %v1463_v35 = vadd.f32 %v8525_v22, %v1418_v58  ;;  %v8526_v26 = vld [vmem:[#allocation33_spill] sm:$0xff]  ;;  %v8528_v24 = vld [vmem:[#allocation22_spill] sm:$0xff]  ;;  %v8530_v31 = vld [vmem:[#allocation44_spill] sm:$0xff] }
 0x28e   :  { %v914_v6 = vadd.f32 %v7262_v41, %v865_v32  ;;  %v734_v41 = vadd.f32 %v7234_v48, %v7240_v27  ;;  %v1246_v53 = vadd.f32 %v7316_v37, %v1209_v60  ;;  %v871_v44 = vadd.f32 %v8510_v34, %v827_v2  ;;  %v8516_v48 = vld [vmem:[#allocation45_spill] sm:$0xff]  ;;  %v8517_v37 = vld [vmem:[#allocation20_spill] sm:$0xff]  ;;  %v1793_v54 = vpop.f32.mrf.mxu2  ;;  %v8523_v32 = vld [vmem:[#allocation31_spill] sm:$0xff] }
 0x28f   :  { %v1750_v27 = vadd.f32 %v8516_v48, %v7360_v19  ;;  %v1127_v46 = vadd.f32 %v8523_v32, %v1082_v55  ;;  %v1549_v12 = vadd.f32 %v8524_v21, %v1502_v59  ;;  %v1837_v9 = vpop.f32.mrf.mxu3  ;;  %v1250_v18 = vadd.f32 %v8526_v26, %v1213_v61  ;;  %v8529_v2 = vld [vmem:[#allocation32_spill] sm:$0xff]  ;;  %v8533_v52 = vld [vmem:[#allocation26_spill] sm:$0xff]  ;;  %v8536_v48 = vld [vmem:[#allocation27_spill] sm:$0xff] }
 0x290   :  { %v951_v39 = vadd.f32 %v7264_v49, %v914_v6  ;;  %v787_v29 = vadd.f32 %v8517_v37, %v734_v41  ;;  %v918_v19 = vadd.f32 %v8521_v8, %v871_v44  ;;  %v8527_v6 = vld [vmem:[#allocation24_spill] sm:$0xff] }
 0x291   :  { %v1794_v63 = vadd.f32 %v1793_v54, %v1750_v27  ;;  %v1172_v43 = vadd.f32 %v8529_v2, %v1127_v46  ;;  %v1586_v33 = vadd.f32 %v8530_v31, %v1549_v12 }
 0x292   :  { %v1257_v42 = vadd.f32 %v1246_v53, %v951_v39  ;;  %v955_v60 = vadd.f32 %v8527_v6, %v918_v19 }
 0x293   :  { %v1838_v23 = vadd.f32 %v1837_v9, %v1794_v63 }
 0x294   :  { %v1593_v36 = vadd.f32 %v1582_v1, %v1257_v42  ;;  %v1258_v44 = vadd.f32 %v1250_v18, %v955_v60 }
 0x295   :  { %v7373_v56 = vpop.f32.mrf.mxu0  ;;  %v1913_v11 = vpop.f32.mrf.mxu1 }
 0x296   :  { %v1798_v28 = vpop.f32.mrf.mxu2 }
 0x29d   :  { %v1876_v50 = vpop.f32.mrf.mxu0  ;;  %v1917_v0 = vpop.f32.mrf.mxu1 }
 0x29e   :  { %v1877_v15 = vadd.f32 %v1876_v50, %v1826_v14 }
 0x2a0   :  { %v1914_v45 = vadd.f32 %v1913_v11, %v1877_v15  ;;  %v832_v11 = vadd.f32 %v8522_v13, %v787_v29 }
 0x2a2   :  { %v1928_v17 = vadd.f32 %v1914_v45, %v1592_v30  ;;  %v877_v15 = vadd.f32 %v8528_v24, %v832_v11  ;;  %v8531_v30 = vld [vmem:[#allocation40_spill] sm:$0xff]  ;;  %v1754_v45 = vadd.f32 %v7363_v3, %v7373_v56  ;;  %v1594_v3 = vadd.f32 %v1586_v33, %v1258_v44  ;;  %v8534_v56 = vld [vmem:[#allocation46_spill] sm:$0xff] }
 0x2a3   :  { %v1508_v16 = vadd.f32 %v8531_v30, %v1463_v35 }
 0x2a4   :  { %v7412_v49 = vadd.f32 %v7397_v47, %v1928_v17  ;;  %v8532_v17 = vld [vmem:[#allocation36_spill] sm:$0xff]  ;;  %v922_v57 = vadd.f32 %v8533_v52, %v877_v15  ;;  %v1799_v40 = vadd.f32 %v1798_v28, %v1754_v45 }
 0x2a5   :  { %v1880_v7 = vpop.f32.mrf.mxu0  ;;  %v1921_v39 = vpop.f32.mrf.mxu1  ;;  %v1217_v34 = vadd.f32 %v8532_v17, %v1172_v43  ;;  %v1553_v55 = vadd.f32 %v8534_v56, %v1508_v16 }
 0x2a6   :  { %v1881_v38 = vadd.f32 %v1880_v7, %v1832_v20  ;;  %1944 = vrot.lane.b32.xlu0 %v7412_v49, %s6668_s4  ;;  %v1843_v20 = vpop.f32.mrf.mxu3  ;;  %v959_v27 = vadd.f32 %v8536_v48, %v922_v57 }
 0x2a7   :  { %v1590_v37 = vadd.f32 %v7356_v25, %v1553_v55  ;;  %v1844_v29 = vadd.f32 %v1843_v20, %v1799_v40 }
 0x2a8   :  { %v1918_v14 = vadd.f32 %v1917_v0, %v1881_v38  ;;  %v8535_v0 = vld [vmem:[#allocation35_spill] sm:$0xff] }
 0x2a9   :  { %v1254_v4 = vadd.f32 %v8535_v0, %v1217_v34 }
 0x2aa   :  { %v1929_v50 = vadd.f32 %v1918_v14, %v1593_v36 }
 0x2ab   :  { %v1259_v5 = vadd.f32 %v1254_v4, %v959_v27 }
 0x2ac   :  { %v1937_v41 = vadd.f32 %v7397_v47, %v1929_v50 }
 0x2ad   :  { %v1884_v53 = vpop.f32.mrf.mxu0  ;;  %v1925_v10 = vpop.f32.mrf.mxu1  ;;  %v1595_v62 = vadd.f32 %v1590_v37, %v1259_v5 }
 0x2ae   :  { %v1885_v51 = vadd.f32 %v1884_v53, %v1838_v23  ;;  %1970 = vrot.lane.b32.xlu1 %v1937_v41, %s6669_s30  ;;  %1946 = vrot.lane.b32.xlu2 %v1937_v41, %s6668_s4  ;;  %v1975_v12 = vsel %vm1972_vm11, %v1937_v41, 0 }
 0x2af   :  { %1954 = vrot.lane.b32.xlu0 %v1937_v41, %s6670_s3  ;;  %v2007_v9 = vand.u32 4294901760, %v1975_v12 }
 0x2b0   :  { %v1922_v59 = vadd.f32 %v1921_v39, %v1885_v51 }
 0x2b1   :  { %v2008_v60 = vsub.f32 %v1975_v12, %v2007_v9 }
 0x2b2   :  { %v1930_v1 = vadd.f32 %v1922_v59, %v1594_v3 }
 0x2b3   :  { %v2009_v31 = vand.u32 4294901760, %v2008_v60 }
 0x2b4   :  { %v7444_v54 = vadd.f32 %v7397_v47, %v1930_v1 }
 0x2b5   :  { %v1888_v7 = vpop.f32.mrf.mxu0  ;;  %v2010_v16 = vsub.f32 %v2008_v60, %v2009_v31 }
 0x2b6   :  { %v1889_v61 = vadd.f32 %v1888_v7, %v1844_v29  ;;  %1968 = vrot.lane.b32.xlu2 %v7412_v49, %s6669_s30 }
 0x2b7   :  { %v2011_v45 = vand.u32 4294901760, %v2010_v16 }
 0x2b8   :  { %v1926_v58 = vadd.f32 %v1925_v10, %v1889_v61 }
 0x2ba   :  { %v1931_v42 = vadd.f32 %v1926_v58, %v1595_v62 }
 0x2bc   :  { %v7449_v38 = vadd.f32 %v7397_v47, %v1931_v42  ;;  %v1973_v47 = vsel %vm1972_vm11, %v7412_v49, 0 }
 0x2bd   :  { %v1999_v11 = vand.u32 4294901760, %v1973_v47 }
 0x2be   :  { %1952 = vrot.lane.b32.xlu2 %v7412_v49, %s6670_s3 }
 0x2bf   :  { %v2000_v46 = vsub.f32 %v1973_v47, %v1999_v11 }
 0x2c1   :  { %v2001_v14 = vand.u32 4294901760, %v2000_v46 }
 0x2c3   :  { %v2002_v6 = vsub.f32 %v2000_v46, %v2001_v14 }
 0x2c5   :  { %v2003_v43 = vand.u32 4294901760, %v2002_v6 }
 0x2c6   :  { %1962 = vrot.lane.b32.xlu2 %v1937_v41, %s6671_s12 }
 0x308   :  { %v7454_v25 = vpop.permute.xlu2 %1946 }
 0x309   :  { %2173 = vrot.lane.b32.xlu1 %v7454_v25, %s6669_s30  ;;  %v2177_v3 = vsel %vm1972_vm11, %v7454_v25, 0 }
 0x30a   :  { %v7493_v55 = vand.u32 4294901760, %v2177_v3 }
 0x30c   :  { %v2210_v1 = vsub.f32 %v2177_v3, %v7493_v55 }
 0x30e   :  { %v2211_v5 = vand.u32 4294901760, %v2210_v1 }
 0x310   :  { %v1969_v8 = vpop.permute.xlu2 %1968 }
 0x311   :  { %1960 = vrot.lane.b32.xlu1 %v7412_v49, %s6671_s12  ;;  %v1977_v32 = vsel %vm1972_vm11, %v1969_v8, 0 }
 0x312   :  { %v1997_v21 = vand.u32 4294901760, %v1977_v32 }
 0x314   :  { %v2037_v26 = vsub.f32 %v1977_v32, %v1997_v21 }
 0x316   :  { %v2038_v15 = vand.u32 4294901760, %v2037_v26 }
 0x318   :  { %v7462_v19 = vpop.permute.xlu2 %1952  ;;  %v1945_v13 = vpop.permute.xlu0 %1944  ;;  %v2039_v30 = vsub.f32 %v2037_v26, %v2038_v15 }
 0x319   :  { %2373 = vrot.lane.b32.xlu2 %v7462_v19, %s6669_s30  ;;  %2171 = vrot.lane.b32.xlu0 %v1945_v13, %s6669_s30  ;;  %v2175_v39 = vsel %vm1972_vm11, %v1945_v13, 0  ;;  %v2377_v37 = vsel %vm1972_vm11, %v7462_v19, 0 }
 0x31a   :  { %v2040_v23 = vand.u32 4294901760, %v2039_v30  ;;  %v7484_v34 = vand.u32 4294901760, %v2175_v39  ;;  %v7500_v10 = vand.u32 4294901760, %v2377_v37 }
 0x31c   :  { %v2202_v57 = vsub.f32 %v2175_v39, %v7484_v34 }
 0x31e   :  { %v2203_v56 = vand.u32 4294901760, %v2202_v57 }
 0x320   :  { %v1971_v36 = vpop.permute.xlu1 %1970  ;;  %v7469_v22 = vpop.permute.xlu2 %1962  ;;  %v2204_v59 = vsub.f32 %v2202_v57, %v2203_v56 }
 0x321   :  { %v1979_v35 = vsel %vm1972_vm11, %v1971_v36, 0  ;;  %v7472_v63 = vpop.permute.xlu0 %1954  ;;  %2868 = vrot.lane.b32.xlu2 %v1937_v41, %s6672_s13  ;;  %2577 = vrot.lane.b32.xlu1 %v7469_v22, %s6669_s30 }
 0x322   :  { %v1995_v18 = vand.u32 4294901760, %v1979_v35  ;;  %2375 = vrot.lane.b32.xlu0 %v7472_v63, %s6669_s30  ;;  %v2205_v29 = vand.u32 4294901760, %v2204_v59  ;;  %v2379_v12 = vsel %vm1972_vm11, %v7472_v63, 0 }
 0x324   :  { %v2031_v50 = vsub.f32 %v1979_v35, %v1995_v18  ;;  %1996 = vmatpush.xpose.msrb.mxu2 %v1995_v18  ;;  %2159 = vmatpush.xpose.msra.mxu1 %v1995_v18 }
 0x326   :  { %v2032_v24 = vand.u32 4294901760, %v2031_v50 }
 0x328   :  { %v2033_v2 = vsub.f32 %v2031_v50, %v2032_v24  ;;  %1998 = vmatpush.xpose.msrb.mxu2 %v1997_v21  ;;  %2130 = vmatpush.xpose.msra.mxu0 %v2032_v24 }
 0x329   :  { %2161 = vmatpush.xpose.msra.mxu1 %v1997_v21  ;;  %2866 = vrot.lane.b32.xlu1 %v7412_v49, %s6672_s13 }
 0x32a   :  { %v2034_v33 = vand.u32 4294901760, %v2033_v2 }
 0x32b   :  { %2004 = vmatmul.f32.vlgmr.msrb.gmra.mxu2 %v2003_v43 }
 0x32c   :  { %2067 = vmatpush.xpose.msra.mxu2 %v2031_v50  ;;  %2163 = vmatmul.f32.vlgmr.msra.gmra.mxu1 %v1999_v11  ;;  %v2411_v50 = vand.u32 4294901760, %v2379_v12 }
 0x32d   :  { %2035 = vmatpush.xpose.msrb.mxu3 %v2034_v33  ;;  %2134 = vmatpush.xpose.msra.mxu0 %v2038_v15 }
 0x32e   :  { %v2412_v43 = vsub.f32 %v2379_v12, %v2411_v50 }
 0x330   :  { %2070 = vmatpush.xpose.msra.mxu2 %v2037_v26  ;;  %2136 = vmatmul.f32.vlgmr.msra.gmra.mxu0 %v1999_v11  ;;  %v2413_v16 = vand.u32 4294901760, %v2412_v43 }
 0x331   :  { %2041 = vmatpush.xpose.msrb.mxu3 %v2040_v23  ;;  %3068 = vrot.lane.b32.xlu1 %v1945_v13, %s6672_s13  ;;  %v2212_v13 = vsub.f32 %v2210_v1, %v2211_v5 }
 0x333   :  { %2012 = vmatmul.f32.gmra.mxu2 %v2011_v45  ;;  %v2414_v45 = vsub.f32 %v2412_v43, %v2413_v16 }
 0x334   :  { %2043 = vmatmul.f32.vlgmr.msrb.gmra.mxu3 %v1999_v11  ;;  %2167 = vmatmul.f32.gmra.mxu1 %v2007_v9 }
 0x335   :  { %2097 = vmatpush.xpose.msra.mxu3 %v1995_v18 }
 0x338   :  { %2140 = vmatmul.f32.gmra.mxu0 %v2007_v9 }
 0x339   :  { %2099 = vmatpush.xpose.msra.mxu3 %v1997_v21  ;;  %v2404_v21 = vsub.f32 %v2377_v37, %v7500_v10 }
 0x33b   :  { %2073 = vmatmul.f32.vlgmr.msra.gmra.mxu2 %v2000_v46  ;;  %v2405_v18 = vand.u32 4294901760, %v2404_v21 }
 0x33c   :  { %2047 = vmatmul.f32.gmra.mxu3 %v2007_v9 }
 0x33d   :  { %v2406_v2 = vsub.f32 %v2404_v21, %v2405_v18 }
 0x33f   :  { %v2407_v30 = vand.u32 4294901760, %v2406_v2 }
 0x343   :  { %2078 = vmatmul.f32.gmra.mxu2 %v2008_v60 }
 0x344   :  { %2103 = vmatmul.f32.vlgmr.msra.gmra.mxu3 %v2001_v14  ;;  %v2213_v14 = vand.u32 4294901760, %v2212_v13 }
 0x34c   :  { %2109 = vmatmul.f32.gmra.mxu3 %v2009_v31 }
 0x373   :  { %v2374_v0 = vpop.permute.xlu2 %2373 }
 0x374   :  { %v2381_v48 = vsel %vm1972_vm11, %v2374_v0, 0 }
 0x375   :  { %v2401_v61 = vand.u32 4294901760, %v2381_v48 }
 0x377   :  { %v2441_v11 = vsub.f32 %v2381_v48, %v2401_v61 }
 0x379   :  { %v2442_v26 = vand.u32 4294901760, %v2441_v11 }
 0x37b   :  { %v2174_v49 = vpop.permute.xlu1 %2173  ;;  %v2443_v15 = vsub.f32 %v2441_v11, %v2442_v26 }
 0x37c   :  { %v2181_v41 = vsel %vm1972_vm11, %v2174_v49, 0 }
 0x37d   :  { %v2197_v53 = vand.u32 4294901760, %v2181_v41  ;;  %v2444_v33 = vand.u32 4294901760, %v2443_v15 }
 0x37f   :  { %v2233_v17 = vsub.f32 %v2181_v41, %v2197_v53  ;;  %2198 = vmatpush.xpose.msrb.mxu2 %v2197_v53  ;;  %2299 = vmatpush.xpose.msrb.mxu1 %v2197_v53  ;;  %v2415_v41 = vand.u32 4294901760, %v2414_v45 }
 0x381   :  { %v2234_v44 = vand.u32 4294901760, %v2233_v17  ;;  %2269 = vmatpush.xpose.msrb.mxu0 %v2233_v17 }
 0x383   :  { %v2235_v51 = vsub.f32 %v2233_v17, %v2234_v44  ;;  %v7486_v52 = vpop.permute.xlu1 %1960 }
 0x384   :  { %2575 = vrot.lane.b32.xlu0 %v7486_v52, %s6669_s30 }
 0x385   :  { %v2236_v28 = vand.u32 4294901760, %v2235_v51 }
 0x387   :  { %2237 = vmatpush.xpose.msrb.mxu3 %v2236_v28 }
 0x38b   :  { %v2172_v40 = vpop.permute.xlu0 %2171 }
 0x38c   :  { %v2179_v4 = vsel %vm1972_vm11, %v2172_v40, 0 }
 0x38d   :  { %v2199_v20 = vand.u32 4294901760, %v2179_v4 }
 0x38f   :  { %v2239_v27 = vsub.f32 %v2179_v4, %v2199_v20  ;;  %2200 = vmatpush.xpose.msrb.mxu2 %v2199_v20  ;;  %2301 = vmatpush.xpose.msrb.mxu1 %v2199_v20 }
 0x391   :  { %2272 = vmatpush.xpose.msrb.mxu0 %v2239_v27  ;;  %v2240_v7 = vand.u32 4294901760, %v2239_v27 }
 0x392   :  { %2206 = vmatmul.f32.vlgmr.msrb.gmra.mxu2 %v2205_v29  ;;  %2305 = vmatmul.f32.vlgmr.msrb.gmra.mxu1 %v2203_v56 }
 0x393   :  { %2332 = vmatpush.xpose.msra.mxu2 %v2234_v44  ;;  %v2578_v62 = vpop.permute.xlu1 %2577  ;;  %v2241_v58 = vsub.f32 %v2239_v27, %v2240_v7 }
 0x394   :  { %v2376_v42 = vpop.permute.xlu0 %2375  ;;  %2275 = vmatmul.f32.vlgmr.msrb.gmra.mxu0 %v2202_v57  ;;  %v2585_v32 = vsel %vm1972_vm11, %v2578_v62, 0  ;;  %v2579_v62 = vsel %vm1972_vm11, %v7486_v52, 0 }
 0x395   :  { %v2383_v8 = vsel %vm1972_vm11, %v2376_v42, 0  ;;  %v2242_v47 = vand.u32 4294901760, %v2241_v58  ;;  %v7507_v35 = vand.u32 4294901760, %v2585_v32 }
 0x396   :  { %v2399_v46 = vand.u32 4294901760, %v2383_v8 }
 0x397   :  { %2336 = vmatpush.xpose.msra.mxu2 %v2240_v7  ;;  %2243 = vmatpush.xpose.msrb.mxu3 %v2242_v47  ;;  %v7511_v60 = vsub.f32 %v2585_v32, %v7507_v35  ;;  %v2581_v32 = vsel %vm1972_vm11, %v7469_v22, 0 }
 0x398   :  { %v2435_v36 = vsub.f32 %v2383_v8, %v2399_v46  ;;  %2400 = vmatpush.xpose.msra.mxu0 %v2399_v46  ;;  %v2605_v8 = vand.u32 4294901760, %v2579_v62  ;;  %v2613_v12 = vand.u32 4294901760, %v2581_v32 }
 0x399   :  { %v2638_v31 = vand.u32 4294901760, %v7511_v60 }
 0x39a   :  { %v2436_v9 = vand.u32 4294901760, %v2435_v36  ;;  %2245 = vmatmul.f32.vlgmr.msrb.gmra.mxu3 %v7484_v34  ;;  %2214 = vmatmul.f32.gmra.mxu2 %v2213_v14 }
 0x39b   :  { %2361 = vmatpush.xpose.msra.mxu3 %v2197_v53  ;;  %2471 = vmatpush.xpose.msrb.mxu2 %v2435_v36  ;;  %v2639_v23 = vsub.f32 %v7511_v60, %v2638_v31  ;;  %v2867_v42 = vpop.permute.xlu1 %2866 }
 0x39c   :  { %2311 = vmatmul.f32.gmra.mxu1 %v2211_v5  ;;  %v2437_v6 = vsub.f32 %v2435_v36, %v2436_v9  ;;  %2402 = vmatpush.xpose.msra.mxu0 %v2401_v61  ;;  %v2894_v47 = vand.u32 4294901760, %v2867_v42 }
 0x39d   :  { %2280 = vmatmul.f32.gmra.mxu0 %v2210_v1  ;;  %v2640_v49 = vand.u32 4294901760, %v2639_v23 }
 0x39e   :  { %v2438_v24 = vand.u32 4294901760, %v2437_v6 }
 0x39f   :  { %2363 = vmatpush.xpose.msra.mxu3 %v2199_v20  ;;  %2474 = vmatpush.xpose.msrb.mxu2 %v2441_v11  ;;  %v2606_v11 = vsub.f32 %v2579_v62, %v2605_v8 }
 0x3a0   :  { %2534 = vmatpush.xpose.msrb.mxu0 %v2436_v9  ;;  %2439 = vmatpush.xpose.msra.mxu1 %v2438_v24 }
 0x3a1   :  { %v2607_v36 = vand.u32 4294901760, %v2606_v11 }
 0x3a2   :  { %2249 = vmatmul.f32.gmra.mxu3 %v7493_v55  ;;  %2338 = vmatmul.f32.vlgmr.msra.gmra.mxu2 %v7484_v34 }
 0x3a3   :  { %2501 = vmatpush.xpose.msrb.mxu3 %v2399_v46  ;;  %2602 = vmatpush.xpose.msra.mxu2 %v7507_v35 }
 0x3a4   :  { %2538 = vmatpush.xpose.msrb.mxu0 %v2442_v26  ;;  %2445 = vmatpush.xpose.msra.mxu1 %v2444_v33 }
 0x3a5   :  { %2408 = vmatmul.f32.vlgmr.msra.gmra.mxu0 %v2407_v30 }
 0x3a7   :  { %2503 = vmatpush.xpose.msrb.mxu3 %v2401_v61  ;;  %2447 = vmatmul.f32.vlgmr.msra.gmra.mxu1 %v7500_v10 }
 0x3a8   :  { %2563 = vmatpush.xpose.msrb.mxu1 %v2399_v46  ;;  %2673 = vmatpush.xpose.msra.mxu0 %v7511_v60  ;;  %v2934_v46 = vsub.f32 %v2867_v42, %v2894_v47 }
 0x3aa   :  { %2365 = vmatmul.f32.vlgmr.msra.gmra.mxu3 %v7484_v34  ;;  %2342 = vmatmul.f32.gmra.mxu2 %v7493_v55  ;;  %v2935_v14 = vand.u32 4294901760, %v2934_v46 }
 0x3ab   :  { %2641 = vmatpush.xpose.msra.mxu3 %v2640_v49 }
 0x3ac   :  { %2565 = vmatpush.xpose.msrb.mxu1 %v2401_v61  ;;  %v2936_v24 = vsub.f32 %v2934_v46, %v2935_v14 }
 0x3ad   :  { %2416 = vmatmul.f32.gmra.mxu0 %v2415_v41  ;;  %v2137_v28 = vpop.f32.mrf.mxu0 }
 0x3ae   :  { %v2005_v39 = vpop.f32.mrf.mxu2  ;;  %v2937_v30 = vand.u32 4294901760, %v2936_v24 }
 0x3af   :  { %2451 = vmatmul.f32.gmra.mxu1 %v2411_v50 }
 0x3b0   :  { %2703 = vmatpush.xpose.msra.mxu1 %v7507_v35 }
 0x3b2   :  { %2369 = vmatmul.f32.gmra.mxu3 %v7493_v55  ;;  %2477 = vmatmul.f32.vlgmr.msrb.gmra.mxu2 %v2404_v21  ;;  %v2164_v55 = vpop.f32.mrf.mxu1 }
 0x3b5   :  { %2540 = vmatmul.f32.vlgmr.msrb.gmra.mxu0 %v7500_v10  ;;  %v2141_v37 = vpop.f32.mrf.mxu0 }
 0x3b6   :  { %v2013_v53 = vpop.f32.mrf.mxu2 }
 0x3b7   :  { %v2044_v17 = vpop.f32.mrf.mxu3  ;;  %2567 = vmatmul.f32.vlgmr.msrb.gmra.mxu1 %v7500_v10  ;;  %v2869_v10 = vpop.permute.xlu2 %2868 }
 0x3b8   :  { %v2045_v51 = vadd.f32 %v2044_v17, %v2005_v39  ;;  %v2892_v58 = vand.u32 4294901760, %v2869_v10 }
 0x3ba   :  { %2507 = vmatmul.f32.vlgmr.msrb.gmra.mxu3 %v2405_v18  ;;  %2482 = vmatmul.f32.gmra.mxu2 %v2412_v43  ;;  %v2168_v7 = vpop.f32.mrf.mxu1  ;;  %v2928_v13 = vsub.f32 %v2869_v10, %v2892_v58  ;;  %v2608_v18 = vsub.f32 %v2606_v11, %v2607_v36 }
 0x3bc   :  { %v2929_v21 = vand.u32 4294901760, %v2928_v13  ;;  %v2609_v43 = vand.u32 4294901760, %v2608_v18 }
 0x3bd   :  { %2544 = vmatmul.f32.gmra.mxu0 %v2411_v50 }
 0x3be   :  { %v2074_v44 = vpop.f32.mrf.mxu2  ;;  %v2930_v9 = vsub.f32 %v2928_v13, %v2929_v21 }
 0x3bf   :  { %v2048_v34 = vpop.f32.mrf.mxu3  ;;  %2571 = vmatmul.f32.gmra.mxu1 %v2411_v50  ;;  %v2075_v57 = vadd.f32 %v2074_v44, %v2045_v51 }
 0x3c0   :  { %v2049_v0 = vadd.f32 %v2048_v34, %v2013_v53  ;;  %v2931_v15 = vand.u32 4294901760, %v2930_v9 }
 0x3c2   :  { %2513 = vmatmul.f32.gmra.mxu3 %v2413_v16 }
 0x3c6   :  { %v2079_v59 = vpop.f32.mrf.mxu2 }
 0x3c7   :  { %v2104_v3 = vpop.f32.mrf.mxu3  ;;  %v2080_v1 = vadd.f32 %v2079_v59, %v2049_v0 }
 0x3c8   :  { %v2105_v56 = vadd.f32 %v2104_v3, %v2075_v57 }
 0x3ca   :  { %v2138_v40 = vadd.f32 %v2137_v28, %v2105_v56 }
 0x3cc   :  { %v7528_v4 = vadd.f32 %v2164_v55, %v2138_v40 }
 0x3ce   :  { %v2778_v20 = vsel %vm2777_vm12, %v7528_v4, -inf }
 0x3cf   :  { %v2110_v48 = vpop.f32.mrf.mxu3  ;;  %2779 = vmax.xlane.f32.xlu2 %v2778_v20 }
 0x3d0   :  { %v2111_v27 = vadd.f32 %v2110_v48, %v2080_v1 }
 0x3d2   :  { %v2142_v29 = vadd.f32 %v2141_v37, %v2111_v27 }
 0x3d4   :  { %v7532_v5 = vadd.f32 %v2168_v7, %v2142_v29 }
 0x3d6   :  { %v2781_v61 = vsel %vm2777_vm12, %v7532_v5, -inf }
 0x3d7   :  { %2782 = vmax.xlane.f32.xlu1 %v2781_v61 }
 0x3e7   :  { %3070 = vrot.lane.b32.xlu2 %v7454_v25, %s6672_s13  ;;  %v2614_v25 = vsub.f32 %v2581_v32, %v2613_v12 }
 0x3e9   :  { %v2615_v33 = vand.u32 4294901760, %v2614_v25 }
 0x3eb   :  { %v2616_v45 = vsub.f32 %v2614_v25, %v2615_v33 }
 0x3ed   :  { %v2617_v60 = vand.u32 4294901760, %v2616_v45 }
 0x3f6   :  { %v2576_v26 = vpop.permute.xlu0 %2575 }
 0x3f7   :  { %v2583_v50 = vsel %vm1972_vm11, %v2576_v26, 0 }
 0x3f8   :  { %v2603_v6 = vand.u32 4294901760, %v2583_v50 }
 0x3fa   :  { %v2643_v2 = vsub.f32 %v2583_v50, %v2603_v6  ;;  %2604 = vmatpush.xpose.msra.mxu2 %v2603_v6  ;;  %2705 = vmatpush.xpose.msra.mxu1 %v2603_v6 }
 0x3fc   :  { %2676 = vmatpush.xpose.msra.mxu0 %v2643_v2  ;;  %v2644_v16 = vand.u32 4294901760, %v2643_v2 }
 0x3fd   :  { %2610 = vmatmul.f32.vlgmr.msra.gmra.mxu2 %v2609_v43  ;;  %2709 = vmatmul.f32.vlgmr.msra.gmra.mxu1 %v2607_v36 }
 0x3fe   :  { %2736 = vmatpush.xpose.msrb.mxu2 %v2638_v31  ;;  %2932 = vmatpush.msrb.mxu1 %v2931_v15  ;;  %v2645_v23 = vsub.f32 %v2643_v2, %v2644_v16 }
 0x3ff   :  { %2679 = vmatmul.f32.vlgmr.msra.gmra.mxu0 %v2606_v11 }
 0x400   :  { %2893 = vmatpush.msrb.mxu0 %v2892_v58  ;;  %2938 = vmatpush.msrb.mxu1 %v2937_v30  ;;  %v2646_v49 = vand.u32 4294901760, %v2645_v23 }
 0x402   :  { %3056 = vmatpush.msra.mxu1 %v2892_v58  ;;  %2740 = vmatpush.xpose.msrb.mxu2 %v2644_v16 }
 0x403   :  { %2895 = vmatpush.msrb.mxu0 %v2894_v47  ;;  %2647 = vmatpush.xpose.msra.mxu3 %v2646_v49 }
 0x404   :  { %3058 = vmatpush.msra.mxu1 %v2894_v47 }
 0x405   :  { %3027 = vmatpush.msra.mxu0 %v2929_v21  ;;  %2618 = vmatmul.f32.gmra.mxu2 %v2617_v60  ;;  %v3069_v21 = vpop.permute.xlu1 %3068 }
 0x406   :  { %2964 = vmatpush.msra.mxu2 %v2928_v13  ;;  %2649 = vmatmul.f32.vlgmr.msra.gmra.mxu3 %v2605_v8  ;;  %v7557_v18 = vand.u32 4294901760, %v3069_v21 }
 0x407   :  { %3031 = vmatpush.msra.mxu0 %v2935_v14  ;;  %2765 = vmatpush.xpose.msrb.mxu3 %v7507_v35 }
 0x408   :  { %2967 = vmatpush.msra.mxu2 %v2934_v46  ;;  %2715 = vmatmul.f32.gmra.mxu1 %v2615_v33  ;;  %v7562_v33 = vsub.f32 %v3069_v21, %v7557_v18 }
 0x409   :  { %2684 = vmatmul.f32.gmra.mxu0 %v2614_v25 }
 0x40b   :  { %2767 = vmatpush.xpose.msrb.mxu3 %v2603_v6 }
 0x40d   :  { %2742 = vmatmul.f32.vlgmr.msrb.gmra.mxu2 %v2605_v8 }
 0x40e   :  { %2653 = vmatmul.f32.gmra.mxu3 %v2613_v12 }
 0x40f   :  { %2994 = vmatpush.msra.mxu3 %v2892_v58  ;;  %v2306_v39 = vpop.f32.mrf.mxu1 }
 0x411   :  { %2996 = vmatpush.msra.mxu3 %v2894_v47  ;;  %v2276_v31 = vpop.f32.mrf.mxu0 }
 0x415   :  { %v2207_v41 = vpop.f32.mrf.mxu2  ;;  %2746 = vmatmul.f32.gmra.mxu2 %v2613_v12 }
 0x416   :  { %2769 = vmatmul.f32.vlgmr.msrb.gmra.mxu3 %v2605_v8 }
 0x419   :  { %v2312_v44 = vpop.f32.mrf.mxu1 }
 0x41a   :  { %v2281_v34 = vpop.f32.mrf.mxu0 }
 0x41d   :  { %v2246_v53 = vpop.f32.mrf.mxu3  ;;  %v2215_v17 = vpop.f32.mrf.mxu2 }
 0x41e   :  { %2773 = vmatmul.f32.gmra.mxu3 %v2613_v12  ;;  %v2247_v35 = vadd.f32 %v2246_v53, %v2207_v41  ;;  %v3137_v41 = vand.u32 4294901760, %v7562_v33 }
 0x420   :  { %v2277_v57 = vadd.f32 %v2276_v31, %v2247_v35  ;;  %v3138_v35 = vsub.f32 %v7562_v33, %v3137_v41 }
 0x422   :  { %v2409_v3 = vpop.f32.mrf.mxu0  ;;  %v2307_v40 = vadd.f32 %v2306_v39, %v2277_v57 }
 0x424   :  { %v2448_v56 = vpop.f32.mrf.mxu1 }
 0x425   :  { %v2250_v51 = vpop.f32.mrf.mxu3  ;;  %v2339_v28 = vpop.f32.mrf.mxu2  ;;  %v2449_v8 = vadd.f32 %v2448_v56, %v2409_v3 }
 0x426   :  { %v2251_v55 = vadd.f32 %v2250_v51, %v2215_v17  ;;  %v2340_v59 = vadd.f32 %v2339_v28, %v2307_v40  ;;  %v3139_v28 = vand.u32 4294901760, %v3138_v35 }
 0x428   :  { %v2282_v1 = vadd.f32 %v2281_v34, %v2251_v55 }
 0x42a   :  { %v2313_v37 = vadd.f32 %v2312_v44, %v2282_v1  ;;  %v2417_v29 = vpop.f32.mrf.mxu0 }
 0x42c   :  { %v2452_v7 = vpop.f32.mrf.mxu1 }
 0x42d   :  { %v2366_v0 = vpop.f32.mrf.mxu3  ;;  %v2343_v20 = vpop.f32.mrf.mxu2  ;;  %v2453_v9 = vadd.f32 %v2452_v7, %v2417_v29 }
 0x42e   :  { %v7546_v48 = vadd.f32 %v2366_v0, %v2340_v59  ;;  %v2344_v61 = vadd.f32 %v2343_v20, %v2313_v37 }
 0x430   :  { %v2784_v27 = vsel %vm2777_vm12, %v7546_v48, -inf }
 0x431   :  { %2785 = vmax.xlane.f32.xlu0 %v2784_v27 }
 0x432   :  { %v2541_v13 = vpop.f32.mrf.mxu0 }
 0x434   :  { %v2568_v32 = vpop.f32.mrf.mxu1 }
 0x435   :  { %v2370_v10 = vpop.f32.mrf.mxu3  ;;  %v2478_v58 = vpop.f32.mrf.mxu2 }
 0x436   :  { %v7550_v62 = vadd.f32 %v2370_v10, %v2344_v61  ;;  %v2479_v47 = vadd.f32 %v2478_v58, %v2449_v8 }
 0x438   :  { %v2787_v42 = vsel %vm2777_vm12, %v7550_v62, -inf }
 0x439   :  { %2788 = vmax.xlane.f32.xlu2 %v2787_v42 }
 0x43a   :  { %v2545_v43 = vpop.f32.mrf.mxu0 }
 0x43c   :  { %v2572_v30 = vpop.f32.mrf.mxu1 }
 0x43d   :  { %v2508_v11 = vpop.f32.mrf.mxu3  ;;  %v2483_v36 = vpop.f32.mrf.mxu2 }
 0x43e   :  { %v2509_v46 = vadd.f32 %v2508_v11, %v2479_v47  ;;  %v2484_v50 = vadd.f32 %v2483_v36, %v2453_v9 }
 0x440   :  { %v2542_v12 = vadd.f32 %v2541_v13, %v2509_v46 }
 0x442   :  { %v2780_v14 = vpop.xlane.xlu2 %2779  ;;  %v7555_v25 = vadd.f32 %v2568_v32, %v2542_v12 }
 0x443   :  { %v2802_v26 = vsub.f32 %v7528_v4, %v2780_v14 }
 0x444   :  { %v2790_v24 = vsel %vm2777_vm12, %v7555_v25, -inf }
 0x445   :  { %v2810_v6 = vmul.f32 1.442695, %v2802_v26  ;;  %v2514_v15 = vpop.f32.mrf.mxu3  ;;  %2791 = vmax.xlane.f32.xlu1 %v2790_v24 }
 0x446   :  { %v2515_v2 = vadd.f32 %v2514_v15, %v2484_v50 }
 0x447   :  { %6395 = vpow2.f32 %v2810_v6 }
 0x448   :  { %v2546_v16 = vadd.f32 %v2545_v43, %v2515_v2 }
 0x44a   :  { %v3071_v4 = vpop.permute.xlu2 %3070  ;;  %v2783_v23 = vpop.xlane.xlu1 %2782  ;;  %v7567_v60 = vadd.f32 %v2572_v30, %v2546_v16 }
 0x44b   :  { %v7564_v45 = vand.u32 4294901760, %v3071_v4  ;;  %v2803_v49 = vsub.f32 %v7532_v5, %v2783_v23 }
 0x44c   :  { %v2793_v17 = vsel %vm2777_vm12, %v7567_v60, -inf }
 0x44d   :  { %v7569_v31 = vpop.eup %6395  ;;  %v7573_v39 = vsub.f32 %v3071_v4, %v7564_v45  ;;  %v2812_v53 = vmul.f32 1.442695, %v2803_v49  ;;  %3095 = vmatpush.msrb.mxu2 %v7564_v45  ;;  %2794 = vmax.xlane.f32.xlu2 %v2793_v17 }
 0x44e   :  { %v2826_v34 = vsel %vm2777_vm12, %v7569_v31, 0.0 }
 0x44f   :  { %v3131_v5 = vand.u32 4294901760, %v7573_v39  ;;  %6397 = vpow2.f32 %v2812_v53  ;;  %2827 = vadd.xlane.f32.xlu0 %v2826_v34  ;;  %3097 = vmatpush.msrb.mxu2 %v7557_v18 }
 0x451   :  { %v3132_v44 = vsub.f32 %v7573_v39, %v3131_v5 }
 0x453   :  { %v3133_v51 = vand.u32 4294901760, %v3132_v44 }
 0x455   :  { %v7588_v57 = vpop.eup %6397  ;;  %3134 = vmatpush.msrb.mxu3 %v3133_v51 }
 0x456   :  { %v2829_v3 = vsel %vm2777_vm12, %v7588_v57, 0.0 }
 0x457   :  { %3140 = vmatpush.msrb.mxu3 %v3139_v28  ;;  %2830 = vadd.xlane.f32.xlu1 %v2829_v3 }
 0x463   :  { %3270 = vrot.lane.b32.xlu0 %v7462_v19, %s6672_s13 }
 0x465   :  { %3474 = vrot.lane.b32.xlu2 %v7469_v22, %s6672_s13 }
 0x470   :  { %3272 = vrot.lane.b32.xlu1 %v7472_v63, %s6672_s13 }
 0x47a   :  { %v2710_v27 = vpop.f32.mrf.mxu1 }
 0x47c   :  { %v2680_v0 = vpop.f32.mrf.mxu0 }
 0x480   :  { %v2611_v56 = vpop.f32.mrf.mxu2 }
 0x485   :  { %v2716_v63 = vpop.f32.mrf.mxu1 }
 0x486   :  { %v2685_v10 = vpop.f32.mrf.mxu0 }
 0x488   :  { %v2619_v55 = vpop.f32.mrf.mxu2 }
 0x489   :  { %v2650_v40 = vpop.f32.mrf.mxu3 }
 0x48a   :  { %v2651_v59 = vadd.f32 %v2650_v40, %v2611_v56 }
 0x48c   :  { %v2681_v20 = vadd.f32 %v2680_v0, %v2651_v59 }
 0x48e   :  { %v2711_v7 = vadd.f32 %v2710_v27, %v2681_v20 }
 0x490   :  { %v2743_v37 = vpop.f32.mrf.mxu2 }
 0x491   :  { %v2654_v1 = vpop.f32.mrf.mxu3  ;;  %v2744_v61 = vadd.f32 %v2743_v37, %v2711_v7 }
 0x492   :  { %v2655_v29 = vadd.f32 %v2654_v1, %v2619_v55 }
 0x494   :  { %v2686_v58 = vadd.f32 %v2685_v10, %v2655_v29 }
 0x496   :  { %v2717_v47 = vadd.f32 %v2716_v63, %v2686_v58 }
 0x498   :  { %v2747_v8 = vpop.f32.mrf.mxu2 }
 0x499   :  { %v2770_v19 = vpop.f32.mrf.mxu3  ;;  %v2748_v13 = vadd.f32 %v2747_v8, %v2717_v47 }
 0x49a   :  { %v7598_v42 = vadd.f32 %v2770_v19, %v2744_v61 }
 0x49c   :  { %v2796_v22 = vsel %vm2777_vm12, %v7598_v42, -inf }
 0x49d   :  { %2797 = vmax.xlane.f32.xlu0 %v2796_v22 }
 0x4a1   :  { %v2774_v11 = vpop.f32.mrf.mxu3 }
 0x4a2   :  { %v7602_v32 = vadd.f32 %v2774_v11, %v2748_v13 }
 0x4a4   :  { %v2799_v46 = vsel %vm2777_vm12, %v7602_v32, -inf  ;;  %v2786_v21 = vpop.xlane.xlu0 %2785 }
 0x4a5   :  { %2800 = vmax.xlane.f32.xlu0 %v2799_v46  ;;  %v2804_v12 = vsub.f32 %v7546_v48, %v2786_v21 }
 0x4a7   :  { %v2814_v36 = vmul.f32 1.442695, %v2804_v12 }
 0x4a9   :  { %6399 = vpow2.f32 %v2814_v36 }
 0x4ac   :  { %v2789_v14 = vpop.xlane.xlu2 %2788 }
 0x4ad   :  { %v2805_v9 = vsub.f32 %v7550_v62, %v2789_v14 }
 0x4af   :  { %v7608_v26 = vpop.eup %6399  ;;  %v2816_v50 = vmul.f32 1.442695, %v2805_v9 }
 0x4b0   :  { %v2832_v6 = vsel %vm2777_vm12, %v7608_v26, 0.0 }
 0x4b1   :  { %6401 = vpow2.f32 %v2816_v50  ;;  %2833 = vadd.xlane.f32.xlu0 %v2832_v6 }
 0x4b7   :  { %v7612_v24 = vpop.eup %6401 }
 0x4b8   :  { %v2792_v15 = vpop.xlane.xlu1 %2791  ;;  %v2835_v2 = vsel %vm2777_vm12, %v7612_v24, 0.0 }
 0x4b9   :  { %v2806_v48 = vsub.f32 %v7555_v25, %v2792_v15  ;;  %2836 = vadd.xlane.f32.xlu0 %v2835_v2 }
 0x4bb   :  { %v2818_v43 = vmul.f32 1.442695, %v2806_v48 }
 0x4bd   :  { %6403 = vpow2.f32 %v2818_v43 }
 0x4c0   :  { %v2795_v62 = vpop.xlane.xlu2 %2794 }
 0x4c1   :  { %v2807_v30 = vsub.f32 %v7567_v60, %v2795_v62 }
 0x4c2   :  { %v2828_v16 = vpop.xlane.xlu0 %2827 }
 0x4c3   :  { %6405 = vrcp.f32 %v2828_v16  ;;  %v7618_v4 = vpop.eup %6403  ;;  %v2820_v23 = vmul.f32 1.442695, %v2807_v30 }
 0x4c4   :  { %v2838_v49 = vsel %vm2777_vm12, %v7618_v4, 0.0 }
 0x4c5   :  { %6407 = vpow2.f32 %v2820_v23  ;;  %2839 = vadd.xlane.f32.xlu0 %v2838_v49 }
 0x4c8   :  { %v3475_v14 = vpop.permute.xlu2 %3474 }
 0x4c9   :  { %v6406_v53 = vpop.eup %6405  ;;  %v7670_v6 = vand.u32 4294901760, %v3475_v14 }
 0x4ca   :  { %v2858_v17 = vmul.f32 %v6406_v53, %v7569_v31  ;;  %v2831_v25 = vpop.xlane.xlu1 %2830 }
 0x4cb   :  { %6409 = vrcp.f32 %v2831_v25  ;;  %v7623_v34 = vpop.eup %6407  ;;  %v7673_v43 = vsub.f32 %v3475_v14, %v7670_v6 }
 0x4cc   :  { %v2873_v44 = vsel %vm2777_vm12, %v2858_v17, 0  ;;  %v2841_v35 = vsel %vm2777_vm12, %v7623_v34, 0.0 }
 0x4cd   :  { %v2896_v60 = vand.u32 4294901760, %v2873_v44  ;;  %2842 = vadd.xlane.f32.xlu2 %v2841_v35  ;;  %v3535_v49 = vand.u32 4294901760, %v7673_v43 }
 0x4cf   :  { %v2897_v51 = vsub.f32 %v2873_v44, %v2896_v60  ;;  %2940 = vmatmul.f32.vlgmr.msrb.gmra.mxu1 %v2896_v60  ;;  %v3536_v17 = vsub.f32 %v7673_v43, %v3535_v49 }
 0x4d0   :  { %3196 = vmatpush.msrb.mxu1 %v7564_v45 }
 0x4d1   :  { %v6410_v28 = vpop.eup %6409  ;;  %2970 = vmatmul.f32.vlgmr.msra.gmra.mxu2 %v2897_v51  ;;  %v2898_v3 = vand.u32 4294901760, %v2897_v51  ;;  %v3537_v35 = vand.u32 4294901760, %v3536_v17 }
 0x4d2   :  { %v2859_v31 = vmul.f32 %v6410_v28, %v7588_v57  ;;  %3198 = vmatpush.msrb.mxu1 %v7557_v18  ;;  %3229 = vmatpush.msra.mxu2 %v3131_v5 }
 0x4d3   :  { %3000 = vmatmul.f32.vlgmr.msra.gmra.mxu3 %v2898_v3  ;;  %v2899_v56 = vsub.f32 %v2897_v51, %v2898_v3 }
 0x4d4   :  { %3233 = vmatpush.msra.mxu2 %v3137_v41  ;;  %3258 = vmatpush.msra.mxu3 %v7564_v45  ;;  %v2876_v55 = vsel %vm2777_vm12, %v2859_v31, 0 }
 0x4d5   :  { %v2900_v40 = vand.u32 4294901760, %v2899_v56  ;;  %v2904_v59 = vand.u32 4294901760, %v2876_v55  ;;  %v3271_v0 = vpop.permute.xlu0 %3270 }
 0x4d6   :  { %3260 = vmatpush.msra.mxu3 %v7557_v18  ;;  %v7640_v1 = vand.u32 4294901760, %v3271_v0 }
 0x4d7   :  { %2901 = vmatmul.f32.vlgmr.msrb.gmra.mxu0 %v2900_v40  ;;  %2944 = vmatmul.f32.gmra.mxu1 %v2904_v59  ;;  %v2905_v57 = vsub.f32 %v2876_v55, %v2904_v59 }
 0x4d8   :  { %3166 = vmatpush.msrb.mxu0 %v7573_v39  ;;  %v7643_v20 = vsub.f32 %v3271_v0, %v7640_v1 }
 0x4d9   :  { %2975 = vmatmul.f32.gmra.mxu2 %v2905_v57  ;;  %v2906_v5 = vand.u32 4294901760, %v2905_v57 }
 0x4da   :  { %3169 = vmatpush.msrb.mxu0 %v7562_v33  ;;  %v3339_v37 = vand.u32 4294901760, %v7643_v20 }
 0x4db   :  { %3006 = vmatmul.f32.gmra.mxu3 %v2906_v5  ;;  %v2907_v41 = vsub.f32 %v2905_v57, %v2906_v5 }
 0x4dc   :  { %v3340_v7 = vsub.f32 %v7643_v20, %v3339_v37 }
 0x4dd   :  { %v2908_v45 = vand.u32 4294901760, %v2907_v41 }
 0x4de   :  { %v3341_v10 = vand.u32 4294901760, %v3340_v7 }
 0x4df   :  { %2909 = vmatmul.f32.gmra.mxu0 %v2908_v45  ;;  %3060 = vmatmul.f32.vlgmr.msra.gmra.mxu1 %v2896_v60 }
 0x4e2   :  { %v3273_v18 = vpop.permute.xlu1 %3272 }
 0x4e3   :  { %v3296_v27 = vand.u32 4294901760, %v3273_v18 }
 0x4e5   :  { %v7646_v39 = vsub.f32 %v3273_v18, %v3296_v27  ;;  %1950 = vrot.lane.b32.xlu2 %v7449_v38, %s6668_s4 }
 0x4e7   :  { %v3333_v33 = vand.u32 4294901760, %v7646_v39  ;;  %3033 = vmatmul.f32.vlgmr.msra.gmra.mxu0 %v2896_v60  ;;  %3064 = vmatmul.f32.gmra.mxu1 %v2904_v59 }
 0x4e8   :  { %3297 = vmatpush.msra.mxu0 %v3296_v27 }
 0x4e9   :  { %v3334_v29 = vsub.f32 %v7646_v39, %v3333_v33 }
 0x4ea   :  { %3299 = vmatpush.msra.mxu0 %v7640_v1 }
 0x4eb   :  { %v3335_v61 = vand.u32 4294901760, %v3334_v29 }
 0x4ed   :  { %3336 = vmatpush.msra.mxu1 %v3335_v61  ;;  %3676 = vrot.lane.b32.xlu2 %v7449_v38, %s6669_s30 }
 0x4ef   :  { %3037 = vmatmul.f32.gmra.mxu0 %v2904_v59  ;;  %3342 = vmatpush.msra.mxu1 %v3341_v10 }
 0x4f5   :  { %1958 = vrot.lane.b32.xlu2 %v7449_v38, %s6670_s3 }
 0x510   :  { %v2798_v19 = vpop.xlane.xlu0 %2797 }
 0x511   :  { %v2808_v58 = vsub.f32 %v7598_v42, %v2798_v19 }
 0x513   :  { %v2822_v22 = vmul.f32 1.442695, %v2808_v58 }
 0x515   :  { %6411 = vpow2.f32 %v2822_v22 }
 0x518   :  { %v2801_v63 = vpop.xlane.xlu0 %2800 }
 0x519   :  { %v2809_v8 = vsub.f32 %v7602_v32, %v2801_v63 }
 0x51b   :  { %v7660_v47 = vpop.eup %6411  ;;  %v2824_v13 = vmul.f32 1.442695, %v2809_v8 }
 0x51c   :  { %v2844_v11 = vsel %vm2777_vm12, %v7660_v47, 0.0 }
 0x51d   :  { %6413 = vpow2.f32 %v2824_v13  ;;  %2845 = vadd.xlane.f32.xlu1 %v2844_v11 }
 0x523   :  { %v7664_v46 = vpop.eup %6413 }
 0x524   :  { %v2847_v21 = vsel %vm2777_vm12, %v7664_v46, 0.0  ;;  %v2834_v12 = vpop.xlane.xlu0 %2833 }
 0x525   :  { %2848 = vadd.xlane.f32.xlu0 %v2847_v21  ;;  %6415 = vrcp.f32 %v2834_v12 }
 0x52b   :  { %v6416_v42 = vpop.eup %6415 }
 0x52c   :  { %v2860_v36 = vmul.f32 %v6416_v42, %v7608_v26  ;;  %v2837_v32 = vpop.xlane.xlu0 %2836 }
 0x52d   :  { %6417 = vrcp.f32 %v2837_v32 }
 0x52e   :  { %v3075_v9 = vsel %vm2777_vm12, %v2860_v36, 0 }
 0x52f   :  { %v3098_v50 = vand.u32 4294901760, %v3075_v9 }
 0x531   :  { %v3099_v15 = vsub.f32 %v3075_v9, %v3098_v50  ;;  %3142 = vmatmul.f32.vlgmr.msrb.gmra.mxu3 %v3098_v50 }
 0x532   :  { %3398 = vmatpush.msrb.mxu3 %v3296_v27 }
 0x533   :  { %v6418_v2 = vpop.eup %6417  ;;  %3172 = vmatmul.f32.vlgmr.msrb.gmra.mxu0 %v3099_v15  ;;  %v3100_v48 = vand.u32 4294901760, %v3099_v15 }
 0x534   :  { %v2861_v62 = vmul.f32 %v6418_v2, %v7612_v24  ;;  %3400 = vmatpush.msrb.mxu3 %v7640_v1  ;;  %3431 = vmatpush.msrb.mxu0 %v3333_v33 }
 0x535   :  { %3202 = vmatmul.f32.vlgmr.msrb.gmra.mxu1 %v3100_v48  ;;  %v3101_v26 = vsub.f32 %v3099_v15, %v3100_v48 }
 0x536   :  { %3472 = vrot.lane.b32.xlu1 %v7486_v52, %s6672_s13  ;;  %3435 = vmatpush.msrb.mxu0 %v3339_v37  ;;  %v3078_v30 = vsel %vm2777_vm12, %v2861_v62, 0 }
 0x537   :  { %3460 = vmatpush.msrb.mxu1 %v3296_v27  ;;  %v3102_v16 = vand.u32 4294901760, %v3101_v26  ;;  %v3106_v23 = vand.u32 4294901760, %v3078_v30 }
 0x538   :  { %v2840_v53 = vpop.xlane.xlu0 %2839 }
 0x539   :  { %3462 = vmatpush.msrb.mxu1 %v7640_v1  ;;  %1948 = vrot.lane.b32.xlu0 %v7444_v54, %s6668_s4  ;;  %6419 = vrcp.f32 %v2840_v53  ;;  %v3107_v52 = vsub.f32 %v3078_v30, %v3106_v23 }
 0x53a   :  { %3103 = vmatmul.f32.vlgmr.msrb.gmra.mxu2 %v3102_v16  ;;  %3146 = vmatmul.f32.gmra.mxu3 %v3106_v23 }
 0x53b   :  { %3368 = vmatpush.msrb.mxu2 %v7646_v39  ;;  %3177 = vmatmul.f32.gmra.mxu0 %v3107_v52  ;;  %v3108_v24 = vand.u32 4294901760, %v3107_v52 }
 0x53d   :  { %3371 = vmatpush.msrb.mxu2 %v7643_v20  ;;  %3208 = vmatmul.f32.gmra.mxu1 %v3108_v24  ;;  %v3109_v25 = vsub.f32 %v3107_v52, %v3108_v24  ;;  %v3680_v24 = vsel %vm1972_vm11, %v7449_v38, 0 }
 0x53e   :  { %3674 = vrot.lane.b32.xlu1 %v7444_v54, %s6669_s30 }
 0x53f   :  { %v6420_v44 = vpop.eup %6419  ;;  %v3110_v60 = vand.u32 4294901760, %v3109_v25 }
 0x540   :  { %v2862_v51 = vmul.f32 %v6420_v44, %v7618_v4  ;;  %v2843_v28 = vpop.xlane.xlu2 %2842 }
 0x541   :  { %6421 = vrcp.f32 %v2843_v28 }
 0x542   :  { %3111 = vmatmul.f32.gmra.mxu2 %v3110_v60  ;;  %3262 = vmatmul.f32.vlgmr.msra.gmra.mxu3 %v3098_v50  ;;  %v3277_v3 = vsel %vm2777_vm12, %v2862_v51, 0 }
 0x543   :  { %3538 = vmatpush.msra.mxu3 %v3537_v35  ;;  %v3300_v31 = vand.u32 4294901760, %v3277_v3  ;;  %v3712_v35 = vand.u32 4294901760, %v3680_v24 }
 0x545   :  { %v3301_v56 = vsub.f32 %v3277_v3, %v3300_v31  ;;  %3344 = vmatmul.f32.vlgmr.msra.gmra.mxu1 %v3300_v31 }
 0x546   :  { %1956 = vrot.lane.b32.xlu1 %v7444_v54, %s6670_s3  ;;  %3600 = vmatpush.msra.mxu1 %v7670_v6 }
 0x547   :  { %v6422_v55 = vpop.eup %6421  ;;  %v3302_v40 = vand.u32 4294901760, %v3301_v56 }
 0x548   :  { %v2863_v59 = vmul.f32 %v6422_v55, %v7623_v34  ;;  %v7697_v4 = vpop.permute.xlu2 %1950 }
 0x549   :  { %v3303_v57 = vsub.f32 %v3301_v56, %v3302_v40  ;;  %3878 = vrot.lane.b32.xlu0 %v7697_v4, %s6669_s30 }
 0x54a   :  { %3235 = vmatmul.f32.vlgmr.msra.gmra.mxu2 %v3098_v50  ;;  %3266 = vmatmul.f32.gmra.mxu3 %v3106_v23  ;;  %v3280_v5 = vsel %vm2777_vm12, %v2863_v59, 0 }
 0x54b   :  { %3499 = vmatpush.msra.mxu2 %v7670_v6  ;;  %v3304_v0 = vand.u32 4294901760, %v3303_v57  ;;  %v3308_v41 = vand.u32 4294901760, %v3280_v5 }
 0x54d   :  { %3305 = vmatmul.f32.vlgmr.msra.gmra.mxu0 %v3304_v0  ;;  %3348 = vmatmul.f32.gmra.mxu1 %v3308_v41  ;;  %v3309_v1 = vsub.f32 %v3280_v5, %v3308_v41 }
 0x54e   :  { %3570 = vmatpush.msra.mxu0 %v7673_v43  ;;  %1966 = vrot.lane.b32.xlu1 %v7449_v38, %s6671_s12 }
 0x54f   :  { %v3310_v34 = vand.u32 4294901760, %v3309_v1 }
 0x550   :  { %v3677_v27 = vpop.permute.xlu2 %3676 }
 0x551   :  { %v3311_v45 = vsub.f32 %v3309_v1, %v3310_v34  ;;  %1964 = vrot.lane.b32.xlu0 %v7444_v54, %s6671_s12  ;;  %v3684_v39 = vsel %vm1972_vm11, %v3677_v27, 0  ;;  %v7787_v27 = vpop.f32.mrf.mxu1 }
 0x552   :  { %3239 = vmatmul.f32.gmra.mxu2 %v3106_v23  ;;  %3404 = vmatmul.f32.vlgmr.msrb.gmra.mxu3 %v3302_v40  ;;  %v7711_v61 = vand.u32 4294901760, %v3684_v39  ;;  %8538 = vst [vmem:[#allocation29_spill] sm:$0xff] %v7787_v27 }
 0x553   :  { %v3312_v20 = vand.u32 4294901760, %v3311_v45 }
 0x554   :  { %v3736_v22 = vsub.f32 %v3684_v39, %v7711_v61  ;;  %v7793_v39 = vpop.f32.mrf.mxu2 }
 0x555   :  { %3313 = vmatmul.f32.gmra.mxu0 %v3312_v20  ;;  %3464 = vmatmul.f32.vlgmr.msrb.gmra.mxu1 %v3300_v31  ;;  %8541 = vst [vmem:[#allocation39_spill] sm:$0xff] %v7793_v39 }
 0x556   :  { %v3737_v11 = vand.u32 4294901760, %v3736_v22 }
 0x558   :  { %v3738_v42 = vsub.f32 %v3736_v22, %v3737_v11  ;;  %v7740_v25 = vpop.permute.xlu2 %1958 }
 0x55a   :  { %3374 = vmatmul.f32.vlgmr.msrb.gmra.mxu2 %v3301_v56  ;;  %3410 = vmatmul.f32.gmra.mxu3 %v3310_v34  ;;  %v3739_v50 = vand.u32 4294901760, %v3738_v42 }
 0x55d   :  { %3437 = vmatmul.f32.vlgmr.msrb.gmra.mxu0 %v3300_v31  ;;  %3468 = vmatmul.f32.gmra.mxu1 %v3308_v41  ;;  %v3713_v31 = vsub.f32 %v3680_v24, %v3712_v35 }
 0x55f   :  { %v3714_v59 = vand.u32 4294901760, %v3713_v31 }
 0x562   :  { %3379 = vmatmul.f32.gmra.mxu2 %v3309_v1 }
 0x565   :  { %3441 = vmatmul.f32.gmra.mxu0 %v3308_v41  ;;  %v3715_v41 = vsub.f32 %v3713_v31, %v3714_v59 }
 0x590   :  { %v2846_v18 = vpop.xlane.xlu1 %2845 }
 0x591   :  { %6423 = vrcp.f32 %v2846_v18  ;;  %v7785_v18 = vpop.f32.mrf.mxu0 }
 0x592   :  { %8537 = vst [vmem:[#allocation21_spill] sm:$0xff] %v7785_v18 }
 0x597   :  { %v6424_v37 = vpop.eup %6423 }
 0x598   :  { %v2864_v33 = vmul.f32 %v6424_v37, %v7660_v47  ;;  %v2849_v29 = vpop.xlane.xlu0 %2848 }
 0x599   :  { %6425 = vrcp.f32 %v2849_v29  ;;  %v7789_v37 = vpop.f32.mrf.mxu0 }
 0x59a   :  { %v3479_v7 = vsel %vm2777_vm12, %v2864_v33, 0  ;;  %8539 = vst [vmem:[#allocation30_spill] sm:$0xff] %v7789_v37 }
 0x59b   :  { %v7713_v10 = vand.u32 4294901760, %v3479_v7 }
 0x59d   :  { %v3503_v19 = vsub.f32 %v3479_v7, %v7713_v10  ;;  %v7799_v7 = vpop.f32.mrf.mxu3 }
 0x59e   :  { %8544 = vst [vmem:[#allocation20_spill] sm:$0xff] %v7799_v7 }
 0x59f   :  { %v6426_v58 = vpop.eup %6425  ;;  %v3504_v13 = vand.u32 4294901760, %v3503_v19 }
 0x5a0   :  { %v2865_v63 = vmul.f32 %v6426_v58, %v7664_v46  ;;  %v3678_v46 = vsel %vm1972_vm11, %v7444_v54, 0 }
 0x5a1   :  { %v3505_v21 = vsub.f32 %v3503_v19, %v3504_v13  ;;  %v7730_v26 = vand.u32 4294901760, %v3678_v46  ;;  %v7795_v33 = vpop.f32.mrf.mxu0 }
 0x5a2   :  { %v3482_v8 = vsel %vm2777_vm12, %v2865_v63, 0  ;;  %8542 = vst [vmem:[#allocation42_spill] sm:$0xff] %v7795_v33 }
 0x5a3   :  { %v7719_v47 = vand.u32 4294901760, %v3482_v8  ;;  %v3506_v14 = vand.u32 4294901760, %v3505_v21  ;;  %v7735_v52 = vsub.f32 %v3678_v46, %v7730_v26 }
 0x5a5   :  { %v3511_v12 = vsub.f32 %v3482_v8, %v7719_v47  ;;  %v3706_v60 = vand.u32 4294901760, %v7735_v52  ;;  %v7807_v58 = vpop.f32.mrf.mxu3 }
 0x5a6   :  { %8548 = vst [vmem:[#allocation23_spill] sm:$0xff] %v7807_v58 }
 0x5a7   :  { %v3512_v9 = vand.u32 4294901760, %v3511_v12  ;;  %v3707_v3 = vsub.f32 %v7735_v52, %v3706_v60 }
 0x5a8   :  { %v3473_v36 = vpop.permute.xlu1 %3472 }
 0x5a9   :  { %v3500_v32 = vand.u32 4294901760, %v3473_v36  ;;  %v3513_v62 = vsub.f32 %v3511_v12, %v3512_v9  ;;  %v3708_v40 = vand.u32 4294901760, %v3707_v3 }
 0x5ab   :  { %v3540_v15 = vsub.f32 %v3473_v36, %v3500_v32  ;;  %3501 = vmatpush.msra.mxu2 %v3500_v32  ;;  %3602 = vmatpush.msra.mxu1 %v3500_v32  ;;  %v7722_v2 = vpop.permute.xlu0 %1948  ;;  %v3514_v53 = vand.u32 4294901760, %v3513_v62  ;;  %v3882_v36 = vsel %vm1972_vm11, %v7697_v4, 0 }
 0x5ac   :  { %3507 = vmatmul.f32.vlgmr.msra.gmra.mxu2 %v3506_v14  ;;  %3606 = vmatmul.f32.vlgmr.msra.gmra.mxu1 %v3504_v13  ;;  %v3880_v13 = vsel %vm1972_vm11, %v7722_v2, 0  ;;  %v7830_v14 = vand.u32 4294901760, %v3882_v36 }
 0x5ad   :  { %3633 = vmatpush.msrb.mxu2 %v3535_v49  ;;  %3740 = vmatpush.xpose.msrb.mxu1 %v3739_v50  ;;  %v3541_v48 = vand.u32 4294901760, %v3540_v15 }
 0x5ae   :  { %3876 = vrot.lane.b32.xlu2 %v7722_v2, %s6669_s30  ;;  %3573 = vmatpush.msra.mxu0 %v3540_v15  ;;  %v3915_v46 = vsub.f32 %v3882_v36, %v7830_v14 }
 0x5af   :  { %3576 = vmatmul.f32.vlgmr.msra.gmra.mxu0 %v3503_v19  ;;  %3637 = vmatpush.msrb.mxu2 %v3541_v48  ;;  %v3542_v30 = vsub.f32 %v3540_v15, %v3541_v48 }
 0x5b0   :  { %3701 = vmatpush.xpose.msrb.mxu0 %v7711_v61  ;;  %v3675_v16 = vpop.permute.xlu1 %3674 }
 0x5b1   :  { %3772 = vmatpush.xpose.msra.mxu2 %v3736_v22  ;;  %v3682_v23 = vsel %vm1972_vm11, %v3675_v16, 0  ;;  %v3543_v43 = vand.u32 4294901760, %v3542_v30 }
 0x5b2   :  { %v3702_v49 = vand.u32 4294901760, %v3682_v23 }
 0x5b3   :  { %3544 = vmatpush.msra.mxu3 %v3543_v43 }
 0x5b4   :  { %v3742_v17 = vsub.f32 %v3682_v23, %v3702_v49  ;;  %3515 = vmatmul.f32.gmra.mxu2 %v3514_v53  ;;  %3546 = vmatmul.f32.vlgmr.msra.gmra.mxu3 %v7713_v10  ;;  %v3916_v53 = vand.u32 4294901760, %v3915_v46 }
 0x5b5   :  { %3612 = vmatmul.f32.gmra.mxu1 %v3512_v9  ;;  %3662 = vmatpush.msrb.mxu3 %v7670_v6 }
 0x5b6   :  { %3703 = vmatpush.xpose.msrb.mxu0 %v3702_v49  ;;  %4080 = vrot.lane.b32.xlu2 %v7740_v25, %s6669_s30  ;;  %v3743_v44 = vand.u32 4294901760, %v3742_v17 }
 0x5b7   :  { %3664 = vmatpush.msrb.mxu3 %v3500_v32  ;;  %3581 = vmatmul.f32.gmra.mxu0 %v3511_v12 }
 0x5b8   :  { %3775 = vmatpush.xpose.msra.mxu2 %v3742_v17  ;;  %v7746_v51 = vpop.permute.xlu1 %1956  ;;  %v3744_v28 = vsub.f32 %v3742_v17, %v3743_v44 }
 0x5b9   :  { %3802 = vmatpush.xpose.msra.mxu3 %v7711_v61  ;;  %4078 = vrot.lane.b32.xlu1 %v7746_v51, %s6669_s30 }
 0x5ba   :  { %3835 = vmatpush.xpose.msra.mxu0 %v3737_v11  ;;  %v3745_v6 = vand.u32 4294901760, %v3744_v28  ;;  %v7817_v11 = vpop.f32.mrf.mxu3 }
 0x5bb   :  { %v3879_v56 = vpop.permute.xlu0 %3878 }
 0x5bc   :  { %3550 = vmatmul.f32.gmra.mxu3 %v7719_v47  ;;  %3639 = vmatmul.f32.vlgmr.msrb.gmra.mxu2 %v7713_v10  ;;  %v3886_v55 = vsel %vm1972_vm11, %v3879_v56, 0 }
 0x5bd   :  { %3804 = vmatpush.xpose.msra.mxu3 %v3702_v49  ;;  %3746 = vmatpush.xpose.msrb.mxu1 %v3745_v6  ;;  %v7756_v57 = vand.u32 4294901760, %v3886_v55 }
 0x5be   :  { %3839 = vmatpush.xpose.msra.mxu0 %v3743_v44 }
 0x5bf   :  { %3709 = vmatmul.f32.vlgmr.msrb.gmra.mxu0 %v3708_v40  ;;  %v7760_v5 = vsub.f32 %v3886_v55, %v7756_v57  ;;  %3903 = vmatpush.xpose.msrb.mxu2 %v7756_v57 }
 0x5c0   :  { %3748 = vmatmul.f32.vlgmr.msrb.gmra.mxu1 %v7730_v26  ;;  %v7762_v0 = vpop.permute.xlu1 %1966 }
 0x5c1   :  { %3864 = vmatpush.xpose.msra.mxu1 %v7711_v61  ;;  %4572 = vrot.lane.b32.xlu1 %v7449_v38, %s6672_s13  ;;  %v3939_v1 = vand.u32 4294901760, %v7760_v5  ;;  %v3716_v38 = vand.u32 4294901760, %v3715_v41  ;;  %v7801_v61 = vpop.f32.mrf.mxu2 }
 0x5c2   :  { %4282 = vrot.lane.b32.xlu0 %v7762_v0, %s6669_s30  ;;  %3974 = vmatpush.xpose.msrb.mxu0 %v7760_v5  ;;  %8545 = vst [vmem:[#allocation34_spill] sm:$0xff] %v7801_v61  ;;  %v7832_v50 = vpop.f32.mrf.mxu3 }
 0x5c3   :  { %v3940_v34 = vsub.f32 %v7760_v5, %v3939_v1  ;;  %v7775_v45 = vpop.permute.xlu0 %1964 }
 0x5c4   :  { %3643 = vmatmul.f32.gmra.mxu2 %v7719_v47  ;;  %3666 = vmatmul.f32.vlgmr.msrb.gmra.mxu3 %v7713_v10  ;;  %v7803_v10 = vpop.f32.mrf.mxu0 }
 0x5c5   :  { %3866 = vmatpush.xpose.msra.mxu1 %v3702_v49  ;;  %4280 = vrot.lane.b32.xlu2 %v7775_v45, %s6669_s30  ;;  %v3941_v20 = vand.u32 4294901760, %v3940_v34  ;;  %8546 = vst [vmem:[#allocation37_spill] sm:$0xff] %v7803_v10 }
 0x5c7   :  { %3717 = vmatmul.f32.gmra.mxu0 %v3716_v38  ;;  %3942 = vmatpush.xpose.msrb.mxu3 %v3941_v20 }
 0x5c8   :  { %3752 = vmatmul.f32.gmra.mxu1 %v3712_v35 }
 0x5c9   :  { %4004 = vmatpush.xpose.msrb.mxu1 %v7756_v57  ;;  %v7809_v22 = vpop.f32.mrf.mxu2 }
 0x5ca   :  { %4570 = vrot.lane.b32.xlu0 %v7444_v54, %s6672_s13  ;;  %v7791_v54 = vpop.f32.mrf.mxu1  ;;  %v7842_v24 = vpop.f32.mrf.mxu3 }
 0x5cb   :  { %8540 = vst [vmem:[#allocation28_spill] sm:$0xff] %v7791_v54 }
 0x5cc   :  { %3670 = vmatmul.f32.gmra.mxu3 %v7719_v47  ;;  %3778 = vmatmul.f32.vlgmr.msra.gmra.mxu2 %v7735_v52  ;;  %v7811_v63 = vpop.f32.mrf.mxu0  ;;  %v7819_v47 = vand.u32 4294901760, %v3880_v13 }
 0x5ce   :  { %v3907_v12 = vsub.f32 %v3880_v13, %v7819_v47 }
 0x5cf   :  { %3841 = vmatmul.f32.vlgmr.msra.gmra.mxu0 %v7730_v26 }
 0x5d0   :  { %3868 = vmatmul.f32.vlgmr.msra.gmra.mxu1 %v7730_v26  ;;  %v3908_v9 = vand.u32 4294901760, %v3907_v12 }
 0x5d1   :  { %v7821_v21 = vpop.f32.mrf.mxu2 }
 0x5d2   :  { %v7797_v29 = vpop.f32.mrf.mxu1  ;;  %v3909_v48 = vsub.f32 %v3907_v12, %v3908_v9  ;;  %v7857_v41 = vpop.f32.mrf.mxu3 }
 0x5d3   :  { %8543 = vst [vmem:[#allocation45_spill] sm:$0xff] %v7797_v29 }
 0x5d4   :  { %3783 = vmatmul.f32.gmra.mxu2 %v3713_v31  ;;  %3808 = vmatmul.f32.vlgmr.msra.gmra.mxu3 %v3706_v60  ;;  %v7824_v42 = vpop.f32.mrf.mxu0  ;;  %v3910_v43 = vand.u32 4294901760, %v3909_v48 }
 0x5d7   :  { %3845 = vmatmul.f32.gmra.mxu0 %v3712_v35 }
 0x5d8   :  { %3872 = vmatmul.f32.gmra.mxu1 %v3712_v35  ;;  %v3917_v35 = vsub.f32 %v3915_v46, %v3916_v53 }
 0x5d9   :  { %v7837_v26 = vpop.f32.mrf.mxu2 }
 0x5da   :  { %v7805_v19 = vpop.f32.mrf.mxu1  ;;  %v3918_v55 = vand.u32 4294901760, %v3917_v35  ;;  %v7873_v36 = vpop.f32.mrf.mxu3 }
 0x5db   :  { %8547 = vst [vmem:[#allocation38_spill] sm:$0xff] %v7805_v19 }
 0x5dc   :  { %3814 = vmatmul.f32.gmra.mxu3 %v3714_v59  ;;  %v7835_v62 = vpop.f32.mrf.mxu0 }
 0x5e1   :  { %v7849_v31 = vpop.f32.mrf.mxu2 }
 0x5e2   :  { %v7813_v8 = vpop.f32.mrf.mxu1 }
 0x5e4   :  { %v7847_v3 = vpop.f32.mrf.mxu0 }
 0x5e9   :  { %v7864_v38 = vpop.f32.mrf.mxu2 }
 0x5ea   :  { %v7828_v32 = vpop.f32.mrf.mxu1 }
 0x5ec   :  { %v7862_v34 = vpop.f32.mrf.mxu0 }
 0x5f2   :  { %v7840_v49 = vpop.f32.mrf.mxu1 }
 0x5fa   :  { %v7854_v59 = vpop.f32.mrf.mxu1 }
 0x602   :  { %v7870_v13 = vpop.f32.mrf.mxu1 }
 0x608   :  { %v3877_v15 = vpop.permute.xlu2 %3876 }
 0x609   :  { %v3884_v30 = vsel %vm1972_vm11, %v3877_v15, 0  ;;  %v7877_v15 = vpop.f32.mrf.mxu0 }
 0x60a   :  { %v3904_v16 = vand.u32 4294901760, %v3884_v30 }
 0x60c   :  { %v3944_v23 = vsub.f32 %v3884_v30, %v3904_v16  ;;  %3905 = vmatpush.xpose.msrb.mxu2 %v3904_v16  ;;  %4006 = vmatpush.xpose.msrb.mxu1 %v3904_v16 }
 0x60e   :  { %3977 = vmatpush.xpose.msrb.mxu0 %v3944_v23  ;;  %v3945_v52 = vand.u32 4294901760, %v3944_v23 }
 0x60f   :  { %3911 = vmatmul.f32.vlgmr.msrb.gmra.mxu2 %v3910_v43  ;;  %4010 = vmatmul.f32.vlgmr.msrb.gmra.mxu1 %v3908_v9  ;;  %v4084_v9 = vsel %vm1972_vm11, %v7740_v25, 0 }
 0x610   :  { %4037 = vmatpush.xpose.msra.mxu2 %v3939_v1  ;;  %v4081_v17 = vpop.permute.xlu2 %4080  ;;  %v3946_v44 = vsub.f32 %v3944_v23, %v3945_v52  ;;  %v7883_v30 = vand.u32 4294901760, %v4084_v9 }
 0x611   :  { %v4088_v60 = vsel %vm1972_vm11, %v4081_v17, 0  ;;  %3980 = vmatmul.f32.vlgmr.msrb.gmra.mxu0 %v3907_v12 }
 0x612   :  { %v7845_v28 = vand.u32 4294901760, %v4088_v60  ;;  %v3947_v6 = vand.u32 4294901760, %v3946_v44  ;;  %v7889_v17 = vsub.f32 %v4084_v9, %v7883_v30 }
 0x614   :  { %4041 = vmatpush.xpose.msra.mxu2 %v3945_v52  ;;  %v4140_v56 = vsub.f32 %v4088_v60, %v7845_v28  ;;  %3948 = vmatpush.xpose.msrb.mxu3 %v3947_v6  ;;  %v7891_v60 = vpop.f32.mrf.mxu3 }
 0x615   :  { %4105 = vmatpush.xpose.msra.mxu0 %v7845_v28 }
 0x616   :  { %v4141_v40 = vand.u32 4294901760, %v4140_v56 }
 0x617   :  { %3919 = vmatmul.f32.gmra.mxu2 %v3918_v55  ;;  %3950 = vmatmul.f32.vlgmr.msrb.gmra.mxu3 %v7819_v47 }
 0x618   :  { %4066 = vmatpush.xpose.msra.mxu3 %v7756_v57  ;;  %4176 = vmatpush.xpose.msrb.mxu2 %v4140_v56  ;;  %v4142_v5 = vsub.f32 %v4140_v56, %v4141_v40  ;;  %v4082_v57 = vsel %vm1972_vm11, %v7746_v51, 0 }
 0x619   :  { %4016 = vmatmul.f32.gmra.mxu1 %v3916_v53  ;;  %3985 = vmatmul.f32.gmra.mxu0 %v3915_v46  ;;  %v7868_v20 = vand.u32 4294901760, %v4082_v57  ;;  %v7879_v46 = vpop.f32.mrf.mxu2 }
 0x61a   :  { %v4143_v1 = vand.u32 4294901760, %v4142_v5  ;;  %v4284_v5 = vsel %vm1972_vm11, %v7775_v45, 0 }
 0x61b   :  { %v4109_v12 = vsub.f32 %v4082_v57, %v7868_v20  ;;  %v4118_v57 = vand.u32 4294901760, %v7889_v17 }
 0x61c   :  { %4068 = vmatpush.xpose.msra.mxu3 %v3904_v16  ;;  %4144 = vmatpush.xpose.msra.mxu1 %v4143_v1  ;;  %v7885_v16 = vpop.f32.mrf.mxu1 }
 0x61d   :  { %v4110_v48 = vand.u32 4294901760, %v4109_v12 }
 0x61f   :  { %3954 = vmatmul.f32.gmra.mxu3 %v7830_v14  ;;  %4043 = vmatmul.f32.vlgmr.msra.gmra.mxu2 %v7819_v47  ;;  %v4111_v43 = vsub.f32 %v4109_v12, %v4110_v48  ;;  %v4281_v53 = vpop.permute.xlu2 %4280 }
 0x620   :  { %4206 = vmatpush.xpose.msrb.mxu3 %v7845_v28  ;;  %v4288_v35 = vsel %vm1972_vm11, %v4281_v53, 0 }
 0x621   :  { %v4112_v55 = vand.u32 4294901760, %v4111_v43  ;;  %v7902_v9 = vand.u32 4294901760, %v4288_v35 }
 0x623   :  { %v4348_v10 = vsub.f32 %v4288_v35, %v7902_v9 }
 0x627   :  { %4047 = vmatmul.f32.gmra.mxu2 %v7830_v14  ;;  %4070 = vmatmul.f32.vlgmr.msra.gmra.mxu3 %v7819_v47 }
 0x629   :  { %v7906_v53 = vpop.f32.mrf.mxu1 }
 0x62a   :  { %8551 = vst [vmem:[#allocation43_spill] sm:$0xff] %v7906_v53 }
 0x62b   :  { %v4079_v23 = vpop.permute.xlu1 %4078 }
 0x62c   :  { %v4086_v52 = vsel %vm1972_vm11, %v4079_v23, 0  ;;  %v7894_v6 = vpop.f32.mrf.mxu0  ;;  %v7904_v23 = vand.u32 4294901760, %v4284_v5 }
 0x62d   :  { %v4106_v44 = vand.u32 4294901760, %v4086_v52  ;;  %8549 = vst [vmem:[#allocation25_spill] sm:$0xff] %v7894_v6 }
 0x62e   :  { %v7912_v54 = vsub.f32 %v4284_v5, %v7904_v23 }
 0x62f   :  { %v4146_v47 = vsub.f32 %v4086_v52, %v4106_v44  ;;  %4074 = vmatmul.f32.gmra.mxu3 %v7830_v14  ;;  %v7897_v56 = vpop.f32.mrf.mxu2  ;;  %4107 = vmatpush.xpose.msra.mxu0 %v4106_v44 }
 0x630   :  { %8550 = vst [vmem:[#allocation31_spill] sm:$0xff] %v7897_v56  ;;  %4208 = vmatpush.xpose.msrb.mxu3 %v4106_v44 }
 0x631   :  { %4179 = vmatpush.xpose.msrb.mxu2 %v4146_v47  ;;  %v4147_v1 = vand.u32 4294901760, %v4146_v47 }
 0x632   :  { %4113 = vmatmul.f32.vlgmr.msra.gmra.mxu0 %v4112_v55 }
 0x633   :  { %4239 = vmatpush.xpose.msrb.mxu0 %v4141_v40  ;;  %v4148_v14 = vsub.f32 %v4146_v47, %v4147_v1  ;;  %v4119_v40 = vsub.f32 %v7889_v17, %v4118_v57  ;;  %v4573_v58 = vpop.permute.xlu1 %4572 }
 0x634   :  { %v4283_v52 = vpop.permute.xlu0 %4282  ;;  %4182 = vmatmul.f32.vlgmr.msrb.gmra.mxu2 %v4109_v12  ;;  %v4286_v12 = vsel %vm1972_vm11, %v7762_v0, 0  ;;  %v7923_v35 = vand.u32 4294901760, %v4573_v58 }
 0x635   :  { %v4290_v43 = vsel %vm1972_vm11, %v4283_v52, 0  ;;  %v4149_v19 = vand.u32 4294901760, %v4148_v14  ;;  %v4120_v14 = vand.u32 4294901760, %v4119_v40  ;;  %v7926_v52 = vand.u32 4294901760, %v4286_v12 }
 0x636   :  { %v4306_v61 = vand.u32 4294901760, %v4290_v43  ;;  %v4632_v33 = vsub.f32 %v4573_v58, %v7923_v35 }
 0x637   :  { %4243 = vmatpush.xpose.msrb.mxu0 %v4147_v1  ;;  %4212 = vmatmul.f32.vlgmr.msrb.gmra.mxu3 %v4110_v48  ;;  %v7914_v55 = vpop.f32.mrf.mxu2  ;;  %v7916_v37 = vpop.f32.mrf.mxu3  ;;  %v4349_v48 = vand.u32 4294901760, %v4348_v10 }
 0x638   :  { %8552 = vst [vmem:[#allocation41_spill] sm:$0xff] %v7916_v37  ;;  %4150 = vmatpush.xpose.msra.mxu1 %v4149_v19  ;;  %v4342_v47 = vsub.f32 %v4290_v43, %v4306_v61  ;;  %4307 = vmatpush.xpose.msra.mxu2 %v4306_v61  ;;  %v7921_v1 = vpop.f32.mrf.mxu0  ;;  %v8481_v19 = vand.u32 4294901760, %v7912_v54 }
 0x639   :  { %v4350_v39 = vsub.f32 %v4348_v10, %v4349_v48 }
 0x63a   :  { %v4343_v5 = vand.u32 4294901760, %v4342_v47  ;;  %4121 = vmatmul.f32.gmra.mxu0 %v4120_v14  ;;  %v7937_v14 = vsub.f32 %v4286_v12, %v7926_v52 }
 0x63b   :  { %4378 = vmatpush.xpose.msra.mxu0 %v4342_v47  ;;  %4152 = vmatmul.f32.vlgmr.msra.gmra.mxu1 %v7868_v20 }
 0x63c   :  { %4268 = vmatpush.xpose.msrb.mxu1 %v7845_v28  ;;  %v4344_v29 = vsub.f32 %v4342_v47, %v4343_v5  ;;  %v4571_v43 = vpop.permute.xlu0 %4570  ;;  %4309 = vmatpush.xpose.msra.mxu2 %v7902_v9  ;;  %v7930_v28 = vpop.f32.mrf.mxu1 }
 0x63d   :  { %v7933_v40 = vand.u32 4294901760, %v4571_v43  ;;  %4187 = vmatmul.f32.gmra.mxu2 %v7889_v17  ;;  %v4633_v17 = vand.u32 4294901760, %v4632_v33 }
 0x63e   :  { %v4345_v7 = vand.u32 4294901760, %v4344_v29  ;;  %v4351_v29 = vand.u32 4294901760, %v4350_v39 }
 0x63f   :  { %4381 = vmatpush.xpose.msra.mxu0 %v4348_v10  ;;  %v4638_v47 = vsub.f32 %v4571_v43, %v7933_v40  ;;  %4218 = vmatmul.f32.gmra.mxu3 %v4118_v57  ;;  %v7943_v58 = vpop.f32.mrf.mxu3  ;;  %v7945_v27 = vpop.f32.mrf.mxu2  ;;  %v4320_v43 = vand.u32 4294901760, %v7937_v14  ;;  %v4634_v57 = vsub.f32 %v4632_v33, %v4633_v17 }
 0x640   :  { %4270 = vmatpush.xpose.msrb.mxu1 %v4106_v44  ;;  %4441 = vmatpush.xpose.msrb.mxu2 %v4343_v5  ;;  %v4313_v44 = vsub.f32 %v7912_v54, %v8481_v19  ;;  %8553 = vst [vmem:[#allocation33_spill] sm:$0xff] %v7945_v27  ;;  %v3710_v5 = vpop.f32.mrf.mxu0 }
 0x641   :  { %4346 = vmatpush.xpose.msra.mxu3 %v4345_v7  ;;  %v4639_v12 = vand.u32 4294901760, %v4638_v47  ;;  %v4635_v18 = vand.u32 4294901760, %v4634_v57 }
 0x642   :  { %v4314_v10 = vand.u32 4294901760, %v4313_v44  ;;  %4245 = vmatmul.f32.vlgmr.msrb.gmra.mxu0 %v7868_v20 }
 0x643   :  { %4156 = vmatmul.f32.gmra.mxu1 %v7883_v30  ;;  %4597 = vmatpush.msrb.mxu0 %v7923_v35  ;;  %v4640_v44 = vsub.f32 %v4638_v47, %v4639_v12 }
 0x644   :  { %4408 = vmatpush.xpose.msra.mxu1 %v4306_v61  ;;  %4445 = vmatpush.xpose.msrb.mxu2 %v4349_v48  ;;  %v3749_v19 = vpop.f32.mrf.mxu1  ;;  %v4321_v48 = vsub.f32 %v7937_v14, %v4320_v43 }
 0x645   :  { %4352 = vmatpush.xpose.msra.mxu3 %v4351_v29  ;;  %4315 = vmatmul.f32.vlgmr.msra.gmra.mxu2 %v4314_v10 }
 0x646   :  { %4599 = vmatpush.msrb.mxu0 %v7933_v40 }
 0x647   :  { %v7954_v39 = vpop.f32.mrf.mxu2  ;;  %v7956_v7 = vpop.f32.mrf.mxu3 }
 0x648   :  { %4410 = vmatpush.xpose.msra.mxu1 %v7902_v9  ;;  %4668 = vmatpush.msra.mxu2 %v4632_v33  ;;  %8554 = vst [vmem:[#allocation24_spill] sm:$0xff] %v7956_v7  ;;  %v4322_v33 = vand.u32 4294901760, %v4321_v48  ;;  %v3718_v29 = vpop.f32.mrf.mxu0  ;;  %v8555_v7 = vand.u32 4294901760, %v7912_v54 }
 0x649   :  { %4470 = vmatpush.xpose.msrb.mxu3 %v4306_v61  ;;  %v4641_v61 = vand.u32 4294901760, %v4640_v44 }
 0x64a   :  { %4354 = vmatmul.f32.vlgmr.msra.gmra.mxu3 %v7904_v23  ;;  %4671 = vmatpush.msra.mxu2 %v4638_v47 }
 0x64b   :  { %4272 = vmatmul.f32.vlgmr.msrb.gmra.mxu1 %v7868_v20  ;;  %4249 = vmatmul.f32.gmra.mxu0 %v7883_v30  ;;  %v3750_v20 = vadd.f32 %v3749_v19, %v3710_v5 }
 0x64c   :  { %4636 = vmatpush.msrb.mxu1 %v4635_v18  ;;  %v3753_v10 = vpop.f32.mrf.mxu1 }
 0x64d   :  { %4472 = vmatpush.xpose.msrb.mxu3 %v7902_v9  ;;  %4323 = vmatmul.f32.gmra.mxu2 %v4322_v33 }
 0x64e   :  { %4642 = vmatpush.msrb.mxu1 %v4641_v61 }
 0x64f   :  { %v7965_v47 = vpop.f32.mrf.mxu3  ;;  %v3779_v9 = vpop.f32.mrf.mxu2 }
 0x650   :  { %v3780_v18 = vadd.f32 %v3779_v9, %v3750_v20  ;;  %v3842_v57 = vpop.f32.mrf.mxu0 }
 0x651   :  { %4698 = vmatpush.msra.mxu3 %v7923_v35 }
 0x652   :  { %4358 = vmatmul.f32.gmra.mxu3 %v7926_v52 }
 0x653   :  { %4700 = vmatpush.msra.mxu3 %v7933_v40  ;;  %4276 = vmatmul.f32.gmra.mxu1 %v7883_v30  ;;  %v3754_v30 = vadd.f32 %v3753_v10, %v3718_v29 }
 0x654   :  { %4384 = vmatmul.f32.vlgmr.msra.gmra.mxu0 %v7912_v54  ;;  %v3869_v33 = vpop.f32.mrf.mxu1 }
 0x655   :  { %4731 = vmatpush.msra.mxu0 %v4633_v17  ;;  %4447 = vmatmul.f32.vlgmr.msrb.gmra.mxu2 %v7904_v23 }
 0x657   :  { %4735 = vmatpush.msra.mxu0 %v4639_v12  ;;  %v3809_v48 = vpop.f32.mrf.mxu3  ;;  %v3784_v27 = vpop.f32.mrf.mxu2 }
 0x658   :  { %v3810_v44 = vadd.f32 %v3809_v48, %v3780_v18  ;;  %v3846_v5 = vpop.f32.mrf.mxu0 }
 0x65a   :  { %4474 = vmatmul.f32.vlgmr.msrb.gmra.mxu3 %v7904_v23  ;;  %v3843_v61 = vadd.f32 %v3842_v57, %v3810_v44  ;;  %v3785_v23 = vadd.f32 %v3784_v27, %v3754_v30 }
 0x65b   :  { %4414 = vmatmul.f32.vlgmr.msra.gmra.mxu1 %v8555_v7 }
 0x65c   :  { %4389 = vmatmul.f32.gmra.mxu0 %v7937_v14  ;;  %4760 = vmatpush.msra.mxu1 %v7923_v35  ;;  %v7975_v19 = vadd.f32 %v3869_v33, %v3843_v61  ;;  %v3873_v35 = vpop.f32.mrf.mxu1 }
 0x65d   :  { %4451 = vmatmul.f32.gmra.mxu2 %v7926_v52 }
 0x65e   :  { %4762 = vmatpush.msra.mxu1 %v7933_v40  ;;  %v4482_v17 = vsel %vm2777_vm12, %v7975_v19, -inf }
 0x65f   :  { %v3815_v54 = vpop.f32.mrf.mxu3  ;;  %4483 = vmax.xlane.f32.xlu1 %v4482_v17 }
 0x660   :  { %v3816_v12 = vadd.f32 %v3815_v54, %v3785_v23 }
 0x662   :  { %4478 = vmatmul.f32.gmra.mxu3 %v7926_v52  ;;  %v3847_v14 = vadd.f32 %v3846_v5, %v3816_v12 }
 0x663   :  { %4420 = vmatmul.f32.gmra.mxu1 %v4320_v43 }
 0x664   :  { %v7982_v7 = vadd.f32 %v3873_v35, %v3847_v14 }
 0x666   :  { %v4485_v29 = vsel %vm2777_vm12, %v7982_v7, -inf }
 0x667   :  { %4486 = vmax.xlane.f32.xlu0 %v4485_v29 }
 0x68c   :  { %v4011_v57 = vpop.f32.mrf.mxu1 }
 0x68e   :  { %v3981_v9 = vpop.f32.mrf.mxu0 }
 0x692   :  { %v3912_v40 = vpop.f32.mrf.mxu2 }
 0x696   :  { %v3986_v44 = vpop.f32.mrf.mxu0  ;;  %v4017_v12 = vpop.f32.mrf.mxu1 }
 0x69a   :  { %v3920_v27 = vpop.f32.mrf.mxu2  ;;  %v3951_v10 = vpop.f32.mrf.mxu3 }
 0x69b   :  { %v3952_v20 = vadd.f32 %v3951_v10, %v3912_v40 }
 0x69d   :  { %v3982_v52 = vadd.f32 %v3981_v9, %v3952_v20 }
 0x69f   :  { %v4012_v61 = vadd.f32 %v4011_v57, %v3982_v52 }
 0x6a2   :  { %v3955_v18 = vpop.f32.mrf.mxu3  ;;  %v4044_v48 = vpop.f32.mrf.mxu2 }
 0x6a3   :  { %v3956_v33 = vadd.f32 %v3955_v18, %v3920_v27  ;;  %v4045_v43 = vadd.f32 %v4044_v48, %v4012_v61 }
 0x6a5   :  { %v3987_v23 = vadd.f32 %v3986_v44, %v3956_v33 }
 0x6a7   :  { %v4018_v14 = vadd.f32 %v4017_v12, %v3987_v23 }
 0x6aa   :  { %v4071_v30 = vpop.f32.mrf.mxu3  ;;  %v4048_v5 = vpop.f32.mrf.mxu2 }
 0x6ab   :  { %v7986_v17 = vadd.f32 %v4071_v30, %v4045_v43  ;;  %v4049_v29 = vadd.f32 %v4048_v5, %v4018_v14 }
 0x6ad   :  { %v4488_v54 = vsel %vm2777_vm12, %v7986_v17, -inf }
 0x6ae   :  { %4489 = vmax.xlane.f32.xlu2 %v4488_v54 }
 0x6af   :  { %v4114_v35 = vpop.f32.mrf.mxu0 }
 0x6b2   :  { %v4075_v40 = vpop.f32.mrf.mxu3 }
 0x6b3   :  { %v7990_v10 = vadd.f32 %v4075_v40, %v4049_v29 }
 0x6b5   :  { %v4491_v27 = vsel %vm2777_vm12, %v7990_v10, -inf }
 0x6b6   :  { %4492 = vmax.xlane.f32.xlu1 %v4491_v27 }
 0x6b7   :  { %v4183_v20 = vpop.f32.mrf.mxu2  ;;  %v4122_v18 = vpop.f32.mrf.mxu0 }
 0x6b8   :  { %v4153_v9 = vpop.f32.mrf.mxu1 }
 0x6b9   :  { %v4154_v57 = vadd.f32 %v4153_v9, %v4114_v35 }
 0x6ba   :  { %v4213_v52 = vpop.f32.mrf.mxu3 }
 0x6bb   :  { %v4184_v44 = vadd.f32 %v4183_v20, %v4154_v57 }
 0x6bd   :  { %v4214_v30 = vadd.f32 %v4213_v52, %v4184_v44 }
 0x6bf   :  { %v4246_v61 = vpop.f32.mrf.mxu0 }
 0x6c0   :  { %v4157_v48 = vpop.f32.mrf.mxu1  ;;  %v4188_v33 = vpop.f32.mrf.mxu2  ;;  %v4247_v54 = vadd.f32 %v4246_v61, %v4214_v30 }
 0x6c1   :  { %v4158_v23 = vadd.f32 %v4157_v48, %v4122_v18 }
 0x6c2   :  { %v4219_v43 = vpop.f32.mrf.mxu3 }
 0x6c3   :  { %v4189_v5 = vadd.f32 %v4188_v33, %v4158_v23 }
 0x6c5   :  { %v4220_v35 = vadd.f32 %v4219_v43, %v4189_v5 }
 0x6c8   :  { %v4273_v12 = vpop.f32.mrf.mxu1  ;;  %v4250_v14 = vpop.f32.mrf.mxu0 }
 0x6c9   :  { %v7994_v29 = vadd.f32 %v4273_v12, %v4247_v54  ;;  %v4316_v40 = vpop.f32.mrf.mxu2  ;;  %v4251_v9 = vadd.f32 %v4250_v14, %v4220_v35 }
 0x6cb   :  { %v4494_v53 = vsel %vm2777_vm12, %v7994_v29, -inf }
 0x6cc   :  { %4495 = vmax.xlane.f32.xlu0 %v4494_v53 }
 0x6cd   :  { %v4355_v27 = vpop.f32.mrf.mxu3 }
 0x6ce   :  { %v4356_v44 = vadd.f32 %v4355_v27, %v4316_v40 }
 0x6d0   :  { %v4277_v20 = vpop.f32.mrf.mxu1 }
 0x6d1   :  { %v7998_v57 = vadd.f32 %v4277_v20, %v4251_v9  ;;  %v4324_v6 = vpop.f32.mrf.mxu2  ;;  %v4385_v52 = vpop.f32.mrf.mxu0 }
 0x6d2   :  { %v4386_v33 = vadd.f32 %v4385_v52, %v4356_v44  ;;  %v4484_v54 = vpop.xlane.xlu1 %4483 }
 0x6d3   :  { %v4497_v48 = vsel %vm2777_vm12, %v7998_v57, -inf  ;;  %v4506_v20 = vsub.f32 %v7975_v19, %v4484_v54 }
 0x6d4   :  { %4498 = vmax.xlane.f32.xlu1 %v4497_v48 }
 0x6d5   :  { %v4359_v18 = vpop.f32.mrf.mxu3  ;;  %v4514_v52 = vmul.f32 1.442695, %v4506_v20 }
 0x6d6   :  { %v4360_v35 = vadd.f32 %v4359_v18, %v4324_v6 }
 0x6d8   :  { %v4415_v61 = vpop.f32.mrf.mxu1 }
 0x6d9   :  { %v4416_v30 = vadd.f32 %v4415_v61, %v4386_v33  ;;  %v4448_v23 = vpop.f32.mrf.mxu2  ;;  %v4390_v5 = vpop.f32.mrf.mxu0 }
 0x6da   :  { %v4487_v43 = vpop.xlane.xlu0 %4486  ;;  %v4391_v56 = vadd.f32 %v4390_v5, %v4360_v35 }
 0x6db   :  { %v4449_v12 = vadd.f32 %v4448_v23, %v4416_v30  ;;  %v4507_v14 = vsub.f32 %v7982_v7, %v4487_v43 }
 0x6dd   :  { %v4475_v53 = vpop.f32.mrf.mxu3  ;;  %v4516_v37 = vmul.f32 1.442695, %v4507_v14 }
 0x6de   :  { %v4476_v9 = vadd.f32 %v4475_v53, %v4449_v12 }
 0x6df   :  { %6427 = vpow2.f32 %v4516_v37 }
 0x6e0   :  { %v4500_v48 = vsel %vm2777_vm12, %v4476_v9, -inf  ;;  %v4421_v40 = vpop.f32.mrf.mxu1  ;;  %6429 = vpow2.f32 %v4514_v52 }
 0x6e1   :  { %4501 = vmax.xlane.f32.xlu2 %v4500_v48  ;;  %v4422_v27 = vadd.f32 %v4421_v40, %v4391_v56  ;;  %v4452_v44 = vpop.f32.mrf.mxu2 }
 0x6e3   :  { %v4453_v33 = vadd.f32 %v4452_v44, %v4422_v27 }
 0x6e5   :  { %v4479_v61 = vpop.f32.mrf.mxu3  ;;  %v6428_v23 = vpop.eup %6427 }
 0x6e6   :  { %v8005_v30 = vadd.f32 %v4479_v61, %v4453_v33  ;;  %v4533_v19 = vsel %vm2777_vm12, %v6428_v23, 0.0  ;;  %v6430_v7 = vpop.eup %6429 }
 0x6e7   :  { %4534 = vadd.xlane.f32.xlu0 %v4533_v19  ;;  %v4530_v37 = vsel %vm2777_vm12, %v6430_v7, 0.0 }
 0x6e8   :  { %v4503_v6 = vsel %vm2777_vm12, %v8005_v30, -inf }
 0x6e9   :  { %4504 = vmax.xlane.f32.xlu2 %v4503_v6 }
 0x6ed   :  { %4772 = vrot.lane.b32.xlu1 %v7722_v2, %s6672_s13 }
 0x6f1   :  { %4531 = vadd.xlane.f32.xlu2 %v4530_v37 }
 0x6f5   :  { %4976 = vrot.lane.b32.xlu1 %v7740_v25, %s6672_s13 }
 0x6fb   :  { %4774 = vrot.lane.b32.xlu0 %v7697_v4, %s6672_s13 }
 0x721   :  { %v4490_v56 = vpop.xlane.xlu2 %4489 }
 0x722   :  { %v4508_v18 = vsub.f32 %v7986_v17, %v4490_v56  ;;  %v3144_v56 = vadd.f32 %v7817_v11, %v7809_v22 }
 0x724   :  { %v4518_v54 = vmul.f32 1.442695, %v4508_v18 }
 0x726   :  { %6431 = vpow2.f32 %v4518_v54 }
 0x729   :  { %v4493_v12 = vpop.xlane.xlu1 %4492 }
 0x72a   :  { %v4509_v53 = vsub.f32 %v7990_v10, %v4493_v12 }
 0x72c   :  { %v8019_v43 = vpop.eup %6431  ;;  %v4520_v2 = vmul.f32 1.442695, %v4509_v53  ;;  %v3346_v53 = vadd.f32 %v7840_v49, %v7835_v62 }
 0x72d   :  { %v4536_v5 = vsel %vm2777_vm12, %v8019_v43, 0.0 }
 0x72e   :  { %6433 = vpow2.f32 %v4520_v2  ;;  %4537 = vadd.xlane.f32.xlu2 %v4536_v5 }
 0x734   :  { %v8023_v25 = vpop.eup %6433 }
 0x735   :  { %v4539_v4 = vsel %vm2777_vm12, %v8023_v25, 0.0 }
 0x736   :  { %4540 = vadd.xlane.f32.xlu2 %v4539_v4  ;;  %v3376_v4 = vadd.f32 %v7864_v38, %v3346_v53  ;;  %v3148_v38 = vadd.f32 %v7832_v50, %v7821_v21 }
 0x738   :  { %v3406_v62 = vadd.f32 %v7873_v36, %v3376_v4  ;;  %v8559_v4 = vld [vmem:[#allocation43_spill] sm:$0xff] }
 0x73f   :  { %v4496_v17 = vpop.xlane.xlu0 %4495 }
 0x740   :  { %v4510_v14 = vsub.f32 %v7994_v29, %v4496_v17 }
 0x742   :  { %v4522_v35 = vmul.f32 1.442695, %v4510_v14 }
 0x744   :  { %6435 = vpow2.f32 %v4522_v35 }
 0x747   :  { %v4499_v10 = vpop.xlane.xlu1 %4498 }
 0x748   :  { %v4511_v20 = vsub.f32 %v7998_v57, %v4499_v10 }
 0x74a   :  { %v8029_v48 = vpop.eup %6435  ;;  %v4524_v40 = vmul.f32 1.442695, %v4511_v20 }
 0x74b   :  { %v4542_v27 = vsel %vm2777_vm12, %v8029_v48, 0.0 }
 0x74c   :  { %6437 = vpow2.f32 %v4524_v40  ;;  %4543 = vadd.xlane.f32.xlu2 %v4542_v27  ;;  %v3439_v40 = vadd.f32 %v7862_v34, %v3406_v62 }
 0x752   :  { %v8033_v52 = vpop.eup %6437 }
 0x753   :  { %v4545_v33 = vsel %vm2777_vm12, %v8033_v52, 0.0 }
 0x754   :  { %v4502_v44 = vpop.xlane.xlu2 %4501  ;;  %4546 = vadd.xlane.f32.xlu0 %v4545_v33  ;;  %v3179_v33 = vadd.f32 %v7824_v42, %v3148_v38 }
 0x755   :  { %v4512_v29 = vsub.f32 %v4476_v9, %v4502_v44  ;;  %v3174_v9 = vadd.f32 %v7811_v63, %v3144_v56 }
 0x757   :  { %v4526_v61 = vmul.f32 1.442695, %v4512_v29  ;;  %v3204_v2 = vadd.f32 %v7813_v8, %v3174_v9 }
 0x759   :  { %6439 = vpow2.f32 %v4526_v61  ;;  %v3237_v11 = vadd.f32 %v7837_v26, %v3204_v2 }
 0x75a   :  { %v4535_v57 = vpop.xlane.xlu0 %4534 }
 0x75b   :  { %6441 = vrcp.f32 %v4535_v57  ;;  %v3466_v57 = vadd.f32 %v7870_v13, %v3439_v40  ;;  %v3552_v13 = vadd.f32 %v7943_v58, %v7914_v55 }
 0x75c   :  { %v8037_v6 = vpop.xlane.xlu2 %4504 }
 0x75d   :  { %v3583_v55 = vadd.f32 %v7921_v1, %v3552_v13 }
 0x75f   :  { %v8039_v19 = vpop.eup %6439  ;;  %v4773_v18 = vpop.permute.xlu1 %4772 }
 0x760   :  { %v4548_v37 = vsel %vm2777_vm12, %v8039_v19, 0.0  ;;  %v8055_v63 = vand.u32 4294901760, %v4773_v18 }
 0x761   :  { %4549 = vadd.xlane.f32.xlu1 %v4548_v37  ;;  %v6442_v12 = vpop.eup %6441 }
 0x762   :  { %v4563_v5 = vmul.f32 %v6442_v12, %v6428_v23  ;;  %v4840_v8 = vsub.f32 %v4773_v18, %v8055_v63  ;;  %v3264_v23 = vadd.f32 %v7842_v24, %v3237_v11  ;;  %v3350_v24 = vadd.f32 %v7854_v59, %v7847_v3 }
 0x764   :  { %v4532_v54 = vpop.xlane.xlu2 %4531  ;;  %4974 = vrot.lane.b32.xlu2 %v7746_v51, %s6672_s13  ;;  %v4580_v51 = vsel %vm2777_vm12, %v4563_v5, 0  ;;  %v4841_v44 = vand.u32 4294901760, %v4840_v8  ;;  %v3381_v29 = vadd.f32 %v7879_v46, %v3350_v24 }
 0x765   :  { %6443 = vrcp.f32 %v4532_v54  ;;  %v8064_v10 = vand.u32 4294901760, %v4580_v51  ;;  %v3210_v54 = vadd.f32 %v7828_v32, %v3179_v33 }
 0x766   :  { %v4842_v37 = vsub.f32 %v4840_v8, %v4841_v44  ;;  %v3412_v42 = vadd.f32 %v7891_v60, %v3381_v29  ;;  %v4513_v60 = vsub.f32 %v8005_v30, %v8037_v6  ;;  %v3614_v30 = vadd.f32 %v7930_v28, %v3583_v55  ;;  %v8556_v28 = vld [vmem:[#allocation31_spill] sm:$0xff] }
 0x767   :  { %v4977_v35 = vpop.permute.xlu1 %4976  ;;  %v4609_v50 = vsub.f32 %v4580_v51, %v8064_v10  ;;  %v3241_v9 = vadd.f32 %v7849_v31, %v3210_v54 }
 0x768   :  { %5178 = vrot.lane.b32.xlu0 %v7762_v0, %s6672_s13  ;;  %v8069_v20 = vand.u32 4294901760, %v4977_v35  ;;  %v4843_v32 = vand.u32 4294901760, %v4842_v37  ;;  %v3443_v53 = vadd.f32 %v7877_v15, %v3412_v42  ;;  %v4528_v58 = vmul.f32 1.442695, %v4513_v60 }
 0x769   :  { %v4610_v18 = vand.u32 4294901760, %v4609_v50 }
 0x76a   :  { %v8082_v61 = vsub.f32 %v4977_v35, %v8069_v20  ;;  %v3470_v15 = vadd.f32 %v7885_v16, %v3443_v53  ;;  %6445 = vpow2.f32 %v4528_v58  ;;  %v8561_v35 = vld [vmem:[#allocation24_spill] sm:$0xff] }
 0x76b   :  { %v6444_v22 = vpop.eup %6443  ;;  %v4611_v12 = vsub.f32 %v4609_v50, %v4610_v18 }
 0x76c   :  { %v4562_v17 = vmul.f32 %v6444_v22, %v6430_v7  ;;  %v5037_v46 = vand.u32 4294901760, %v8082_v61  ;;  %v8558_v22 = vld [vmem:[#allocation25_spill] sm:$0xff] }
 0x76d   :  { %v4775_v0 = vpop.permute.xlu0 %4774  ;;  %v4612_v2 = vand.u32 4294901760, %v4611_v12 }
 0x76e   :  { %v4577_v14 = vsel %vm2777_vm12, %v4562_v17, 0  ;;  %v4798_v26 = vand.u32 4294901760, %v4775_v0  ;;  %v5038_v31 = vsub.f32 %v8082_v61, %v5037_v46  ;;  %v8560_v17 = vld [vmem:[#allocation33_spill] sm:$0xff] }
 0x76f   :  { %v8061_v49 = vand.u32 4294901760, %v4577_v14 }
 0x770   :  { %5382 = vrot.lane.b32.xlu0 %v3264_v23, %s6661_s26  ;;  %v4834_v36 = vsub.f32 %v4775_v0, %v4798_v26  ;;  %4799 = vmatpush.msrb.mxu2 %v4798_v26  ;;  %v5039_v5 = vand.u32 4294901760, %v5038_v31  ;;  %v8112_v6 = vpop.eup %6445 }
 0x771   :  { %v4601_v7 = vsub.f32 %v4577_v14, %v8061_v49  ;;  %4644 = vmatmul.f32.vlgmr.msrb.gmra.mxu1 %v8061_v49  ;;  %v4551_v16 = vsel %vm2777_vm12, %v8112_v6, 0.0 }
 0x772   :  { %4900 = vmatpush.msrb.mxu1 %v4798_v26  ;;  %v4835_v21 = vand.u32 4294901760, %v4834_v36  ;;  %4801 = vmatpush.msrb.mxu2 %v8055_v63 }
 0x773   :  { %4674 = vmatmul.f32.vlgmr.msra.gmra.mxu2 %v4601_v7  ;;  %v4602_v27 = vand.u32 4294901760, %v4601_v7 }
 0x774   :  { %4902 = vmatpush.msrb.mxu1 %v8055_v63  ;;  %v4836_v59 = vsub.f32 %v4834_v36, %v4835_v21  ;;  %4933 = vmatpush.msra.mxu2 %v4835_v21 }
 0x775   :  { %4704 = vmatmul.f32.vlgmr.msra.gmra.mxu3 %v4602_v27  ;;  %v4603_v3 = vsub.f32 %v4601_v7, %v4602_v27 }
 0x776   :  { %v4837_v56 = vand.u32 4294901760, %v4836_v59  ;;  %4937 = vmatpush.msra.mxu2 %v4841_v44 }
 0x777   :  { %v4604_v34 = vand.u32 4294901760, %v4603_v3 }
 0x778   :  { %5398 = vrot.lane.b32.xlu0 %v3466_v57, %s6673_s8  ;;  %4838 = vmatpush.msrb.mxu3 %v4837_v56 }
 0x779   :  { %4605 = vmatmul.f32.vlgmr.msrb.gmra.mxu0 %v4604_v34  ;;  %4648 = vmatmul.f32.gmra.mxu1 %v8064_v10 }
 0x77a   :  { %4870 = vmatpush.msrb.mxu0 %v4834_v36  ;;  %5176 = vrot.lane.b32.xlu1 %v7775_v45, %s6672_s13  ;;  %v3268_v45 = vadd.f32 %v7857_v41, %v3241_v9  ;;  %v3645_v41 = vadd.f32 %v7954_v39, %v3614_v30  ;;  %v8557_v39 = vld [vmem:[#allocation41_spill] sm:$0xff] }
 0x77b   :  { %4679 = vmatmul.f32.gmra.mxu2 %v4609_v50  ;;  %4844 = vmatpush.msrb.mxu3 %v4843_v32 }
 0x77c   :  { %4873 = vmatpush.msrb.mxu0 %v4840_v8  ;;  %v3672_v1 = vadd.f32 %v7965_v47, %v3645_v41  ;;  %v3548_v47 = vadd.f32 %v8557_v39, %v8556_v28 }
 0x77d   :  { %4710 = vmatmul.f32.gmra.mxu3 %v4610_v18 }
 0x77e   :  { %4962 = vmatpush.msra.mxu3 %v4798_v26  ;;  %v3578_v11 = vadd.f32 %v8558_v22, %v3548_v47 }
 0x780   :  { %4964 = vmatpush.msra.mxu3 %v8055_v63  ;;  %5384 = vrot.lane.b32.xlu0 %v3268_v45, %s6661_s26  ;;  %v3608_v63 = vadd.f32 %v8559_v4, %v3578_v11 }
 0x781   :  { %4613 = vmatmul.f32.gmra.mxu0 %v4612_v2  ;;  %4764 = vmatmul.f32.vlgmr.msra.gmra.mxu1 %v8061_v49 }
 0x782   :  { %5040 = vmatpush.msra.mxu1 %v5039_v5  ;;  %5400 = vrot.lane.b32.xlu1 %v3470_v15, %s6673_s8  ;;  %v3641_v51 = vadd.f32 %v8560_v17, %v3608_v63 }
 0x784   :  { %v3668_v62 = vadd.f32 %v8561_v35, %v3641_v51 }
 0x788   :  { %5416 = vrot.lane.b32.xlu0 %v3672_v1, %s6674_s14 }
 0x789   :  { %4737 = vmatmul.f32.vlgmr.msra.gmra.mxu0 %v8061_v49  ;;  %4768 = vmatmul.f32.gmra.mxu1 %v8064_v10 }
 0x78a   :  { %5001 = vmatpush.msra.mxu0 %v8069_v20 }
 0x78d   :  { %4552 = vadd.xlane.f32.xlu2 %v4551_v16 }
 0x791   :  { %4741 = vmatmul.f32.gmra.mxu0 %v8064_v10 }
 0x7a1   :  { %v4538_v14 = vpop.xlane.xlu2 %4537 }
 0x7a2   :  { %6447 = vrcp.f32 %v4538_v14 }
 0x7a5   :  { %5414 = vrot.lane.b32.xlu2 %v3668_v62, %s6674_s14 }
 0x7a8   :  { %v6448_v8 = vpop.eup %6447 }
 0x7a9   :  { %v4564_v49 = vmul.f32 %v6448_v8, %v8019_v43  ;;  %v4541_v0 = vpop.xlane.xlu2 %4540 }
 0x7aa   :  { %6449 = vrcp.f32 %v4541_v0 }
 0x7ab   :  { %v4779_v23 = vsel %vm2777_vm12, %v4564_v49, 0 }
 0x7ac   :  { %v4802_v26 = vand.u32 4294901760, %v4779_v23 }
 0x7ae   :  { %v4803_v10 = vsub.f32 %v4779_v23, %v4802_v26  ;;  %4846 = vmatmul.f32.vlgmr.msrb.gmra.mxu3 %v4802_v26 }
 0x7af   :  { %5102 = vmatpush.msrb.mxu3 %v8069_v20 }
 0x7b0   :  { %v6450_v38 = vpop.eup %6449  ;;  %4876 = vmatmul.f32.vlgmr.msrb.gmra.mxu0 %v4803_v10  ;;  %v4804_v7 = vand.u32 4294901760, %v4803_v10 }
 0x7b1   :  { %v4565_v36 = vmul.f32 %v6450_v38, %v8023_v25 }
 0x7b2   :  { %4906 = vmatmul.f32.vlgmr.msrb.gmra.mxu1 %v4804_v7  ;;  %v4805_v24 = vsub.f32 %v4803_v10, %v4804_v7 }
 0x7b3   :  { %v4782_v40 = vsel %vm2777_vm12, %v4565_v36, 0 }
 0x7b4   :  { %v4806_v27 = vand.u32 4294901760, %v4805_v24  ;;  %v4810_v43 = vand.u32 4294901760, %v4782_v40 }
 0x7b6   :  { %4807 = vmatmul.f32.vlgmr.msrb.gmra.mxu2 %v4806_v27  ;;  %4850 = vmatmul.f32.gmra.mxu3 %v4810_v43  ;;  %v4811_v44 = vsub.f32 %v4782_v40, %v4810_v43 }
 0x7b7   :  { %5072 = vmatpush.msrb.mxu2 %v8082_v61 }
 0x7b8   :  { %4881 = vmatmul.f32.gmra.mxu0 %v4811_v44  ;;  %v4812_v21 = vand.u32 4294901760, %v4811_v44 }
 0x7ba   :  { %4912 = vmatmul.f32.gmra.mxu1 %v4812_v21  ;;  %v4813_v50 = vsub.f32 %v4811_v44, %v4812_v21 }
 0x7bc   :  { %v4814_v33 = vand.u32 4294901760, %v4813_v50 }
 0x7be   :  { %4815 = vmatmul.f32.gmra.mxu2 %v4814_v33  ;;  %4966 = vmatmul.f32.vlgmr.msra.gmra.mxu3 %v4802_v26 }
 0x7bf   :  { %v4544_v29 = vpop.xlane.xlu2 %4543 }
 0x7c0   :  { %6451 = vrcp.f32 %v4544_v29 }
 0x7c6   :  { %v6452_v25 = vpop.eup %6451  ;;  %4939 = vmatmul.f32.vlgmr.msra.gmra.mxu2 %v4802_v26  ;;  %4970 = vmatmul.f32.gmra.mxu3 %v4810_v43 }
 0x7c7   :  { %v4566_v3 = vmul.f32 %v6452_v25, %v8029_v48  ;;  %v4975_v59 = vpop.permute.xlu2 %4974  ;;  %v4547_v34 = vpop.xlane.xlu0 %4546 }
 0x7c8   :  { %v5002_v57 = vand.u32 4294901760, %v4975_v59  ;;  %6453 = vrcp.f32 %v4547_v34 }
 0x7c9   :  { %v4981_v37 = vsel %vm2777_vm12, %v4566_v3, 0 }
 0x7ca   :  { %v5004_v56 = vand.u32 4294901760, %v4981_v37  ;;  %v5042_v18 = vsub.f32 %v4975_v59, %v5002_v57  ;;  %5003 = vmatpush.msra.mxu0 %v5002_v57  ;;  %5104 = vmatpush.msrb.mxu3 %v5002_v57 }
 0x7cc   :  { %5135 = vmatpush.msrb.mxu0 %v5037_v46  ;;  %v5005_v54 = vsub.f32 %v4981_v37, %v5004_v56  ;;  %5075 = vmatpush.msrb.mxu2 %v5042_v18  ;;  %v5043_v42 = vand.u32 4294901760, %v5042_v18 }
 0x7ce   :  { %v6454_v9 = vpop.eup %6453  ;;  %5139 = vmatpush.msrb.mxu0 %v5043_v42  ;;  %v5006_v48 = vand.u32 4294901760, %v5005_v54  ;;  %v5044_v13 = vsub.f32 %v5042_v18, %v5043_v42  ;;  %4943 = vmatmul.f32.gmra.mxu2 %v4810_v43 }
 0x7cf   :  { %v4567_v32 = vmul.f32 %v6454_v9, %v8033_v52 }
 0x7d0   :  { %5108 = vmatmul.f32.vlgmr.msrb.gmra.mxu3 %v5006_v48  ;;  %v5045_v60 = vand.u32 4294901760, %v5044_v13  ;;  %v5007_v12 = vsub.f32 %v5005_v54, %v5006_v48 }
 0x7d1   :  { %v4984_v53 = vsel %vm2777_vm12, %v4567_v32, 0 }
 0x7d2   :  { %5046 = vmatpush.msra.mxu1 %v5045_v60  ;;  %v5008_v31 = vand.u32 4294901760, %v5007_v12  ;;  %v5012_v55 = vand.u32 4294901760, %v4984_v53 }
 0x7d3   :  { %5048 = vmatmul.f32.vlgmr.msra.gmra.mxu1 %v5004_v56 }
 0x7d4   :  { %v4550_v61 = vpop.xlane.xlu1 %4549  ;;  %5164 = vmatpush.msrb.mxu1 %v8069_v20  ;;  %5009 = vmatmul.f32.vlgmr.msra.gmra.mxu0 %v5008_v31  ;;  %v5013_v46 = vsub.f32 %v4984_v53, %v5012_v55 }
 0x7d5   :  { %6455 = vrcp.f32 %v4550_v61 }
 0x7d6   :  { %5166 = vmatpush.msrb.mxu1 %v5002_v57  ;;  %v5014_v45 = vand.u32 4294901760, %v5013_v46  ;;  %5078 = vmatmul.f32.vlgmr.msrb.gmra.mxu2 %v5005_v54 }
 0x7d8   :  { %5114 = vmatmul.f32.gmra.mxu3 %v5014_v45  ;;  %v5015_v52 = vsub.f32 %v5013_v46, %v5014_v45 }
 0x7da   :  { %v5179_v2 = vpop.permute.xlu0 %5178  ;;  %v5016_v5 = vand.u32 4294901760, %v5015_v52 }
 0x7db   :  { %v6456_v58 = vpop.eup %6455  ;;  %v5202_v30 = vand.u32 4294901760, %v5179_v2  ;;  %5052 = vmatmul.f32.gmra.mxu1 %v5012_v55 }
 0x7dc   :  { %v4568_v15 = vmul.f32 %v6456_v58, %v8039_v19  ;;  %5017 = vmatmul.f32.gmra.mxu0 %v5016_v5 }
 0x7dd   :  { %v5238_v1 = vsub.f32 %v5179_v2, %v5202_v30  ;;  %5203 = vmatpush.msra.mxu2 %v5202_v30  ;;  %5304 = vmatpush.msra.mxu1 %v5202_v30 }
 0x7de   :  { %v5183_v41 = vsel %vm2777_vm12, %v4568_v15, 0  ;;  %5083 = vmatmul.f32.gmra.mxu2 %v5013_v46 }
 0x7df   :  { %v8142_v20 = vand.u32 4294901760, %v5183_v41  ;;  %v5239_v16 = vand.u32 4294901760, %v5238_v1  ;;  %5274 = vmatpush.msra.mxu0 %v5238_v1 }
 0x7e1   :  { %v5240_v28 = vsub.f32 %v5238_v1, %v5239_v16  ;;  %v5207_v39 = vsub.f32 %v5183_v41, %v8142_v20 }
 0x7e3   :  { %v5241_v47 = vand.u32 4294901760, %v5240_v28  ;;  %5168 = vmatmul.f32.vlgmr.msrb.gmra.mxu1 %v5004_v56  ;;  %v5208_v19 = vand.u32 4294901760, %v5207_v39 }
 0x7e4   :  { %5141 = vmatmul.f32.vlgmr.msrb.gmra.mxu0 %v5004_v56 }
 0x7e5   :  { %5242 = vmatpush.msra.mxu3 %v5241_v47  ;;  %v5209_v22 = vsub.f32 %v5207_v39, %v5208_v19 }
 0x7e7   :  { %v5210_v63 = vand.u32 4294901760, %v5209_v22 }
 0x7eb   :  { %5172 = vmatmul.f32.gmra.mxu1 %v5012_v55 }
 0x7ec   :  { %v5177_v11 = vpop.permute.xlu1 %5176  ;;  %5145 = vmatmul.f32.gmra.mxu0 %v5012_v55 }
 0x7ed   :  { %v5204_v4 = vand.u32 4294901760, %v5177_v11 }
 0x7ee   :  { %v4645_v14 = vpop.f32.mrf.mxu1 }
 0x7ef   :  { %v5244_v17 = vsub.f32 %v5177_v11, %v5204_v4  ;;  %5205 = vmatpush.msra.mxu2 %v5204_v4  ;;  %5306 = vmatpush.msra.mxu1 %v5204_v4 }
 0x7f0   :  { %5211 = vmatmul.f32.vlgmr.msra.gmra.mxu2 %v5210_v63 }
 0x7f1   :  { %5337 = vmatpush.msrb.mxu2 %v5239_v16  ;;  %5277 = vmatpush.msra.mxu0 %v5244_v17  ;;  %v5245_v51 = vand.u32 4294901760, %v5244_v17 }
 0x7f3   :  { %5341 = vmatpush.msrb.mxu2 %v5245_v51  ;;  %5310 = vmatmul.f32.vlgmr.msra.gmra.mxu1 %v5208_v19  ;;  %v5246_v35 = vsub.f32 %v5244_v17, %v5245_v51 }
 0x7f4   :  { %5280 = vmatmul.f32.vlgmr.msra.gmra.mxu0 %v5207_v39 }
 0x7f5   :  { %v5247_v8 = vand.u32 4294901760, %v5246_v35 }
 0x7f6   :  { %v4606_v62 = vpop.f32.mrf.mxu0  ;;  %v4675_v0 = vpop.f32.mrf.mxu2 }
 0x7f7   :  { %v4646_v49 = vadd.f32 %v4645_v14, %v4606_v62  ;;  %5248 = vmatpush.msra.mxu3 %v5247_v8  ;;  %v4649_v38 = vpop.f32.mrf.mxu1 }
 0x7f8   :  { %v4705_v26 = vpop.f32.mrf.mxu3  ;;  %5250 = vmatmul.f32.vlgmr.msra.gmra.mxu3 %v8142_v20 }
 0x7f9   :  { %v4676_v23 = vadd.f32 %v4675_v0, %v4646_v49  ;;  %5366 = vmatpush.msrb.mxu3 %v5202_v30 }
 0x7fb   :  { %v4706_v10 = vadd.f32 %v4705_v26, %v4676_v23  ;;  %5368 = vmatpush.msrb.mxu3 %v5204_v4  ;;  %v8562_v26 = vld [vmem:[#allocation21_spill] sm:$0xff] }
 0x7fe   :  { %v4614_v7 = vpop.f32.mrf.mxu0  ;;  %v4680_v24 = vpop.f32.mrf.mxu2 }
 0x7ff   :  { %v4650_v36 = vadd.f32 %v4649_v38, %v4614_v7  ;;  %v4765_v21 = vpop.f32.mrf.mxu1 }
 0x800   :  { %v4553_v40 = vpop.xlane.xlu2 %4552  ;;  %v4711_v43 = vpop.f32.mrf.mxu3 }
 0x801   :  { %v4681_v27 = vadd.f32 %v4680_v24, %v4650_v36  ;;  %6457 = vrcp.f32 %v4553_v40 }
 0x803   :  { %v4712_v44 = vadd.f32 %v4711_v43, %v4681_v27  ;;  %v8564_v27 = vld [vmem:[#allocation39_spill] sm:$0xff] }
 0x806   :  { %v4738_v50 = vpop.f32.mrf.mxu0 }
 0x807   :  { %v6458_v33 = vpop.eup %6457  ;;  %v4739_v29 = vadd.f32 %v4738_v50, %v4706_v10  ;;  %v4769_v54 = vpop.f32.mrf.mxu1  ;;  %v8563_v10 = vld [vmem:[#allocation29_spill] sm:$0xff] }
 0x808   :  { %v4569_v25 = vmul.f32 %v6458_v33, %v8112_v6  ;;  %v2942_v38 = vadd.f32 %v8563_v10, %v8562_v26  ;;  %v8565_v33 = vld [vmem:[#allocation20_spill] sm:$0xff] }
 0x809   :  { %v8147_v3 = vadd.f32 %v4765_v21, %v4739_v29 }
 0x80a   :  { %v5186_v59 = vsel %vm2777_vm12, %v4569_v25, 0  ;;  %v2972_v43 = vadd.f32 %v8564_v27, %v2942_v38  ;;  %v8566_v25 = vld [vmem:[#allocation42_spill] sm:$0xff] }
 0x80b   :  { %v5214_v34 = vand.u32 4294901760, %v5186_v59 }
 0x80c   :  { %v3002_v29 = vadd.f32 %v8565_v33, %v2972_v43  ;;  %v8574_v33 = vld [vmem:[#allocation19_spill] sm:$0xff] }
 0x80d   :  { %5254 = vmatmul.f32.gmra.mxu3 %v5214_v34  ;;  %v5215_v57 = vsub.f32 %v5186_v59, %v5214_v34 }
 0x80e   :  { %v4742_v37 = vpop.f32.mrf.mxu0  ;;  %v3035_v59 = vadd.f32 %v8566_v25, %v3002_v29 }
 0x80f   :  { %v4743_v56 = vadd.f32 %v4742_v37, %v4712_v44  ;;  %5285 = vmatmul.f32.gmra.mxu0 %v5215_v57  ;;  %v5216_v18 = vand.u32 4294901760, %v5215_v57  ;;  %v5383_v44 = vpop.permute.xlu0 %5382 }
 0x811   :  { %v8150_v42 = vadd.f32 %v4769_v54, %v4743_v56  ;;  %5316 = vmatmul.f32.gmra.mxu1 %v5216_v18  ;;  %v5217_v9 = vsub.f32 %v5215_v57, %v5216_v18  ;;  %v5415_v56 = vpop.permute.xlu2 %5414 }
 0x813   :  { %v5218_v48 = vand.u32 4294901760, %v5217_v9 }
 0x815   :  { %5219 = vmatmul.f32.gmra.mxu2 %v5218_v48  ;;  %5370 = vmatmul.f32.vlgmr.msrb.gmra.mxu3 %v8142_v20  ;;  %v8568_v48 = vld [vmem:[#allocation30_spill] sm:$0xff] }
 0x817   :  { %v5399_v37 = vpop.permute.xlu0 %5398 }
 0x81d   :  { %5343 = vmatmul.f32.vlgmr.msrb.gmra.mxu2 %v8142_v20  ;;  %5374 = vmatmul.f32.gmra.mxu3 %v5214_v34 }
 0x825   :  { %5347 = vmatmul.f32.gmra.mxu2 %v5214_v34  ;;  %v8567_v34 = vld [vmem:[#allocation45_spill] sm:$0xff] }
 0x826   :  { %v3062_v57 = vadd.f32 %v8567_v34, %v3035_v59  ;;  %v6479_v34 = vld [vmem:[#allocation2 + $0x10] sm:$0xff] }
 0x828   :  { %v5426_v18 = vsel %vm1972_vm11, %v3062_v57, %v5383_v44 }
 0x829   :  { %v5430_v54 = vsel %vm2777_vm12, %v5426_v18, %v5399_v37 }
 0x82a   :  { %v5435_v9 = vsel %vm5434_vm13, %v5430_v54, %v5415_v56 }
 0x82d   :  { %v4877_v60 = vpop.f32.mrf.mxu0 }
 0x82f   :  { %v4907_v32 = vpop.f32.mrf.mxu1 }
 0x831   :  { %v4847_v6 = vpop.f32.mrf.mxu3 }
 0x835   :  { %v4882_v46 = vpop.f32.mrf.mxu0 }
 0x837   :  { %v4913_v61 = vpop.f32.mrf.mxu1 }
 0x839   :  { %v4808_v13 = vpop.f32.mrf.mxu2  ;;  %v4851_v12 = vpop.f32.mrf.mxu3 }
 0x83a   :  { %v4848_v53 = vadd.f32 %v4847_v6, %v4808_v13  ;;  %v8569_v6 = vld [vmem:[#allocation28_spill] sm:$0xff] }
 0x83b   :  { %v2946_v13 = vadd.f32 %v8569_v6, %v8568_v48 }
 0x83c   :  { %v4878_v55 = vadd.f32 %v4877_v60, %v4848_v53 }
 0x83e   :  { %v4908_v52 = vadd.f32 %v4907_v32, %v4878_v55  ;;  %v6477_v32 = vld [vmem:[#allocation2] sm:$0xff]  ;;  %v5385_v55 = vpop.permute.xlu0 %5384 }
 0x83f   :  { %v8169_v60 = vadd.f32 %v6477_v32, %v5435_v9 }
 0x841   :  { %v4816_v31 = vpop.f32.mrf.mxu2  ;;  %v4967_v58 = vpop.f32.mrf.mxu3 }
 0x842   :  { %v4852_v45 = vadd.f32 %v4851_v12, %v4816_v31  ;;  %v8570_v12 = vld [vmem:[#allocation34_spill] sm:$0xff]  ;;  %v5445_v31 = vsel %vm135_vm0, %v8169_v60, 0.0 }
 0x843   :  { %v2977_v53 = vadd.f32 %v8570_v12, %v2946_v13  ;;  %v6480_v13 = vld [vmem:[#allocation2 + $0x18] sm:$0xff] }
 0x844   :  { %v4883_v15 = vadd.f32 %v4882_v46, %v4852_v45  ;;  %v8572_v45 = vld [vmem:[#allocation37_spill] sm:$0xff] }
 0x846   :  { %v4914_v1 = vadd.f32 %v4913_v61, %v4883_v15  ;;  %v8571_v61 = vld [vmem:[#allocation23_spill] sm:$0xff]  ;;  %v5401_v15 = vpop.permute.xlu1 %5400 }
 0x847   :  { %v3008_v46 = vadd.f32 %v8571_v61, %v2977_v53 }
 0x849   :  { %v4940_v2 = vpop.f32.mrf.mxu2  ;;  %v4971_v39 = vpop.f32.mrf.mxu3 }
 0x84a   :  { %v4941_v5 = vadd.f32 %v4940_v2, %v4908_v52  ;;  %v3039_v52 = vadd.f32 %v8572_v45, %v3008_v46 }
 0x84c   :  { %v4968_v30 = vadd.f32 %v4967_v58, %v4941_v5  ;;  %v8573_v58 = vld [vmem:[#allocation38_spill] sm:$0xff] }
 0x84d   :  { %v3066_v2 = vadd.f32 %v8573_v58, %v3039_v52 }
 0x84e   :  { %5386 = vrot.lane.b32.xlu1 %v4968_v30, %s6661_s26  ;;  %v5417_v30 = vpop.permute.xlu0 %5416 }
 0x84f   :  { %v5427_v5 = vsel %vm1972_vm11, %v3066_v2, %v5385_v55 }
 0x850   :  { %v5049_v41 = vpop.f32.mrf.mxu1 }
 0x851   :  { %v5010_v20 = vpop.f32.mrf.mxu0  ;;  %v4944_v16 = vpop.f32.mrf.mxu2 }
 0x852   :  { %v4945_v28 = vadd.f32 %v4944_v16, %v4914_v1  ;;  %v5050_v11 = vadd.f32 %v5049_v41, %v5010_v20  ;;  %v5431_v1 = vsel %vm2777_vm12, %v5427_v5, %v5401_v15 }
 0x853   :  { %v5109_v17 = vpop.f32.mrf.mxu3  ;;  %v5436_v20 = vsel %vm5434_vm13, %v5431_v1, %v5417_v30  ;;  %v5549_v1 = vld [vmem:[#allocation7 + $0x10] sm:$0xff] }
 0x854   :  { %v4972_v47 = vadd.f32 %v4971_v39, %v4945_v28  ;;  %v6478_v28 = vld [vmem:[#allocation2 + $0x8] sm:$0xff] }
 0x855   :  { %v8180_v39 = vadd.f32 %v6478_v28, %v5436_v20  ;;  %v5548_v20 = vld [vmem:[#allocation7 + $0x8] sm:$0xff] }
 0x856   :  { %5388 = vrot.lane.b32.xlu1 %v4972_v47, %s6661_s26 }
 0x858   :  { %v5053_v19 = vpop.f32.mrf.mxu1 }
 0x859   :  { %v5018_v22 = vpop.f32.mrf.mxu0  ;;  %v5079_v4 = vpop.f32.mrf.mxu2 }
 0x85a   :  { %v5080_v63 = vadd.f32 %v5079_v4, %v5050_v11  ;;  %v5054_v62 = vadd.f32 %v5053_v19, %v5018_v22  ;;  %v5448_v22 = vsel %vm135_vm0, %v8180_v39, 0.0 }
 0x85b   :  { %v5115_v7 = vpop.f32.mrf.mxu3 }
 0x85c   :  { %v5110_v51 = vadd.f32 %v5109_v17, %v5080_v63 }
 0x860   :  { %v5169_v14 = vpop.f32.mrf.mxu1 }
 0x861   :  { %v5142_v35 = vpop.f32.mrf.mxu0  ;;  %v5084_v8 = vpop.f32.mrf.mxu2 }
 0x862   :  { %v5143_v49 = vadd.f32 %v5142_v35, %v5110_v51  ;;  %v5085_v0 = vadd.f32 %v5084_v8, %v5054_v62 }
 0x864   :  { %v5170_v23 = vadd.f32 %v5169_v14, %v5143_v49  ;;  %v5116_v36 = vadd.f32 %v5115_v7, %v5085_v0 }
 0x866   :  { %5402 = vrot.lane.b32.xlu0 %v5170_v23, %s6673_s8 }
 0x868   :  { %v5173_v21 = vpop.f32.mrf.mxu1 }
 0x869   :  { %v5146_v24 = vpop.f32.mrf.mxu0 }
 0x86a   :  { %v5147_v40 = vadd.f32 %v5146_v24, %v5116_v36 }
 0x86c   :  { %v5174_v50 = vadd.f32 %v5173_v21, %v5147_v40 }
 0x86e   :  { %5404 = vrot.lane.b32.xlu0 %v5174_v50, %s6673_s8 }
 0x870   :  { %v5311_v17 = vpop.f32.mrf.mxu1 }
 0x871   :  { %v5281_v4 = vpop.f32.mrf.mxu0 }
 0x873   :  { %v5212_v16 = vpop.f32.mrf.mxu2 }
 0x87b   :  { %v5251_v41 = vpop.f32.mrf.mxu3 }
 0x87c   :  { %v5252_v19 = vadd.f32 %v5251_v41, %v5212_v16  ;;  %v5550_v41 = vld [vmem:[#allocation7 + $0x18] sm:$0xff] }
 0x87e   :  { %v5282_v63 = vadd.f32 %v5281_v4, %v5252_v19  ;;  %v5581_v19 = vand.u32 4294901760, %v5549_v1 }
 0x880   :  { %5446 = vadd.xlane.f32.xlu1 %v5445_v31  ;;  %v5312_v14 = vadd.f32 %v5311_v17, %v5282_v63 }
 0x88c   :  { %v5286_v49 = vpop.f32.mrf.mxu0 }
 0x88e   :  { %v5317_v26 = vpop.f32.mrf.mxu1 }
 0x890   :  { %v5255_v47 = vpop.f32.mrf.mxu3 }
 0x898   :  { %v5220_v11 = vpop.f32.mrf.mxu2  ;;  %5449 = vadd.xlane.f32.xlu0 %v5448_v22  ;;  %v5371_v35 = vpop.f32.mrf.mxu3  ;;  %v5547_v22 = vld [vmem:[#allocation7] sm:$0xff] }
 0x899   :  { %v5256_v51 = vadd.f32 %v5255_v47, %v5220_v11  ;;  %v5579_v47 = vand.u32 4294901760, %v5550_v41  ;;  %v8225_v11 = vand.u32 4294901760, %v5548_v20  ;;  %v8227_v4 = vand.u32 4294901760, %v5547_v22 }
 0x89b   :  { %v5287_v0 = vadd.f32 %v5286_v49, %v5256_v51  ;;  %v5633_v51 = vsub.f32 %v5550_v41, %v5579_v47  ;;  %5731 = vmatpush.msra.mxu3 %v5579_v47  ;;  %5580 = vmatpush.msrb.mxu0 %v5579_v47 }
 0x89d   :  { %v5318_v10 = vadd.f32 %v5317_v26, %v5287_v0  ;;  %v5634_v49 = vand.u32 4294901760, %v5633_v51  ;;  %5687 = vmatpush.msra.mxu2 %v5633_v51  ;;  %5733 = vmatpush.msra.mxu3 %v5581_v19 }
 0x89e   :  { %5582 = vmatpush.msrb.mxu0 %v5581_v19 }
 0x89f   :  { %5735 = vmatpush.msra.mxu3 %v8225_v11 }
 0x8a0   :  { %v5344_v62 = vpop.f32.mrf.mxu2  ;;  %v5375_v36 = vpop.f32.mrf.mxu3  ;;  %5584 = vmatpush.msrb.mxu0 %v8225_v11 }
 0x8a1   :  { %v5345_v8 = vadd.f32 %v5344_v62, %v5312_v14  ;;  %v5639_v14 = vsub.f32 %v5549_v1, %v5581_v19  ;;  %v5651_v62 = vsub.f32 %v5547_v22, %v8227_v4  ;;  %5737 = vmatpush.msra.mxu3 %v8227_v4 }
 0x8a2   :  { %5586 = vmatpush.msrb.mxu0 %v8227_v4 }
 0x8a3   :  { %v5372_v23 = vadd.f32 %v5371_v35, %v5345_v8  ;;  %v5645_v35 = vsub.f32 %v5548_v20, %v8225_v11  ;;  %v5640_v0 = vand.u32 4294901760, %v5639_v14  ;;  %v5652_v26 = vand.u32 4294901760, %v5651_v62  ;;  %5690 = vmatpush.msra.mxu2 %v5639_v14 }
 0x8a4   :  { %5778 = vmatpush.msra.mxu0 %v5634_v49 }
 0x8a5   :  { %5418 = vrot.lane.b32.xlu2 %v5372_v23, %s6674_s14  ;;  %v5646_v23 = vand.u32 4294901760, %v5645_v35  ;;  %5693 = vmatpush.msra.mxu2 %v5645_v35 }
 0x8a6   :  { %5782 = vmatpush.msra.mxu0 %v5640_v0 }
 0x8a7   :  { %5696 = vmatpush.msra.mxu2 %v5651_v62 }
 0x8a8   :  { %v5348_v38 = vpop.f32.mrf.mxu2  ;;  %5786 = vmatpush.msra.mxu0 %v5646_v23 }
 0x8a9   :  { %v5349_v7 = vadd.f32 %v5348_v38, %v5318_v10 }
 0x8aa   :  { %5790 = vmatpush.msra.mxu0 %v5652_v26 }
 0x8ab   :  { %v5376_v24 = vadd.f32 %v5375_v36, %v5349_v7  ;;  %v5635_v7 = vsub.f32 %v5633_v51, %v5634_v49 }
 0x8ad   :  { %5420 = vrot.lane.b32.xlu2 %v5376_v24, %s6674_s14  ;;  %v5641_v24 = vsub.f32 %v5639_v14, %v5640_v0 }
 0x8c0   :  { %v5387_v40 = vpop.permute.xlu1 %5386 }
 0x8c1   :  { %v5428_v21 = vsel %vm1972_vm11, %v8147_v3, %v5387_v40  ;;  %v5647_v40 = vsub.f32 %v5645_v35, %v5646_v23 }
 0x8c8   :  { %v5389_v27 = vpop.permute.xlu1 %5388 }
 0x8c9   :  { %v5429_v3 = vsel %vm1972_vm11, %v8150_v42, %v5389_v27  ;;  %v5636_v27 = vand.u32 4294901760, %v5635_v7 }
 0x8cb   :  { %5637 = vmatpush.msrb.mxu1 %v5636_v27 }
 0x8d8   :  { %v5403_v43 = vpop.permute.xlu0 %5402 }
 0x8d9   :  { %v5432_v50 = vsel %vm2777_vm12, %v5428_v21, %v5403_v43  ;;  %v5653_v43 = vsub.f32 %v5651_v62, %v5652_v26  ;;  %v5642_v21 = vand.u32 4294901760, %v5641_v24 }
 0x8db   :  { %5643 = vmatpush.msrb.mxu1 %v5642_v21 }
 0x8e0   :  { %v5405_v37 = vpop.permute.xlu0 %5404 }
 0x8e1   :  { %v5433_v54 = vsel %vm2777_vm12, %v5429_v3, %v5405_v37 }
 0x8f3   :  { %v5447_v44 = vpop.xlane.xlu1 %5446 }
 0x8f4   :  { %v5457_v29 = vmul.f32 %v5447_v44, %v8574_v33 }
 0x8f6   :  { %v8194_v56 = vsub.f32 %v8169_v60, %v5457_v29  ;;  %v5648_v29 = vand.u32 4294901760, %v5647_v40 }
 0x8f8   :  { %v5465_v48 = vmul.f32 %v8194_v56, %v8194_v56  ;;  %5649 = vmatpush.msrb.mxu1 %v5648_v29 }
 0x8fa   :  { %v5469_v53 = vsel %vm135_vm0, %v5465_v48, 0.0  ;;  %v8245_v48 = vld [vmem:[%s8472_s5] ss:$0 sm:$0xff]  ;;  %s6676_s5 = smov [#allocation13]  }
 0x8ff   :  { %v5419_v25 = vpop.permute.xlu2 %5418 }
 0x900   :  { %v5437_v59 = vsel %vm5434_vm13, %v5432_v50, %v5419_v25 }
 0x901   :  { %v8191_v57 = vadd.f32 %v6479_v34, %v5437_v59  ;;  %v5654_v59 = vand.u32 4294901760, %v5653_v43 }
 0x903   :  { %v5451_v18 = vsel %vm135_vm0, %v8191_v57, 0.0  ;;  %5655 = vmatpush.msrb.mxu1 %v5654_v59 }
 0x904   :  { %5452 = vadd.xlane.f32.xlu2 %v5451_v18 }
 0x905   :  { %5821 = vmatpush.msra.mxu1 %v5579_v47 }
 0x907   :  { %v5421_v9 = vpop.permute.xlu2 %5420  ;;  %5823 = vmatpush.msra.mxu1 %v5581_v19 }
 0x908   :  { %v5438_v6 = vsel %vm5434_vm13, %v5433_v54, %v5421_v9 }
 0x909   :  { %v8204_v32 = vadd.f32 %v6480_v13, %v5438_v6  ;;  %5825 = vmatpush.msra.mxu1 %v8225_v11 }
 0x90b   :  { %v5450_v12 = vpop.xlane.xlu0 %5449  ;;  %v5454_v31 = vsel %vm135_vm0, %v8204_v32, 0.0  ;;  %5827 = vmatpush.msra.mxu1 %v8227_v4 }
 0x90c   :  { %v5458_v55 = vmul.f32 %v5450_v12, %v8574_v33  ;;  %5470 = vadd.xlane.f32.xlu2 %v5469_v53  ;;  %5455 = vadd.xlane.f32.xlu1 %v5454_v31  ;;  %v8251_v12 = vld [vmem:[%s8473_s6] ss:$0 sm:$0xff]  ;;  %s6338_s6 = sshll.u32 %s6676_s5, 4  ;;  %s6339_s6 = int_to_ptr.vmem [resolvable:$true] %s6338_s6 }
 0x90e   :  { %v8211_v42 = vsub.f32 %v8180_v39, %v5458_v55 }
 0x910   :  { %v5466_v61 = vmul.f32 %v8211_v42, %v8211_v42 }
 0x912   :  { %v5472_v46 = vsel %vm135_vm0, %v5466_v61, 0.0 }
 0x913   :  { %5473 = vadd.xlane.f32.xlu0 %v5472_v46 }
 0x977   :  { %v5453_v45 = vpop.xlane.xlu2 %5452 }
 0x978   :  { %v5459_v52 = vmul.f32 %v5453_v45, %v8574_v33 }
 0x97a   :  { %v8218_v58 = vsub.f32 %v8191_v57, %v5459_v52 }
 0x97c   :  { %v5467_v2 = vmul.f32 %v8218_v58, %v8218_v58 }
 0x97e   :  { %v5475_v5 = vsel %vm135_vm0, %v5467_v2, 0.0 }
 0x97f   :  { %v5471_v15 = vpop.xlane.xlu2 %5470  ;;  %5476 = vadd.xlane.f32.xlu1 %v5475_v5  ;;  %v5456_v30 = vpop.xlane.xlu1 %5455 }
 0x980   :  { %v5481_v16 = vmul.f32 %v5471_v15, %v8574_v33  ;;  %v5460_v28 = vmul.f32 %v5456_v30, %v8574_v33 }
 0x982   :  { %v5485_v63 = vadd.f32 1e-06, %v5481_v16  ;;  %v8230_v17 = vsub.f32 %v8204_v32, %v5460_v28 }
 0x984   :  { %6459 = vrsqrt.f32 %v5485_v63  ;;  %v5468_v8 = vmul.f32 %v8230_v17, %v8230_v17  ;;  %vm5495_vm15 = vweird.f32 %v5485_v63 }
 0x986   :  { %v5474_v10 = vpop.xlane.xlu0 %5473  ;;  %v5478_v38 = vsel %vm135_vm0, %v5468_v8, 0.0 }
 0x987   :  { %v5482_v36 = vmul.f32 %v5474_v10, %v8574_v33  ;;  %5479 = vadd.xlane.f32.xlu2 %v5478_v38 }
 0x989   :  { %v5486_v44 = vadd.f32 1e-06, %v5482_v36 }
 0x98a   :  { %v6460_v50 = vpop.eup %6459 }
 0x98b   :  { %v5490_v25 = vmul.f32 %v6460_v50, %v5485_v63  ;;  %6461 = vrsqrt.f32 %v5486_v44  ;;  %vm5496_vm14 = vweird.f32 %v6460_v50  ;;  %vm5505_vm3 = vweird.f32 %v5486_v44 }
 0x98c   :  { %vm5497_vm1 = vmor %vm5495_vm15, %vm5496_vm14 }
 0x98d   :  { %v5491_v34 = vmul.f32 %v6460_v50, %v5490_v25 }
 0x98f   :  { %v5492_v37 = vmul.f32 0.5, %v5491_v34 }
 0x991   :  { %v6462_v18 = vpop.eup %6461  ;;  %v5493_v3 = vsub.f32 1.5, %v5492_v37 }
 0x992   :  { %v5500_v54 = vmul.f32 %v6462_v18, %v5486_v44  ;;  %vm5506_vm2 = vweird.f32 %v6462_v18 }
 0x993   :  { %v5494_v9 = vmul.f32 %v6460_v50, %v5493_v3  ;;  %vm5507_vm4 = vmor %vm5505_vm3, %vm5506_vm2 }
 0x994   :  { %v5501_v6 = vmul.f32 %v6462_v18, %v5500_v54 }
 0x995   :  { %v5498_v13 = vsel %vm5497_vm1, %v6460_v50, %v5494_v9 }
 0x996   :  { %v5529_v53 = vmul.f32 %v5498_v13, %v8194_v56  ;;  %v5502_v31 = vmul.f32 0.5, %v5501_v6 }
 0x998   :  { %v5536_v55 = vmul.f32 %v8245_v48, %v5529_v53  ;;  %v5503_v61 = vsub.f32 1.5, %v5502_v31 }
 0x99a   :  { %v5543_v46 = vadd.f32 %v8251_v12, %v5536_v55  ;;  %v5504_v45 = vmul.f32 %v6462_v18, %v5503_v61 }
 0x99c   :  { %v5508_v52 = vsel %vm5507_vm4, %v6462_v18, %v5504_v45  ;;  %v5556_v2 = vsel %vm135_vm0, %v5543_v46, 0  ;;  %v6675_v46 = vmov 1.4142135  }
 0x99d   :  { %v5530_v5 = vmul.f32 %v5508_v52, %v8211_v42  ;;  %v8259_v15 = vand.u32 4294901760, %v5556_v2 }
 0x99f   :  { %v5537_v56 = vmul.f32 %v8245_v48, %v5530_v5  ;;  %5657 = vmatmul.f32.vlgmr.msrb.gmra.mxu1 %v8259_v15  ;;  %v5588_v30 = vsub.f32 %v5556_v2, %v8259_v15  ;;  %v6383_v2 = vld [vmem:[#allocation8] ss:$0 sm:$0xff] }
 0x9a1   :  { %5699 = vmatmul.f32.vlgmr.msra.gmra.mxu2 %v5588_v30  ;;  %v5589_v41 = vand.u32 4294901760, %v5588_v30  ;;  %v5544_v1 = vadd.f32 %v8251_v12, %v5537_v56 }
 0x9a3   :  { %5741 = vmatmul.f32.vlgmr.msra.gmra.mxu3 %v5589_v41  ;;  %v5590_v20 = vsub.f32 %v5588_v30, %v5589_v41  ;;  %v5559_v16 = vsel %vm135_vm0, %v5544_v1, 0 }
 0x9a4   :  { %v8266_v28 = vand.u32 4294901760, %v5559_v16 }
 0x9a5   :  { %v5591_v47 = vand.u32 4294901760, %v5590_v20 }
 0x9a6   :  { %v5596_v42 = vsub.f32 %v5559_v16, %v8266_v28 }
 0x9a7   :  { %5592 = vmatmul.f32.vlgmr.msrb.gmra.mxu0 %v5591_v47  ;;  %5661 = vmatmul.f32.gmra.mxu1 %v8266_v28 }
 0x9a8   :  { %v5597_v19 = vand.u32 4294901760, %v5596_v42 }
 0x9a9   :  { %5704 = vmatmul.f32.gmra.mxu2 %v5596_v42 }
 0x9aa   :  { %v5598_v22 = vsub.f32 %v5596_v42, %v5597_v19 }
 0x9ab   :  { %5747 = vmatmul.f32.gmra.mxu3 %v5597_v19 }
 0x9ac   :  { %v5599_v11 = vand.u32 4294901760, %v5598_v22 }
 0x9af   :  { %5600 = vmatmul.f32.gmra.mxu0 %v5599_v11 }
 0x9f2   :  { %v5477_v4 = vpop.xlane.xlu1 %5476 }
 0x9f3   :  { %v5483_v63 = vmul.f32 %v5477_v4, %v8574_v33 }
 0x9f5   :  { %v5487_v51 = vadd.f32 1e-06, %v5483_v63 }
 0x9f7   :  { %6463 = vrsqrt.f32 %v5487_v51  ;;  %vm5515_vm6 = vweird.f32 %v5487_v51 }
 0x9fa   :  { %v5480_v14 = vpop.xlane.xlu2 %5479 }
 0x9fb   :  { %v5484_v35 = vmul.f32 %v5480_v14, %v8574_v33 }
 0x9fd   :  { %v6464_v62 = vpop.eup %6463  ;;  %v5488_v8 = vadd.f32 1e-06, %v5484_v35 }
 0x9fe   :  { %v5510_v49 = vmul.f32 %v6464_v62, %v5487_v51  ;;  %vm5516_vm5 = vweird.f32 %v6464_v62 }
 0x9ff   :  { %6465 = vrsqrt.f32 %v5488_v8  ;;  %vm5517_vm7 = vmor %vm5515_vm6, %vm5516_vm5  ;;  %vm5525_vm9 = vweird.f32 %v5488_v8 }
 0xa00   :  { %v5511_v0 = vmul.f32 %v6464_v62, %v5510_v49  ;;  %6467 = vrcp.f32 %v6675_v46 }
 0xa02   :  { %v5512_v23 = vmul.f32 0.5, %v5511_v0 }
 0xa04   :  { %v5513_v26 = vsub.f32 1.5, %v5512_v23 }
 0xa05   :  { %v6466_v10 = vpop.eup %6465 }
 0xa06   :  { %v5514_v38 = vmul.f32 %v6464_v62, %v5513_v26  ;;  %v5520_v7 = vmul.f32 %v6466_v10, %v5488_v8  ;;  %vm5526_vm8 = vweird.f32 %v6466_v10  ;;  %v6468_v52 = vpop.eup %6467 }
 0xa07   :  { %vm5527_vm10 = vmor %vm5525_vm9, %vm5526_vm8  ;;  %v5850_v56 = vmul.f32 1.4142135, %v6468_v52  ;;  %vm5854_vm11 = vweird.f32 %v6468_v52 }
 0xa08   :  { %v5518_v36 = vsel %vm5517_vm7, %v6464_v62, %v5514_v38  ;;  %v5521_v24 = vmul.f32 %v6466_v10, %v5520_v7 }
 0xa09   :  { %v5531_v40 = vmul.f32 %v5518_v36, %v8218_v58  ;;  %v5851_v30 = vsub.f32 1.0, %v5850_v56 }
 0xa0a   :  { %v5522_v27 = vmul.f32 0.5, %v5521_v24 }
 0xa0b   :  { %v5538_v33 = vmul.f32 %v8245_v48, %v5531_v40 }
 0xa0c   :  { %v5523_v43 = vsub.f32 1.5, %v5522_v27 }
 0xa0d   :  { %v5545_v44 = vadd.f32 %v8251_v12, %v5538_v33 }
 0xa0e   :  { %v5524_v21 = vmul.f32 %v6466_v10, %v5523_v43 }
 0xa0f   :  { %v5562_v50 = vsel %vm135_vm0, %v5545_v44, 0 }
 0xa10   :  { %v5528_v29 = vsel %vm5527_vm10, %v6466_v10, %v5524_v21  ;;  %v5603_v25 = vand.u32 4294901760, %v5562_v50 }
 0xa11   :  { %v5532_v59 = vmul.f32 %v5528_v29, %v8230_v17 }
 0xa12   :  { %5665 = vmatmul.f32.gmra.mxu1 %v5603_v25  ;;  %v5604_v34 = vsub.f32 %v5562_v50, %v5603_v25 }
 0xa13   :  { %v5539_v58 = vmul.f32 %v8245_v48, %v5532_v59 }
 0xa14   :  { %5709 = vmatmul.f32.gmra.mxu2 %v5604_v34  ;;  %v5605_v37 = vand.u32 4294901760, %v5604_v34 }
 0xa15   :  { %v5546_v18 = vadd.f32 %v8251_v12, %v5539_v58 }
 0xa16   :  { %5753 = vmatmul.f32.gmra.mxu3 %v5605_v37  ;;  %v5606_v3 = vsub.f32 %v5604_v34, %v5605_v37 }
 0xa17   :  { %v5565_v54 = vsel %vm135_vm0, %v5546_v18, 0 }
 0xa18   :  { %v5607_v9 = vand.u32 4294901760, %v5606_v3  ;;  %v5611_v6 = vand.u32 4294901760, %v5565_v54 }
 0xa1a   :  { %5608 = vmatmul.f32.gmra.mxu0 %v5607_v9  ;;  %5669 = vmatmul.f32.gmra.mxu1 %v5611_v6  ;;  %v5612_v13 = vsub.f32 %v5565_v54, %v5611_v6 }
 0xa1c   :  { %5714 = vmatmul.f32.gmra.mxu2 %v5612_v13  ;;  %v5613_v53 = vand.u32 4294901760, %v5612_v13  ;;  %v5658_v48 = vpop.f32.mrf.mxu1 }
 0xa1e   :  { %5759 = vmatmul.f32.gmra.mxu3 %v5613_v53  ;;  %v5614_v17 = vsub.f32 %v5612_v13, %v5613_v53 }
 0xa20   :  { %v5615_v31 = vand.u32 4294901760, %v5614_v17 }
 0xa22   :  { %5616 = vmatmul.f32.gmra.mxu0 %v5615_v31  ;;  %5829 = vmatmul.f32.vlgmr.msra.gmra.mxu1 %v8259_v15 }
 0xa24   :  { %v5593_v12 = vpop.f32.mrf.mxu0  ;;  %v5662_v55 = vpop.f32.mrf.mxu1 }
 0xa25   :  { %v5700_v20 = vpop.f32.mrf.mxu2 }
 0xa26   :  { %v5742_v42 = vpop.f32.mrf.mxu3 }
 0xa2a   :  { %5792 = vmatmul.f32.vlgmr.msra.gmra.mxu0 %v8259_v15  ;;  %5833 = vmatmul.f32.gmra.mxu1 %v8266_v28  ;;  %v5594_v15 = vadd.f32 %v6383_v2, %v5593_v12 }
 0xa2c   :  { %v5601_v61 = vpop.f32.mrf.mxu0  ;;  %v5659_v41 = vadd.f32 %v5658_v48, %v5594_v15 }
 0xa2d   :  { %v5602_v19 = vadd.f32 %v6383_v2, %v5601_v61  ;;  %v5705_v35 = vpop.f32.mrf.mxu2 }
 0xa2e   :  { %v5701_v47 = vadd.f32 %v5700_v20, %v5659_v41  ;;  %v5748_v26 = vpop.f32.mrf.mxu3 }
 0xa2f   :  { %v5663_v14 = vadd.f32 %v5662_v55, %v5602_v19 }
 0xa30   :  { %v5743_v11 = vadd.f32 %v5742_v42, %v5701_v47 }
 0xa31   :  { %v5706_v0 = vadd.f32 %v5705_v35, %v5663_v14 }
 0xa32   :  { %5796 = vmatmul.f32.gmra.mxu0 %v8266_v28  ;;  %5837 = vmatmul.f32.gmra.mxu1 %v5603_v25  ;;  %v5852_v28 = vmul.f32 %v6468_v52, %v5851_v30 }
 0xa33   :  { %v5749_v7 = vadd.f32 %v5748_v26, %v5706_v0 }
 0xa34   :  { %v5853_v22 = vadd.f32 %v6468_v52, %v5852_v28 }
 0xa36   :  { %v8284_v62 = vsel %vm5854_vm11, %v6468_v52, %v5853_v22 }
 0xa3a   :  { %5800 = vmatmul.f32.gmra.mxu0 %v5603_v25  ;;  %5841 = vmatmul.f32.gmra.mxu1 %v5611_v6 }
 0xa42   :  { %5804 = vmatmul.f32.gmra.mxu0 %v5611_v6 }
 0xa8f   :  { %v5666_v45 = vpop.f32.mrf.mxu1 }
 0xa97   :  { %v5609_v5 = vpop.f32.mrf.mxu0  ;;  %v5670_v1 = vpop.f32.mrf.mxu1 }
 0xa98   :  { %v5610_v23 = vadd.f32 %v6383_v2, %v5609_v5  ;;  %v5710_v24 = vpop.f32.mrf.mxu2 }
 0xa99   :  { %v5754_v34 = vpop.f32.mrf.mxu3 }
 0xa9a   :  { %v5667_v36 = vadd.f32 %v5666_v45, %v5610_v23 }
 0xa9c   :  { %v5711_v29 = vadd.f32 %v5710_v24, %v5667_v36 }
 0xa9e   :  { %v5755_v9 = vadd.f32 %v5754_v34, %v5711_v29 }
 0xa9f   :  { %v5617_v16 = vpop.f32.mrf.mxu0  ;;  %v5830_v63 = vpop.f32.mrf.mxu1 }
 0xaa0   :  { %v5618_v25 = vadd.f32 %v6383_v2, %v5617_v16  ;;  %v5715_v55 = vpop.f32.mrf.mxu2 }
 0xaa1   :  { %v5760_v20 = vpop.f32.mrf.mxu3 }
 0xaa2   :  { %v5671_v6 = vadd.f32 %v5670_v1, %v5618_v25 }
 0xaa4   :  { %v5716_v52 = vadd.f32 %v5715_v55, %v5671_v6 }
 0xaa6   :  { %v5761_v47 = vadd.f32 %v5760_v20, %v5716_v52 }
 0xaa7   :  { %v5793_v4 = vpop.f32.mrf.mxu0  ;;  %v5834_v33 = vpop.f32.mrf.mxu1 }
 0xaa8   :  { %v5794_v51 = vadd.f32 %v5793_v4, %v5743_v11 }
 0xaaa   :  { %v8286_v8 = vadd.f32 %v5830_v63, %v5794_v51 }
 0xaac   :  { %v8290_v49 = vmul.f32 %v8284_v62, %v8286_v8 }
 0xaae   :  { %v5860_v10 = vmul.f32 %v8290_v49, %v8290_v49 }
 0xaaf   :  { %v5797_v43 = vpop.f32.mrf.mxu0  ;;  %v5838_v45 = vpop.f32.mrf.mxu1 }
 0xab0   :  { %v8294_v38 = vmin.f32 %v5860_v10, 16.0  ;;  %v5798_v44 = vadd.f32 %v5797_v43, %v5749_v7 }
 0xab2   :  { %v5862_v40 = vmul.f32 2.1237322e-06, %v8294_v38  ;;  %v5873_v27 = vmul.f32 3.8918573e-05, %v8294_v38  ;;  %v8298_v59 = vadd.f32 %v5834_v33, %v5798_v44 }
 0xab4   :  { %v5863_v21 = vadd.f32 0.00028619796, %v5862_v40  ;;  %v5874_v50 = vadd.f32 0.001143296, %v5873_v27  ;;  %v8304_v18 = vmul.f32 %v8284_v62, %v8298_v59 }
 0xab6   :  { %v5864_v58 = vmul.f32 %v5863_v21, %v8294_v38  ;;  %v5875_v37 = vmul.f32 %v5874_v50, %v8294_v38  ;;  %v5900_v13 = vmul.f32 %v8304_v18, %v8304_v18 }
 0xab7   :  { %v5801_v31 = vpop.f32.mrf.mxu0  ;;  %v5842_v24 = vpop.f32.mrf.mxu1 }
 0xab8   :  { %v5865_v3 = vadd.f32 0.0036580483, %v5864_v58  ;;  %v5876_v54 = vadd.f32 0.014752088, %v5875_v37  ;;  %v8310_v48 = vmin.f32 %v5900_v13, 16.0  ;;  %v5802_v12 = vadd.f32 %v5801_v31, %v5755_v9 }
 0xaba   :  { %v5866_v53 = vmul.f32 %v5865_v3, %v8294_v38  ;;  %v5877_v17 = vmul.f32 %v5876_v54, %v8294_v38  ;;  %v5902_v2 = vmul.f32 2.1237322e-06, %v8310_v48  ;;  %v5913_v5 = vmul.f32 3.8918573e-05, %v8310_v48 }
 0xabb   :  { %v8314_v56 = vadd.f32 %v5838_v45, %v5802_v12 }
 0xabc   :  { %v5867_v61 = vadd.f32 0.05243302, %v5866_v53  ;;  %v5878_v46 = vadd.f32 0.112945676, %v5877_v17  ;;  %v5903_v30 = vadd.f32 0.00028619796, %v5902_v2 }
 0xabd   :  { %v5914_v41 = vadd.f32 0.001143296, %v5913_v5  ;;  %v8319_v1 = vmul.f32 %v8284_v62, %v8314_v56 }
 0xabe   :  { %v5879_v15 = vmul.f32 %v5878_v46, %v8294_v38  ;;  %v5868_v16 = vmul.f32 %v5867_v61, %v8294_v38  ;;  %v5904_v42 = vmul.f32 %v5903_v30, %v8310_v48 }
 0xabf   :  { %v5915_v19 = vmul.f32 %v5914_v41, %v8310_v48  ;;  %v5940_v22 = vmul.f32 %v8319_v1, %v8319_v1  ;;  %v5805_v4 = vpop.f32.mrf.mxu0 }
 0xac0   :  { %v5880_v28 = vadd.f32 0.4994258, %v5879_v15  ;;  %v5905_v63 = vadd.f32 0.0036580483, %v5904_v42  ;;  %v5806_v35 = vadd.f32 %v5805_v4, %v5761_v47  ;;  %v5869_v0 = vadd.f32 0.18741608, %v5868_v16 }
 0xac1   :  { %v5916_v51 = vadd.f32 0.014752088, %v5915_v19  ;;  %v8327_v14 = vmin.f32 %v5940_v22, 16.0  ;;  %v6031_v42 = vld [vmem:[#allocation10 + $0x18] sm:$0xff] }
 0xac2   :  { %v5881_v11 = vmul.f32 %v5880_v28, %v8294_v38  ;;  %v5906_v26 = vmul.f32 %v5905_v63, %v8310_v48  ;;  %v8333_v33 = vadd.f32 %v5842_v24, %v5806_v35  ;;  %v5870_v21 = vmul.f32 %v5869_v0, %v8294_v38 }
 0xac3   :  { %v5917_v10 = vmul.f32 %v5916_v51, %v8310_v48  ;;  %v5942_v7 = vmul.f32 2.1237322e-06, %v8327_v14  ;;  %v5953_v36 = vmul.f32 3.8918573e-05, %v8327_v14  ;;  %v8361_v51 = vand.u32 4294901760, %v6031_v42 }
 0xac4   :  { %v5882_v23 = vadd.f32 1.0, %v5881_v11  ;;  %v5907_v40 = vadd.f32 0.05243302, %v5906_v26  ;;  %v8342_v58 = vmul.f32 %v8284_v62, %v8333_v33  ;;  %v5871_v38 = vadd.f32 1.1283791, %v5870_v21 }
 0xac5   :  { %v5918_v27 = vadd.f32 0.112945676, %v5917_v10  ;;  %v5943_v43 = vadd.f32 0.00028619796, %v5942_v7  ;;  %v5954_v44 = vadd.f32 0.001143296, %v5953_v36  ;;  %6061 = vmatpush.msrb.mxu2 %v8361_v51  ;;  %v8368_v24 = vsub.f32 %v6031_v42, %v8361_v51  ;;  %6212 = vmatpush.msrb.mxu1 %v8361_v51 }
 0xac6   :  { %6469 = vrcp.f32 %v5882_v23  ;;  %v5908_v29 = vmul.f32 %v5907_v40, %v8310_v48  ;;  %v5980_v6 = vmul.f32 %v8342_v58, %v8342_v58  ;;  %v5892_v61 = vand.u32 2147483647, %v5882_v23 }
 0xac7   :  { %v5919_v50 = vmul.f32 %v5918_v27, %v8310_v48  ;;  %v5944_v25 = vmul.f32 %v5943_v43, %v8327_v14  ;;  %v5955_v34 = vmul.f32 %v5954_v44, %v8327_v14  ;;  %v5894_v46 = vand.u32 2147483648, %v5882_v23  ;;  %6168 = vmatpush.msrb.mxu0 %v8368_v24 }
 0xac8   :  { %v5909_v17 = vadd.f32 0.18741608, %v5908_v29  ;;  %v8349_v55 = vmin.f32 %v5980_v6, 16.0  ;;  %v5872_v30 = vmul.f32 %v5871_v38, %v8290_v49  ;;  %vm5888_vm13 = vweird.f32 %v5882_v23 }
 0xac9   :  { %v5920_v37 = vadd.f32 0.4994258, %v5919_v50  ;;  %v5945_v54 = vadd.f32 0.0036580483, %v5944_v25  ;;  %v5956_v9 = vadd.f32 0.014752088, %v5955_v34 }
 0xaca   :  { %v5982_v5 = vmul.f32 2.1237322e-06, %v8349_v55  ;;  %v5910_v41 = vmul.f32 %v5909_v17, %v8310_v48  ;;  %v5993_v47 = vmul.f32 3.8918573e-05, %v8349_v55  ;;  %vm5893_vm15 = vcmp.eq.f32.partialorder %v5892_v61, 8.507059e+37 }
 0xacb   :  { %v5921_v53 = vmul.f32 %v5920_v37, %v8310_v48  ;;  %v5946_v31 = vmul.f32 %v5945_v54, %v8327_v14  ;;  %v5957_v12 = vmul.f32 %v5956_v9, %v8327_v14  ;;  %v5895_v19 = vor.u32 1.1754944e-38, %v5894_v46  ;;  %v6030_v48 = vld [vmem:[#allocation10 + $0x10] sm:$0xff] }
 0xacc   :  { %v6470_v3 = vpop.eup %6469  ;;  %v5983_v28 = vadd.f32 0.00028619796, %v5982_v5  ;;  %v5994_v49 = vadd.f32 0.001143296, %v5993_v47  ;;  %v5845_v35 = vmul.f32 0.5, %v8286_v8  ;;  %v8370_v40 = vand.u32 4294901760, %v6030_v48 }
 0xacd   :  { %v5884_v13 = vmul.f32 %v6470_v3, %v5882_v23  ;;  %v8351_v45 = vadd.f32 1.0, %v5921_v53  ;;  %v5947_v52 = vadd.f32 0.05243302, %v5946_v31  ;;  %v5958_v2 = vadd.f32 0.112945676, %v5957_v12  ;;  %v6029_v53 = vld [vmem:[#allocation10 + $0x8] sm:$0xff] }
 0xace   :  { %vm5889_vm12 = vweird.f32 %v6470_v3  ;;  %v5984_v63 = vmul.f32 %v5983_v28, %v8349_v55  ;;  %v5911_v23 = vadd.f32 1.1283791, %v5910_v41  ;;  %v5995_v36 = vmul.f32 %v5994_v49, %v8349_v55  ;;  %6063 = vmatpush.msrb.mxu2 %v8370_v40  ;;  %6214 = vmatpush.msrb.mxu1 %v8370_v40 }
 0xacf   :  { %v5885_v62 = vsub.f32 1.0, %v5884_v13  ;;  %6471 = vrcp.f32 %v8351_v45  ;;  %v5959_v20 = vmul.f32 %v5958_v2, %v8327_v14  ;;  %vm5890_vm14 = vmor %vm5888_vm13, %vm5889_vm12  ;;  %v5948_v22 = vmul.f32 %v5947_v52, %v8327_v14 }
 0xad0   :  { %v5932_v8 = vand.u32 2147483647, %v8351_v45  ;;  %v5985_v50 = vadd.f32 0.0036580483, %v5984_v63  ;;  %v5996_v29 = vadd.f32 0.014752088, %v5995_v36  ;;  %v5912_v37 = vmul.f32 %v5911_v23, %v8304_v18 }
 0xad1   :  { %v5886_v15 = vmul.f32 %v6470_v3, %v5885_v62  ;;  %v5960_v11 = vadd.f32 0.4994258, %v5959_v20  ;;  %v5949_v43 = vadd.f32 0.18741608, %v5948_v22  ;;  %v6115_v25 = vand.u32 4294901760, %v8368_v24  ;;  %v6028_v18 = vld [vmem:[#allocation10] sm:$0xff] }
 0xad2   :  { %v8381_v34 = vmul.f32 0.5, %v8298_v59  ;;  %vm5928_vm1 = vweird.f32 %v8351_v45  ;;  %v5934_v9 = vand.u32 2147483648, %v8351_v45  ;;  %v5997_v38 = vmul.f32 %v5996_v29, %v8349_v55 }
 0xad3   :  { %v5887_v16 = vadd.f32 %v6470_v3, %v5886_v15  ;;  %v5961_v26 = vmul.f32 %v5960_v11, %v8327_v14  ;;  %v6116_v13 = vsub.f32 %v8368_v24, %v6115_v25  ;;  %v6120_v59 = vsub.f32 %v6030_v48, %v8370_v40 }
 0xad4   :  { %vm8391_vm3 = vcmp.eq.f32.partialorder %v5932_v8, 8.507059e+37  ;;  %v5950_v12 = vmul.f32 %v5949_v43, %v8327_v14  ;;  %v5986_v62 = vmul.f32 %v5985_v50, %v8349_v55  ;;  %v5998_v46 = vadd.f32 0.112945676, %v5997_v38 }
 0xad5   :  { %v5891_v4 = vsel %vm5890_vm14, %v6470_v3, %v5887_v16  ;;  %v6472_v10 = vpop.eup %6471  ;;  %v8375_v44 = vadd.f32 1.0, %v5961_v26  ;;  %v6117_v52 = vand.u32 4294901760, %v6116_v13  ;;  %v6121_v2 = vand.u32 4294901760, %v6120_v59  ;;  %6171 = vmatpush.msrb.mxu0 %v6120_v59 }
 0xad6   :  { %v5896_v0 = vsel %vm5893_vm15, %v5895_v19, %v5891_v4  ;;  %v5924_v27 = vmul.f32 %v6472_v10, %v8351_v45  ;;  %vm5929_vm2 = vweird.f32 %v6472_v10  ;;  %v5935_v15 = vor.u32 1.1754944e-38, %v5934_v9 }
 0xad7   :  { %v5897_v7 = vmul.f32 %v5896_v0, %v5872_v30  ;;  %6473 = vrcp.f32 %v8375_v44  ;;  %vm5930_vm4 = vmor %vm5928_vm1, %vm5929_vm2  ;;  %v8401_v30 = vand.u32 4294901760, %v6029_v53  ;;  %v8403_v41 = vand.u32 4294901760, %v6028_v18  ;;  %6118 = vmatpush.msrb.mxu3 %v6117_v52 }
 0xad8   :  { %v5925_v3 = vsub.f32 1.0, %v5924_v27  ;;  %v5999_v28 = vmul.f32 %v5998_v46, %v8349_v55  ;;  %v6122_v47 = vsub.f32 %v6120_v59, %v6121_v2  ;;  %v5951_v19 = vadd.f32 1.1283791, %v5950_v12 }
 0xad9   :  { %v6356_v21 = vclamps-f32 %v5897_v7, 1.0  ;;  %v5987_v22 = vadd.f32 0.05243302, %v5986_v62  ;;  %6065 = vmatpush.msrb.mxu2 %v8401_v30  ;;  %6216 = vmatpush.msrb.mxu1 %v8401_v30  ;;  %v6126_v0 = vsub.f32 %v6029_v53, %v8401_v30  ;;  %v6132_v23 = vsub.f32 %v6028_v18, %v8403_v41 }
 0xada   :  { %v5926_v6 = vmul.f32 %v6472_v10, %v5925_v3  ;;  %v6000_v63 = vadd.f32 0.4994258, %v5999_v28  ;;  %v6123_v49 = vand.u32 4294901760, %v6122_v47  ;;  %vm5968_vm6 = vweird.f32 %v8375_v44 }
 0xadb   :  { %v6020_v54 = vadd.f32 1.0, %v6356_v21  ;;  %6218 = vmatpush.msrb.mxu1 %v8403_v41  ;;  %6067 = vmatpush.msrb.mxu2 %v8403_v41  ;;  %v6127_v27 = vand.u32 4294901760, %v6126_v0  ;;  %v6133_v8 = vand.u32 4294901760, %v6132_v23  ;;  %v5988_v21 = vmul.f32 %v5987_v22, %v8349_v55 }
 0xadc   :  { %v5927_v61 = vadd.f32 %v6472_v10, %v5926_v6  ;;  %v6001_v7 = vmul.f32 %v6000_v63, %v8349_v55  ;;  %6124 = vmatpush.msrb.mxu3 %v6123_v49  ;;  %6174 = vmatpush.msrb.mxu0 %v6126_v0  ;;  %v5952_v9 = vmul.f32 %v5951_v19, %v8319_v1  ;;  %v5847_v46 = vmul.f32 0.5, %v8314_v56 }
 0xadd   :  { %v6024_v17 = vmul.f32 %v6020_v54, %v5845_v35  ;;  %v6474_v20 = vpop.eup %6473  ;;  %v5972_v35 = vand.u32 2147483647, %v8375_v44  ;;  %6259 = vmatpush.msra.mxu2 %v6115_v25  ;;  %v6128_v3 = vsub.f32 %v6126_v0, %v6127_v27  ;;  %v6134_v54 = vsub.f32 %v6132_v23, %v6133_v8 }
 0xade   :  { %v5931_v16 = vsel %vm5930_vm4, %v6472_v10, %v5927_v61  ;;  %v5964_v45 = vmul.f32 %v6474_v20, %v8375_v44  ;;  %v5974_v10 = vand.u32 2147483648, %v8375_v44  ;;  %vm5969_vm5 = vweird.f32 %v6474_v20  ;;  %6177 = vmatpush.msrb.mxu0 %v6132_v23 }
 0xadf   :  { %v6037_v5 = vsel %vm135_vm0, %v6024_v17, 0  ;;  %v5936_v42 = vsel %vm8391_vm3, %v5935_v15, %v5931_v16  ;;  %v8422_v50 = vadd.f32 1.0, %v6001_v7  ;;  %6263 = vmatpush.msra.mxu2 %v6121_v2  ;;  %vm5970_vm7 = vmor %vm5968_vm6, %vm5969_vm5  ;;  %vm5973_vm8 = vcmp.eq.f32.partialorder %v5972_v35, 8.507059e+37 }
 0xae0   :  { %v8405_v14 = vand.u32 4294901760, %v6037_v5  ;;  %v5937_v4 = vmul.f32 %v5936_v42, %v5912_v37  ;;  %v5965_v48 = vsub.f32 1.0, %v5964_v45  ;;  %v5975_v6 = vor.u32 1.1754944e-38, %v5974_v10 }
 0xae1   :  { %6475 = vrcp.f32 %v8422_v50  ;;  %6267 = vmatpush.msra.mxu2 %v6127_v27  ;;  %v6129_v13 = vand.u32 4294901760, %v6128_v3  ;;  %v6135_v59 = vand.u32 4294901760, %v6134_v54  ;;  %v5989_v44 = vadd.f32 0.18741608, %v5988_v21 }
 0xae2   :  { %v6069_v11 = vsub.f32 %v6037_v5, %v8405_v14  ;;  %v6357_v26 = vclamps-f32 %v5937_v4, 1.0  ;;  %v5966_v24 = vmul.f32 %v6474_v20, %v5965_v48  ;;  %v6014_v47 = vand.u32 2147483648, %v8422_v50 }
 0xae3   :  { %6271 = vmatpush.msra.mxu2 %v6133_v8  ;;  %6130 = vmatpush.msrb.mxu3 %v6129_v13  ;;  %v5990_v61 = vmul.f32 %v5989_v44, %v8349_v55  ;;  %v6012_v55 = vand.u32 2147483647, %v8422_v50  ;;  %vm6008_vm10 = vweird.f32 %v8422_v50  ;;  %v5848_v23 = vmul.f32 0.5, %v8333_v33 }
 0xae4   :  { %v6070_v36 = vand.u32 4294901760, %v6069_v11  ;;  %v6021_v43 = vadd.f32 1.0, %v6357_v26  ;;  %v5967_v37 = vadd.f32 %v6474_v20, %v5966_v24  ;;  %6180 = vmatmul.f32.vlgmr.msrb.gmra.mxu0 %v6069_v11 }
 0xae5   :  { %6136 = vmatpush.msrb.mxu3 %v6135_v59  ;;  %v5991_v28 = vadd.f32 1.1283791, %v5990_v61  ;;  %vm6013_vm12 = vcmp.eq.f32.partialorder %v6012_v55, 8.507059e+37 }
 0xae6   :  { %6222 = vmatmul.f32.vlgmr.msrb.gmra.mxu1 %v6070_v36  ;;  %v6071_v29 = vsub.f32 %v6069_v11, %v6070_v36  ;;  %v6025_v25 = vmul.f32 %v6021_v43, %v8381_v34  ;;  %v5971_v38 = vsel %vm5970_vm7, %v6474_v20, %v5967_v37  ;;  %6138 = vmatmul.f32.vlgmr.msrb.gmra.mxu3 %v8405_v14  ;;  %v6384_v37 = vld [vmem:[#allocation11] ss:$0 sm:$0xff] }
 0xae7   :  { %v5976_v53 = vsel %vm5973_vm8, %v5975_v6, %v5971_v38  ;;  %v6476_v62 = vpop.eup %6475  ;;  %6302 = vmatpush.msra.mxu3 %v8361_v51  ;;  %v5992_v11 = vmul.f32 %v5991_v28, %v8342_v58 }
 0xae8   :  { %v6072_v18 = vand.u32 4294901760, %v6071_v29  ;;  %v6040_v17 = vsel %vm135_vm0, %v6025_v25, 0  ;;  %v5977_v34 = vmul.f32 %v5976_v53, %v5952_v9  ;;  %v6004_v2 = vmul.f32 %v6476_v62, %v8422_v50 }
 0xae9   :  { %v8430_v1 = vand.u32 4294901760, %v6040_v17  ;;  %6304 = vmatpush.msra.mxu3 %v8370_v40  ;;  %vm6009_vm9 = vweird.f32 %v6476_v62  ;;  %v6015_v40 = vor.u32 1.1754944e-38, %v6014_v47 }
 0xaea   :  { %6073 = vmatmul.f32.vlgmr.msrb.gmra.mxu2 %v6072_v18  ;;  %v6358_v31 = vclamps-f32 %v5977_v34, 1.0  ;;  %v6005_v20 = vsub.f32 1.0, %v6004_v2  ;;  %vm6010_vm11 = vmor %vm6008_vm10, %vm6009_vm9 }
 0xaeb   :  { %v6077_v12 = vsub.f32 %v6040_v17, %v8430_v1  ;;  %6306 = vmatpush.msra.mxu3 %v8401_v30 }
 0xaec   :  { %v6022_v52 = vadd.f32 1.0, %v6358_v31  ;;  %v6006_v42 = vmul.f32 %v6476_v62, %v6005_v20 }
 0xaed   :  { %v6078_v5 = vand.u32 4294901760, %v6077_v12  ;;  %6185 = vmatmul.f32.gmra.mxu0 %v6077_v12  ;;  %6308 = vmatpush.msra.mxu3 %v8403_v41 }
 0xaee   :  { %v6026_v15 = vmul.f32 %v6022_v52, %v5847_v46  ;;  %v6007_v45 = vadd.f32 %v6476_v62, %v6006_v42  ;;  %6142 = vmatmul.f32.gmra.mxu3 %v8430_v1 }
 0xaef   :  { %6228 = vmatmul.f32.gmra.mxu1 %v6078_v5  ;;  %v6079_v16 = vsub.f32 %v6077_v12, %v6078_v5 }
 0xaf0   :  { %v6043_v19 = vsel %vm135_vm0, %v6026_v15, 0  ;;  %v6011_v4 = vsel %vm6010_vm11, %v6476_v62, %v6007_v45 }
 0xaf1   :  { %v6080_v56 = vand.u32 4294901760, %v6079_v16  ;;  %v6084_v51 = vand.u32 4294901760, %v6043_v19  ;;  %v6016_v63 = vsel %vm6013_vm12, %v6015_v40, %v6011_v4 }
 0xaf2   :  { %v6017_v30 = vmul.f32 %v6016_v63, %v5992_v11 }
 0xaf3   :  { %6081 = vmatmul.f32.gmra.mxu2 %v6080_v56  ;;  %v6085_v22 = vsub.f32 %v6043_v19, %v6084_v51 }
 0xaf4   :  { %v6359_v35 = vclamps-f32 %v6017_v30, 1.0 }
 0xaf5   :  { %6190 = vmatmul.f32.gmra.mxu0 %v6085_v22  ;;  %v6086_v49 = vand.u32 4294901760, %v6085_v22 }
 0xaf6   :  { %v6023_v41 = vadd.f32 1.0, %v6359_v35  ;;  %6146 = vmatmul.f32.gmra.mxu3 %v6084_v51 }
 0xaf7   :  { %6234 = vmatmul.f32.gmra.mxu1 %v6086_v49  ;;  %v6087_v48 = vsub.f32 %v6085_v22, %v6086_v49 }
 0xaf8   :  { %v6027_v26 = vmul.f32 %v6023_v41, %v5848_v23 }
 0xaf9   :  { %v6088_v0 = vand.u32 4294901760, %v6087_v48 }
 0xafa   :  { %v6046_v10 = vsel %vm135_vm0, %v6027_v26, 0 }
 0xafb   :  { %6089 = vmatmul.f32.gmra.mxu2 %v6088_v0  ;;  %v6092_v7 = vand.u32 4294901760, %v6046_v10 }
 0xafd   :  { %v6093_v58 = vsub.f32 %v6046_v10, %v6092_v7 }
 0xafe   :  { %6150 = vmatmul.f32.gmra.mxu3 %v6092_v7 }
 0xaff   :  { %6195 = vmatmul.f32.gmra.mxu0 %v6093_v58  ;;  %v6094_v36 = vand.u32 4294901760, %v6093_v58 }
 0xb01   :  { %6240 = vmatmul.f32.gmra.mxu1 %v6094_v36  ;;  %v6095_v24 = vsub.f32 %v6093_v58, %v6094_v36 }
 0xb03   :  { %v6096_v27 = vand.u32 4294901760, %v6095_v24 }
 0xb05   :  { %6097 = vmatmul.f32.gmra.mxu2 %v6096_v27 }
 0xb06   :  { %6310 = vmatmul.f32.vlgmr.msra.gmra.mxu3 %v8405_v14 }
 0xb0d   :  { %6273 = vmatmul.f32.vlgmr.msra.gmra.mxu2 %v8405_v14 }
 0xb0e   :  { %6314 = vmatmul.f32.gmra.mxu3 %v8430_v1 }
 0xb15   :  { %6277 = vmatmul.f32.gmra.mxu2 %v8430_v1 }
 0xb16   :  { %6318 = vmatmul.f32.gmra.mxu3 %v6084_v51 }
 0xb1d   :  { %6281 = vmatmul.f32.gmra.mxu2 %v6084_v51 }
 0xb1e   :  { %6322 = vmatmul.f32.gmra.mxu3 %v6092_v7 }
 0xb25   :  { %6285 = vmatmul.f32.gmra.mxu2 %v6092_v7 }
 0xb61   :  { %v6181_v25 = vpop.f32.mrf.mxu0 }
 0xb63   :  { %v6223_v14 = vpop.f32.mrf.mxu1 }
 0xb69   :  { %v6139_v33 = vpop.f32.mrf.mxu3 }
 0xb6a   :  { %v6186_v53 = vpop.f32.mrf.mxu0 }
 0xb6c   :  { %v6229_v1 = vpop.f32.mrf.mxu1 }
 0xb6d   :  { %v6074_v8 = vpop.f32.mrf.mxu2 }
 0xb6e   :  { %v6075_v54 = vadd.f32 %v6384_v37, %v6074_v8 }
 0xb70   :  { %v6140_v9 = vadd.f32 %v6139_v33, %v6075_v54 }
 0xb71   :  { %v6143_v43 = vpop.f32.mrf.mxu3 }
 0xb72   :  { %v6182_v13 = vadd.f32 %v6181_v25, %v6140_v9  ;;  %v6191_v5 = vpop.f32.mrf.mxu0 }
 0xb74   :  { %v6224_v18 = vadd.f32 %v6223_v14, %v6182_v13  ;;  %v6235_v47 = vpop.f32.mrf.mxu1 }
 0xb76   :  { %v6082_v21 = vpop.f32.mrf.mxu2 }
 0xb77   :  { %v6083_v38 = vadd.f32 %v6384_v37, %v6082_v21 }
 0xb79   :  { %v6147_v50 = vpop.f32.mrf.mxu3  ;;  %v6144_v44 = vadd.f32 %v6143_v43, %v6083_v38 }
 0xb7b   :  { %v6187_v62 = vadd.f32 %v6186_v53, %v6144_v44 }
 0xb7c   :  { %v6196_v40 = vpop.f32.mrf.mxu0 }
 0xb7d   :  { %v6230_v2 = vadd.f32 %v6229_v1, %v6187_v62 }
 0xb7e   :  { %v6090_v29 = vpop.f32.mrf.mxu2  ;;  %v6241_v63 = vpop.f32.mrf.mxu1 }
 0xb7f   :  { %v6091_v31 = vadd.f32 %v6384_v37, %v6090_v29 }
 0xb81   :  { %v6151_v3 = vpop.f32.mrf.mxu3  ;;  %v6148_v52 = vadd.f32 %v6147_v50, %v6091_v31 }
 0xb83   :  { %v6192_v55 = vadd.f32 %v6191_v5, %v6148_v52 }
 0xb85   :  { %v6236_v19 = vadd.f32 %v6235_v47, %v6192_v55 }
 0xb88   :  { %v6098_v6 = vpop.f32.mrf.mxu2 }
 0xb89   :  { %v6311_v59 = vpop.f32.mrf.mxu3  ;;  %v6099_v16 = vadd.f32 %v6384_v37, %v6098_v6 }
 0xb8b   :  { %v6152_v56 = vadd.f32 %v6151_v3, %v6099_v16 }
 0xb8d   :  { %v6197_v11 = vadd.f32 %v6196_v40, %v6152_v56 }
 0xb8f   :  { %v6242_v49 = vadd.f32 %v6241_v63, %v6197_v11 }
 0xb90   :  { %v6274_v17 = vpop.f32.mrf.mxu2 }
 0xb91   :  { %v6275_v34 = vadd.f32 %v6274_v17, %v6224_v18  ;;  %v6315_v46 = vpop.f32.mrf.mxu3 }
 0xb93   :  { %v6312_v12 = vadd.f32 %v6311_v59, %v6275_v34 }
 0xb95   :  { %v6326_v61 = vadd.f32 %v6312_v12, %v8169_v60 }
 0xb97   :  { %6330 = vst.msk [vmem:[#allocation13] sm:$0xff] %vm135_vm0, %v6326_v61 }
 0xb98   :  { %v6278_v15 = vpop.f32.mrf.mxu2 }
 0xb99   :  { %v6279_v20 = vadd.f32 %v6278_v15, %v6230_v2  ;;  %v6319_v51 = vpop.f32.mrf.mxu3 }
 0xb9b   :  { %v6316_v28 = vadd.f32 %v6315_v46, %v6279_v20 }
 0xb9d   :  { %v6327_v42 = vadd.f32 %v6316_v28, %v8180_v39 }
 0xb9f   :  { %6331 = vst.msk [vmem:[#allocation13 + $0x8] sm:$0xff] %vm135_vm0, %v6327_v42 }
 0xba0   :  { %v6282_v60 = vpop.f32.mrf.mxu2 }
 0xba1   :  { %v6283_v45 = vadd.f32 %v6282_v60, %v6236_v19  ;;  %v6323_v35 = vpop.f32.mrf.mxu3 }
 0xba3   :  { %v6320_v22 = vadd.f32 %v6319_v51, %v6283_v45 }
 0xba5   :  { %v6328_v4 = vadd.f32 %v6320_v22, %v8191_v57 }
 0xba7   :  { %6332 = vst.msk [vmem:[#allocation13 + $0x10] sm:$0xff] %vm135_vm0, %v6328_v4 }
 0xba8   :  { %v6286_v30 = vpop.f32.mrf.mxu2 }
 0xba9   :  { %v6287_v48 = vadd.f32 %v6286_v30, %v6242_v49 }
 0xbab   :  { %v6324_v39 = vadd.f32 %v6323_v35, %v6287_v48 }
 0xbad   :  { %v6329_v0 = vadd.f32 %v6324_v39, %v8204_v32 }
 0xbaf   :  { %6333 = vst.msk [vmem:[#allocation13 + $0x18] sm:$0xff] %vm135_vm0, %v6329_v0 }
 0xbb0   :  { %6346 = dma.vmem_to_hbm [thread:$0]  %s6339_s6, 512, %s6341_s7, [#allocation4], %s6660_s25, %s6660_s25, %s6661_s26  }
 0xbb1   :  { %6657 = dma.done.wait [#allocation4], 512  }
 0xbb2   :  { %6658 = vsyncadd [#allocation4], 4294966784 }
 0xbb3   :  { %6351 = vsyncpa [#allocation3], 1 }
 0xbb4   :  { %6352 = vsyncpa [#allocation6], 1 }
 0xbb5   :  { %6353 = vsyncpa [#allocation9], 1 }
 0xbb6   :  { %6354 = vsyncpa [#allocation12], 1 }
 0xbb7   :  { %6355 = vsyncpa [#allocation4], 1 }

</bundles_post_ra>
